<compile_context>
chip_gen: v7x
topology: tpu7x:2x2x1
jax: 0.10.0
libtpu: 0.0.40
codegen_flags: <defaults>
</compile_context>

<pallas_src>
import functools

import jax
import jax.numpy as jnp
from jax.experimental import pallas as pl
from jax.experimental.pallas import tpu as pltpu

LEAK = 0.01   # nn.LeakyReLU default negative_slope
KSIZE = 3     # kernel_size
STRIDE = 1    # stride


def _leaky(x):
    # max(x, 0.01*x) == LeakyReLU for 0 < slope < 1; one VALU op cheaper than
    # where(x>0, x, 0.01*x).
    return jnp.maximum(x, LEAK * x)


# ------------------------------ fused kernel -------------------------------

def qnet_fused_kernel(x_ref, w1_ref, b1_ref, w2_ref, b2_ref,
                      w1e_ref, bl1_ref, wl2_ref, bl2_ref, out_ref,
                      *, C, O, H, W, K):
    """Whole QNetworkCNN forward for one batch tile.

    x_ref   : (bm, C*H*W)        VMEM  lane-dense input, channels concatenated
                                       along lanes (each channel 128-aligned)
    w1_ref  : (O*C*K*K,)         SMEM  conv1 weight, OIHW flattened
    b1_ref  : (O,)               SMEM
    w2_ref  : (O*O*K*K,)         SMEM  conv2 weight, OIHW flattened
    b2_ref  : (O,)               SMEM
    w1e_ref : (O*H*W, hidden)    VMEM  Linear1 weight expanded to the full HxW
                                       grid, zero rows at invalid positions
    bl1_ref : (1, hidden)        VMEM
    wl2_ref : (hidden, A)        VMEM  Linear2 weight pre-transposed (in, out)
    bl2_ref : (1, A)             VMEM
    out_ref : (bm, A)            VMEM
    """
    HW = H * W

    def shifted(slab, off):
        # slab[b, p] -> slab[b, p + off].  Wrap-around garbage only lands on
        # positions that are never read (conv) or zero-weighted (lin1).
        return slab if off == 0 else pltpu.roll(slab, HW - off, axis=1)

    # ---- conv1 (VALID, stride 1) + LeakyReLU on the full HxW lane grid ----
    # One input-channel slab live at a time (vreg-pressure friendly at bm>=32).
    acc1 = [None] * O
    for ic in range(C):
        xi = x_ref[:, ic * HW:(ic + 1) * HW]          # free 128-aligned slice
        for dy in range(K):
            for dx in range(K):
                sh = shifted(xi, dy * W + dx)         # one roll, reused per oc
                for oc in range(O):
                    w = w1_ref[((oc * C + ic) * K + dy) * K + dx]
                    t = sh * w
                    acc1[oc] = t if acc1[oc] is None else acc1[oc] + t
    h1 = [_leaky(acc1[oc] + b1_ref[oc]) for oc in range(O)]        # (bm, HW)

    # ---- conv2 (VALID, stride 1) + LeakyReLU ----
    acc2 = [None] * O
    for ic in range(O):
        for dy in range(K):
            for dx in range(K):
                sh = shifted(h1[ic], dy * W + dx)
                for oc in range(O):
                    w = w2_ref[((oc * O + ic) * K + dy) * K + dx]
                    t = sh * w
                    acc2[oc] = t if acc2[oc] is None else acc2[oc] + t
    # Lane-concatenate the O output channels -> single (bm, O*HW) slab.
    h2 = jnp.concatenate(
        [_leaky(acc2[oc] + b2_ref[oc]) for oc in range(O)], axis=1)

    # ---- flatten + Linear(F->hidden) as ONE MXU matmul (K = O*HW) ----
    lin = jnp.dot(h2, w1e_ref[...], preferred_element_type=jnp.float32)
    lin = _leaky(lin + bl1_ref[...])                               # (bm, hidden)

    # ---- Linear(hidden->A) ----
    out_ref[...] = (jnp.dot(lin, wl2_ref[...],
                            preferred_element_type=jnp.float32)
                    + bl2_ref[...]).astype(out_ref.dtype)


# ---------------------- one-time parameter preparation ----------------------

def prepare_params(params, in_shape):
    """Re-layout PyTorch-style params into kernel-friendly form (done once)."""
    C, H, W = in_shape
    O, Cw, K, _ = params["conv1_w"].shape
    assert Cw == C and K == KSIZE
    # Roll-trick invariants: stride-1 VALID convs, pad extent == 2*(K-1).
    assert STRIDE == 1, "roll-based conv fusion requires stride 1"
    Ho = H - 2 * (K - 1)          # spatial extent after BOTH valid convs
    Wo = W - 2 * (K - 1)
    assert Ho >= 1 and Wo >= 1
    hidden, F = params["lin1_w"].shape
    assert F == O * Ho * Wo, "lin1 weight does not match conv output size"

    # Fold "select valid conv2 pixels + NCHW flatten + Linear1" into a weight
    # on the full HxW lane grid; invalid (border / wrapped) positions get zero
    # rows.  Reshaped to (O*H*W, hidden) so the kernel does a single matmul
    # against the lane-concatenated conv2 output.
    w = params["lin1_w"].reshape(hidden, O, Ho, Wo)
    w = jnp.transpose(w, (1, 2, 3, 0))                        # (O, Ho, Wo, hid)
    w = jnp.pad(w, ((0, 0), (0, H - Ho), (0, W - Wo), (0, 0)))
    assert w.shape == (O, H, W, hidden)
    w1e = w.reshape(O * H * W, hidden).astype(jnp.float32)

    return {
        "conv1_w_flat": params["conv1_w"].reshape(-1).astype(jnp.float32),
        "conv1_b": params["conv1_b"].astype(jnp.float32),
        "conv2_w_flat": params["conv2_w"].reshape(-1).astype(jnp.float32),
        "conv2_b": params["conv2_b"].astype(jnp.float32),
        "w1e": w1e,
        "lin1_b": params["lin1_b"].reshape(1, -1).astype(jnp.float32),
        "lin2_wT": params["lin2_w"].T.astype(jnp.float32),
        "lin2_b": params["lin2_b"].reshape(1, -1).astype(jnp.float32),
    }


# ------------------------------ host wrapper -------------------------------

def qnetwork_forward(prep, x, *, bm_max=32, core_parallel=False):
    """x: (B, C, H, W) float32 -> (B, num_actions) float32.

    bm_max: batch tile (multiple of 8).  32 is a good default on all
    generations; VMEM is never the limit here (resident footprint < 1 MiB even
    on v7x's 64 MiB), vreg pressure in the unrolled conv is.
    core_parallel: on v7x set True (and size bm so the grid has >=2 steps) to
    split the batch grid across both TensorCores.
    """
    B, C, H, W = x.shape
    HW = H * W
    K = KSIZE
    O = prep["conv1_b"].shape[0]
    hidden = prep["lin1_b"].shape[1]
    A = prep["lin2_b"].shape[1]
    assert H >= 2 * (K - 1) + 1 and W >= 2 * (K - 1) + 1
    assert prep["w1e"].shape == (O * HW, hidden)

    xf = x.reshape(B, C * HW).astype(jnp.float32)     # metadata-only reshape

    assert bm_max % 8 == 0
    bm = B if B <= bm_max else bm_max                 # tile = full dim or 8-mult
    grid = (pl.cdiv(B, bm),)

    sem = pltpu.CORE_PARALLEL if core_parallel else "parallel"
    smem = pl.BlockSpec(memory_space=pltpu.MemorySpace.SMEM)
    kernel = functools.partial(qnet_fused_kernel, C=C, O=O, H=H, W=W, K=K)

    return pl.pallas_call(
        kernel,
        out_shape=jax.ShapeDtypeStruct((B, A), jnp.float32),
        grid=grid,
        in_specs=[
            pl.BlockSpec((bm, C * HW), lambda b: (b, 0)),
            smem, smem, smem, smem,
            pl.BlockSpec((O * HW, hidden), lambda b: (0, 0)),
            pl.BlockSpec((1, hidden), lambda b: (0, 0)),
            pl.BlockSpec((hidden, A), lambda b: (0, 0)),
            pl.BlockSpec((1, A), lambda b: (0, 0)),
        ],
        out_specs=pl.BlockSpec((bm, A), lambda b: (b, 0)),
        compiler_params=pltpu.CompilerParams(
            dimension_semantics=(sem,)),
    )(xf,
      prep["conv1_w_flat"], prep["conv1_b"],
      prep["conv2_w_flat"], prep["conv2_b"],
      prep["w1e"], prep["lin1_b"], prep["lin2_wT"], prep["lin2_b"])


# -------------------------- deterministic init -----------------------------

def _xavier_uniform(key, shape, fan_in, fan_out):
    bound = (6.0 / (fan_in + fan_out)) ** 0.5
    return jax.random.uniform(key, shape, jnp.float32, -bound, bound)


def init_params(key, num_actions, in_shape, out_channels=3, hidden_units=32):
    C, H, W = in_shape
    k0, k1, k2, k3 = jax.random.split(key, 4)
    F = out_channels * (H - 2 * (KSIZE - 1)) * (W - 2 * (KSIZE - 1))
    return {
        "conv1_w": _xavier_uniform(k0, (out_channels, C, KSIZE, KSIZE),
                                   C * KSIZE * KSIZE, out_channels * KSIZE * KSIZE),
        "conv1_b": jnp.full((out_channels,), 0.01, jnp.float32),
        "conv2_w": _xavier_uniform(k1, (out_channels, out_channels, KSIZE, KSIZE),
                                   out_channels * KSIZE * KSIZE,
                                   out_channels * KSIZE * KSIZE),
        "conv2_b": jnp.full((out_channels,), 0.01, jnp.float32),
        "lin1_w": _xavier_uniform(k2, (hidden_units, F), F, hidden_units),
        "lin1_b": jnp.full((hidden_units,), 0.01, jnp.float32),
        "lin2_w": _xavier_uniform(k3, (num_actions, hidden_units),
                                  hidden_units, num_actions),
        "lin2_b": jnp.full((num_actions,), 0.01, jnp.float32),
    }


# ------------------------------ pure-JAX ref --------------------------------

def reference_forward(params, x):
    def conv(a, w, b):
        y = jax.lax.conv_general_dilated(
            a, w, (STRIDE, STRIDE), "VALID",
            dimension_numbers=("NCHW", "OIHW", "NCHW"))
        return y + b[None, :, None, None]

    h = _leaky(conv(x, params["conv1_w"], params["conv1_b"]))
    h = _leaky(conv(h, params["conv2_w"], params["conv2_b"]))
    hf = h.reshape(x.shape[0], -1)
    h = _leaky(hf @ params["lin1_w"].T + params["lin1_b"])
    return h @ params["lin2_w"].T + params["lin2_b"]


if __name__ == "__main__":
    key = jax.random.PRNGKey(0)
    pkey, xkey, xkey2 = jax.random.split(key, 3)

    in_shape = (4, 16, 16)      # (C, H, W)
    num_actions = 4
    batch = 2

    params = init_params(pkey, num_actions, in_shape)
    prep = prepare_params(params, in_shape)

    # Small demo batch (grid collapses to a single step).
    x = jax.random.uniform(xkey, (batch, *in_shape), jnp.float32)
    out = qnetwork_forward(prep, x)
    jax.block_until_ready(out)
    ref = reference_forward(params, x)
    assert out.shape == (batch, num_actions)
    assert jnp.allclose(out, ref, atol=1e-4, rtol=1e-4), (out, ref)

    # Larger batch exercising the bm=32 tile and a multi-step grid.
    xb = jax.random.uniform(xkey2, (64, *in_shape), jnp.float32)
    outb = qnetwork_forward(prep, xb, bm_max=32)
    jax.block_until_ready(outb)
    refb = reference_forward(params, xb)
    assert outb.shape == (64, num_actions)
    assert jnp.allclose(outb, refb, atol=1e-4, rtol=1e-4)

    print("KERNEL_OK")
</pallas_src>

<mosaic_0001>
module attributes {stable_mosaic.version = 11 : i64} {
  func.func @qnet_fused_kernel(%arg0: i32, %arg1: memref<2x1024xf32, #tpu.memory_space<vmem>>, %arg2: memref<108xf32, #tpu.memory_space<smem>>, %arg3: memref<3xf32, #tpu.memory_space<smem>>, %arg4: memref<81xf32, #tpu.memory_space<smem>>, %arg5: memref<3xf32, #tpu.memory_space<smem>>, %arg6: memref<768x32xf32, #tpu.memory_space<vmem>>, %arg7: memref<1x32xf32, #tpu.memory_space<vmem>>, %arg8: memref<32x4xf32, #tpu.memory_space<vmem>>, %arg9: memref<1x4xf32, #tpu.memory_space<vmem>>, %arg10: memref<2x4xf32, #tpu.memory_space<vmem>>) attributes {dimension_semantics = [#tpu.dimension_semantics<parallel>], iteration_bounds = array<i64: 1>, scalar_prefetch = 0 : i64, scratch_operands = 0 : i64, tpu.core_type = #tpu.core_type<tc>, window_params = [{transform_indices = @transform_0, window_bounds = array<i64: 2, 1024>}, {transform_indices = @transform_1, window_bounds = array<i64: 108>}, {transform_indices = @transform_2, window_bounds = array<i64: 3>}, {transform_indices = @transform_3, window_bounds = array<i64: 81>}, {transform_indices = @transform_4, window_bounds = array<i64: 3>}, {pipeline_mode = #tpu.pipeline_mode<synchronous>, transform_indices = @transform_5, window_bounds = array<i64: 768, 32>}, {pipeline_mode = #tpu.pipeline_mode<synchronous>, transform_indices = @transform_6, window_bounds = array<i64: 1, 32>}, {pipeline_mode = #tpu.pipeline_mode<synchronous>, transform_indices = @transform_7, window_bounds = array<i64: 32, 4>}, {pipeline_mode = #tpu.pipeline_mode<synchronous>, transform_indices = @transform_8, window_bounds = array<i64: 1, 4>}, {transform_indices = @transform_9, window_bounds = array<i64: 2, 4>}]} {
    %c0 = arith.constant 0 : index
    %c0_0 = arith.constant 0 : index
    %0 = vector.load %arg1[%c0, %c0_0] : memref<2x1024xf32, #tpu.memory_space<vmem>>, vector<2x256xf32>
    %c0_1 = arith.constant 0 : index
    %1 = memref.load %arg2[%c0_1] : memref<108xf32, #tpu.memory_space<smem>>
    %2 = vector.broadcast %1 : f32 to vector<2x256xf32>
    %3 = arith.mulf %0, %2 : vector<2x256xf32>
    %c36 = arith.constant 36 : index
    %4 = memref.load %arg2[%c36] : memref<108xf32, #tpu.memory_space<smem>>
    %5 = vector.broadcast %4 : f32 to vector<2x256xf32>
    %6 = arith.mulf %0, %5 : vector<2x256xf32>
    %c72 = arith.constant 72 : index
    %7 = memref.load %arg2[%c72] : memref<108xf32, #tpu.memory_space<smem>>
    %8 = vector.broadcast %7 : f32 to vector<2x256xf32>
    %9 = arith.mulf %0, %8 : vector<2x256xf32>
    %c255_i32 = arith.constant 255 : i32
    %10 = tpu.dynamic_rotate %0 by %c255_i32 dim 1 : vector<2x256xf32>, i32 -> vector<2x256xf32>
    %c1 = arith.constant 1 : index
    %11 = memref.load %arg2[%c1] : memref<108xf32, #tpu.memory_space<smem>>
    %12 = vector.broadcast %11 : f32 to vector<2x256xf32>
    %13 = arith.mulf %10, %12 : vector<2x256xf32>
    %14 = arith.addf %3, %13 : vector<2x256xf32>
    %c37 = arith.constant 37 : index
    %15 = memref.load %arg2[%c37] : memref<108xf32, #tpu.memory_space<smem>>
    %16 = vector.broadcast %15 : f32 to vector<2x256xf32>
    %17 = arith.mulf %10, %16 : vector<2x256xf32>
    %18 = arith.addf %6, %17 : vector<2x256xf32>
    %c73 = arith.constant 73 : index
    %19 = memref.load %arg2[%c73] : memref<108xf32, #tpu.memory_space<smem>>
    %20 = vector.broadcast %19 : f32 to vector<2x256xf32>
    %21 = arith.mulf %10, %20 : vector<2x256xf32>
    %22 = arith.addf %9, %21 : vector<2x256xf32>
    %c254_i32 = arith.constant 254 : i32
    %23 = tpu.dynamic_rotate %0 by %c254_i32 dim 1 : vector<2x256xf32>, i32 -> vector<2x256xf32>
    %c2 = arith.constant 2 : index
    %24 = memref.load %arg2[%c2] : memref<108xf32, #tpu.memory_space<smem>>
    %25 = vector.broadcast %24 : f32 to vector<2x256xf32>
    %26 = arith.mulf %23, %25 : vector<2x256xf32>
    %27 = arith.addf %14, %26 : vector<2x256xf32>
    %c38 = arith.constant 38 : index
    %28 = memref.load %arg2[%c38] : memref<108xf32, #tpu.memory_space<smem>>
    %29 = vector.broadcast %28 : f32 to vector<2x256xf32>
    %30 = arith.mulf %23, %29 : vector<2x256xf32>
    %31 = arith.addf %18, %30 : vector<2x256xf32>
    %c74 = arith.constant 74 : index
    %32 = memref.load %arg2[%c74] : memref<108xf32, #tpu.memory_space<smem>>
    %33 = vector.broadcast %32 : f32 to vector<2x256xf32>
    %34 = arith.mulf %23, %33 : vector<2x256xf32>
    %35 = arith.addf %22, %34 : vector<2x256xf32>
    %c240_i32 = arith.constant 240 : i32
    %36 = tpu.dynamic_rotate %0 by %c240_i32 dim 1 : vector<2x256xf32>, i32 -> vector<2x256xf32>
    %c3 = arith.constant 3 : index
    %37 = memref.load %arg2[%c3] : memref<108xf32, #tpu.memory_space<smem>>
    %38 = vector.broadcast %37 : f32 to vector<2x256xf32>
    %39 = arith.mulf %36, %38 : vector<2x256xf32>
    %40 = arith.addf %27, %39 : vector<2x256xf32>
    %c39 = arith.constant 39 : index
    %41 = memref.load %arg2[%c39] : memref<108xf32, #tpu.memory_space<smem>>
    %42 = vector.broadcast %41 : f32 to vector<2x256xf32>
    %43 = arith.mulf %36, %42 : vector<2x256xf32>
    %44 = arith.addf %31, %43 : vector<2x256xf32>
    %c75 = arith.constant 75 : index
    %45 = memref.load %arg2[%c75] : memref<108xf32, #tpu.memory_space<smem>>
    %46 = vector.broadcast %45 : f32 to vector<2x256xf32>
    %47 = arith.mulf %36, %46 : vector<2x256xf32>
    %48 = arith.addf %35, %47 : vector<2x256xf32>
    %c239_i32 = arith.constant 239 : i32
    %49 = tpu.dynamic_rotate %0 by %c239_i32 dim 1 : vector<2x256xf32>, i32 -> vector<2x256xf32>
    %c4 = arith.constant 4 : index
    %50 = memref.load %arg2[%c4] : memref<108xf32, #tpu.memory_space<smem>>
    %51 = vector.broadcast %50 : f32 to vector<2x256xf32>
    %52 = arith.mulf %49, %51 : vector<2x256xf32>
    %53 = arith.addf %40, %52 : vector<2x256xf32>
    %c40 = arith.constant 40 : index
    %54 = memref.load %arg2[%c40] : memref<108xf32, #tpu.memory_space<smem>>
    %55 = vector.broadcast %54 : f32 to vector<2x256xf32>
    %56 = arith.mulf %49, %55 : vector<2x256xf32>
    %57 = arith.addf %44, %56 : vector<2x256xf32>
    %c76 = arith.constant 76 : index
    %58 = memref.load %arg2[%c76] : memref<108xf32, #tpu.memory_space<smem>>
    %59 = vector.broadcast %58 : f32 to vector<2x256xf32>
    %60 = arith.mulf %49, %59 : vector<2x256xf32>
    %61 = arith.addf %48, %60 : vector<2x256xf32>
    %c238_i32 = arith.constant 238 : i32
    %62 = tpu.dynamic_rotate %0 by %c238_i32 dim 1 : vector<2x256xf32>, i32 -> vector<2x256xf32>
    %c5 = arith.constant 5 : index
    %63 = memref.load %arg2[%c5] : memref<108xf32, #tpu.memory_space<smem>>
    %64 = vector.broadcast %63 : f32 to vector<2x256xf32>
    %65 = arith.mulf %62, %64 : vector<2x256xf32>
    %66 = arith.addf %53, %65 : vector<2x256xf32>
    %c41 = arith.constant 41 : index
    %67 = memref.load %arg2[%c41] : memref<108xf32, #tpu.memory_space<smem>>
    %68 = vector.broadcast %67 : f32 to vector<2x256xf32>
    %69 = arith.mulf %62, %68 : vector<2x256xf32>
    %70 = arith.addf %57, %69 : vector<2x256xf32>
    %c77 = arith.constant 77 : index
    %71 = memref.load %arg2[%c77] : memref<108xf32, #tpu.memory_space<smem>>
    %72 = vector.broadcast %71 : f32 to vector<2x256xf32>
    %73 = arith.mulf %62, %72 : vector<2x256xf32>
    %74 = arith.addf %61, %73 : vector<2x256xf32>
    %c224_i32 = arith.constant 224 : i32
    %75 = tpu.dynamic_rotate %0 by %c224_i32 dim 1 : vector<2x256xf32>, i32 -> vector<2x256xf32>
    %c6 = arith.constant 6 : index
    %76 = memref.load %arg2[%c6] : memref<108xf32, #tpu.memory_space<smem>>
    %77 = vector.broadcast %76 : f32 to vector<2x256xf32>
    %78 = arith.mulf %75, %77 : vector<2x256xf32>
    %79 = arith.addf %66, %78 : vector<2x256xf32>
    %c42 = arith.constant 42 : index
    %80 = memref.load %arg2[%c42] : memref<108xf32, #tpu.memory_space<smem>>
    %81 = vector.broadcast %80 : f32 to vector<2x256xf32>
    %82 = arith.mulf %75, %81 : vector<2x256xf32>
    %83 = arith.addf %70, %82 : vector<2x256xf32>
    %c78 = arith.constant 78 : index
    %84 = memref.load %arg2[%c78] : memref<108xf32, #tpu.memory_space<smem>>
    %85 = vector.broadcast %84 : f32 to vector<2x256xf32>
    %86 = arith.mulf %75, %85 : vector<2x256xf32>
    %87 = arith.addf %74, %86 : vector<2x256xf32>
    %c223_i32 = arith.constant 223 : i32
    %88 = tpu.dynamic_rotate %0 by %c223_i32 dim 1 : vector<2x256xf32>, i32 -> vector<2x256xf32>
    %c7 = arith.constant 7 : index
    %89 = memref.load %arg2[%c7] : memref<108xf32, #tpu.memory_space<smem>>
    %90 = vector.broadcast %89 : f32 to vector<2x256xf32>
    %91 = arith.mulf %88, %90 : vector<2x256xf32>
    %92 = arith.addf %79, %91 : vector<2x256xf32>
    %c43 = arith.constant 43 : index
    %93 = memref.load %arg2[%c43] : memref<108xf32, #tpu.memory_space<smem>>
    %94 = vector.broadcast %93 : f32 to vector<2x256xf32>
    %95 = arith.mulf %88, %94 : vector<2x256xf32>
    %96 = arith.addf %83, %95 : vector<2x256xf32>
    %c79 = arith.constant 79 : index
    %97 = memref.load %arg2[%c79] : memref<108xf32, #tpu.memory_space<smem>>
    %98 = vector.broadcast %97 : f32 to vector<2x256xf32>
    %99 = arith.mulf %88, %98 : vector<2x256xf32>
    %100 = arith.addf %87, %99 : vector<2x256xf32>
    %c222_i32 = arith.constant 222 : i32
    %101 = tpu.dynamic_rotate %0 by %c222_i32 dim 1 : vector<2x256xf32>, i32 -> vector<2x256xf32>
    %c8 = arith.constant 8 : index
    %102 = memref.load %arg2[%c8] : memref<108xf32, #tpu.memory_space<smem>>
    %103 = vector.broadcast %102 : f32 to vector<2x256xf32>
    %104 = arith.mulf %101, %103 : vector<2x256xf32>
    %105 = arith.addf %92, %104 : vector<2x256xf32>
    %c44 = arith.constant 44 : index
    %106 = memref.load %arg2[%c44] : memref<108xf32, #tpu.memory_space<smem>>
    %107 = vector.broadcast %106 : f32 to vector<2x256xf32>
    %108 = arith.mulf %101, %107 : vector<2x256xf32>
    %109 = arith.addf %96, %108 : vector<2x256xf32>
    %c80 = arith.constant 80 : index
    %110 = memref.load %arg2[%c80] : memref<108xf32, #tpu.memory_space<smem>>
    %111 = vector.broadcast %110 : f32 to vector<2x256xf32>
    %112 = arith.mulf %101, %111 : vector<2x256xf32>
    %113 = arith.addf %100, %112 : vector<2x256xf32>
    %c0_2 = arith.constant 0 : index
    %c256 = arith.constant 256 : index
    %114 = vector.load %arg1[%c0_2, %c256] : memref<2x1024xf32, #tpu.memory_space<vmem>>, vector<2x256xf32>
    %c9 = arith.constant 9 : index
    %115 = memref.load %arg2[%c9] : memref<108xf32, #tpu.memory_space<smem>>
    %116 = vector.broadcast %115 : f32 to vector<2x256xf32>
    %117 = arith.mulf %114, %116 : vector<2x256xf32>
    %118 = arith.addf %105, %117 : vector<2x256xf32>
    %c45 = arith.constant 45 : index
    %119 = memref.load %arg2[%c45] : memref<108xf32, #tpu.memory_space<smem>>
    %120 = vector.broadcast %119 : f32 to vector<2x256xf32>
    %121 = arith.mulf %114, %120 : vector<2x256xf32>
    %122 = arith.addf %109, %121 : vector<2x256xf32>
    %c81 = arith.constant 81 : index
    %123 = memref.load %arg2[%c81] : memref<108xf32, #tpu.memory_space<smem>>
    %124 = vector.broadcast %123 : f32 to vector<2x256xf32>
    %125 = arith.mulf %114, %124 : vector<2x256xf32>
    %126 = arith.addf %113, %125 : vector<2x256xf32>
    %c255_i32_3 = arith.constant 255 : i32
    %127 = tpu.dynamic_rotate %114 by %c255_i32_3 dim 1 : vector<2x256xf32>, i32 -> vector<2x256xf32>
    %c10 = arith.constant 10 : index
    %128 = memref.load %arg2[%c10] : memref<108xf32, #tpu.memory_space<smem>>
    %129 = vector.broadcast %128 : f32 to vector<2x256xf32>
    %130 = arith.mulf %127, %129 : vector<2x256xf32>
    %131 = arith.addf %118, %130 : vector<2x256xf32>
    %c46 = arith.constant 46 : index
    %132 = memref.load %arg2[%c46] : memref<108xf32, #tpu.memory_space<smem>>
    %133 = vector.broadcast %132 : f32 to vector<2x256xf32>
    %134 = arith.mulf %127, %133 : vector<2x256xf32>
    %135 = arith.addf %122, %134 : vector<2x256xf32>
    %c82 = arith.constant 82 : index
    %136 = memref.load %arg2[%c82] : memref<108xf32, #tpu.memory_space<smem>>
    %137 = vector.broadcast %136 : f32 to vector<2x256xf32>
    %138 = arith.mulf %127, %137 : vector<2x256xf32>
    %139 = arith.addf %126, %138 : vector<2x256xf32>
    %c254_i32_4 = arith.constant 254 : i32
    %140 = tpu.dynamic_rotate %114 by %c254_i32_4 dim 1 : vector<2x256xf32>, i32 -> vector<2x256xf32>
    %c11 = arith.constant 11 : index
    %141 = memref.load %arg2[%c11] : memref<108xf32, #tpu.memory_space<smem>>
    %142 = vector.broadcast %141 : f32 to vector<2x256xf32>
    %143 = arith.mulf %140, %142 : vector<2x256xf32>
    %144 = arith.addf %131, %143 : vector<2x256xf32>
    %c47 = arith.constant 47 : index
    %145 = memref.load %arg2[%c47] : memref<108xf32, #tpu.memory_space<smem>>
    %146 = vector.broadcast %145 : f32 to vector<2x256xf32>
    %147 = arith.mulf %140, %146 : vector<2x256xf32>
    %148 = arith.addf %135, %147 : vector<2x256xf32>
    %c83 = arith.constant 83 : index
    %149 = memref.load %arg2[%c83] : memref<108xf32, #tpu.memory_space<smem>>
    %150 = vector.broadcast %149 : f32 to vector<2x256xf32>
    %151 = arith.mulf %140, %150 : vector<2x256xf32>
    %152 = arith.addf %139, %151 : vector<2x256xf32>
    %c240_i32_5 = arith.constant 240 : i32
    %153 = tpu.dynamic_rotate %114 by %c240_i32_5 dim 1 : vector<2x256xf32>, i32 -> vector<2x256xf32>
    %c12 = arith.constant 12 : index
    %154 = memref.load %arg2[%c12] : memref<108xf32, #tpu.memory_space<smem>>
    %155 = vector.broadcast %154 : f32 to vector<2x256xf32>
    %156 = arith.mulf %153, %155 : vector<2x256xf32>
    %157 = arith.addf %144, %156 : vector<2x256xf32>
    %c48 = arith.constant 48 : index
    %158 = memref.load %arg2[%c48] : memref<108xf32, #tpu.memory_space<smem>>
    %159 = vector.broadcast %158 : f32 to vector<2x256xf32>
    %160 = arith.mulf %153, %159 : vector<2x256xf32>
    %161 = arith.addf %148, %160 : vector<2x256xf32>
    %c84 = arith.constant 84 : index
    %162 = memref.load %arg2[%c84] : memref<108xf32, #tpu.memory_space<smem>>
    %163 = vector.broadcast %162 : f32 to vector<2x256xf32>
    %164 = arith.mulf %153, %163 : vector<2x256xf32>
    %165 = arith.addf %152, %164 : vector<2x256xf32>
    %c239_i32_6 = arith.constant 239 : i32
    %166 = tpu.dynamic_rotate %114 by %c239_i32_6 dim 1 : vector<2x256xf32>, i32 -> vector<2x256xf32>
    %c13 = arith.constant 13 : index
    %167 = memref.load %arg2[%c13] : memref<108xf32, #tpu.memory_space<smem>>
    %168 = vector.broadcast %167 : f32 to vector<2x256xf32>
    %169 = arith.mulf %166, %168 : vector<2x256xf32>
    %170 = arith.addf %157, %169 : vector<2x256xf32>
    %c49 = arith.constant 49 : index
    %171 = memref.load %arg2[%c49] : memref<108xf32, #tpu.memory_space<smem>>
    %172 = vector.broadcast %171 : f32 to vector<2x256xf32>
    %173 = arith.mulf %166, %172 : vector<2x256xf32>
    %174 = arith.addf %161, %173 : vector<2x256xf32>
    %c85 = arith.constant 85 : index
    %175 = memref.load %arg2[%c85] : memref<108xf32, #tpu.memory_space<smem>>
    %176 = vector.broadcast %175 : f32 to vector<2x256xf32>
    %177 = arith.mulf %166, %176 : vector<2x256xf32>
    %178 = arith.addf %165, %177 : vector<2x256xf32>
    %c238_i32_7 = arith.constant 238 : i32
    %179 = tpu.dynamic_rotate %114 by %c238_i32_7 dim 1 : vector<2x256xf32>, i32 -> vector<2x256xf32>
    %c14 = arith.constant 14 : index
    %180 = memref.load %arg2[%c14] : memref<108xf32, #tpu.memory_space<smem>>
    %181 = vector.broadcast %180 : f32 to vector<2x256xf32>
    %182 = arith.mulf %179, %181 : vector<2x256xf32>
    %183 = arith.addf %170, %182 : vector<2x256xf32>
    %c50 = arith.constant 50 : index
    %184 = memref.load %arg2[%c50] : memref<108xf32, #tpu.memory_space<smem>>
    %185 = vector.broadcast %184 : f32 to vector<2x256xf32>
    %186 = arith.mulf %179, %185 : vector<2x256xf32>
    %187 = arith.addf %174, %186 : vector<2x256xf32>
    %c86 = arith.constant 86 : index
    %188 = memref.load %arg2[%c86] : memref<108xf32, #tpu.memory_space<smem>>
    %189 = vector.broadcast %188 : f32 to vector<2x256xf32>
    %190 = arith.mulf %179, %189 : vector<2x256xf32>
    %191 = arith.addf %178, %190 : vector<2x256xf32>
    %c224_i32_8 = arith.constant 224 : i32
    %192 = tpu.dynamic_rotate %114 by %c224_i32_8 dim 1 : vector<2x256xf32>, i32 -> vector<2x256xf32>
    %c15 = arith.constant 15 : index
    %193 = memref.load %arg2[%c15] : memref<108xf32, #tpu.memory_space<smem>>
    %194 = vector.broadcast %193 : f32 to vector<2x256xf32>
    %195 = arith.mulf %192, %194 : vector<2x256xf32>
    %196 = arith.addf %183, %195 : vector<2x256xf32>
    %c51 = arith.constant 51 : index
    %197 = memref.load %arg2[%c51] : memref<108xf32, #tpu.memory_space<smem>>
    %198 = vector.broadcast %197 : f32 to vector<2x256xf32>
    %199 = arith.mulf %192, %198 : vector<2x256xf32>
    %200 = arith.addf %187, %199 : vector<2x256xf32>
    %c87 = arith.constant 87 : index
    %201 = memref.load %arg2[%c87] : memref<108xf32, #tpu.memory_space<smem>>
    %202 = vector.broadcast %201 : f32 to vector<2x256xf32>
    %203 = arith.mulf %192, %202 : vector<2x256xf32>
    %204 = arith.addf %191, %203 : vector<2x256xf32>
    %c223_i32_9 = arith.constant 223 : i32
    %205 = tpu.dynamic_rotate %114 by %c223_i32_9 dim 1 : vector<2x256xf32>, i32 -> vector<2x256xf32>
    %c16 = arith.constant 16 : index
    %206 = memref.load %arg2[%c16] : memref<108xf32, #tpu.memory_space<smem>>
    %207 = vector.broadcast %206 : f32 to vector<2x256xf32>
    %208 = arith.mulf %205, %207 : vector<2x256xf32>
    %209 = arith.addf %196, %208 : vector<2x256xf32>
    %c52 = arith.constant 52 : index
    %210 = memref.load %arg2[%c52] : memref<108xf32, #tpu.memory_space<smem>>
    %211 = vector.broadcast %210 : f32 to vector<2x256xf32>
    %212 = arith.mulf %205, %211 : vector<2x256xf32>
    %213 = arith.addf %200, %212 : vector<2x256xf32>
    %c88 = arith.constant 88 : index
    %214 = memref.load %arg2[%c88] : memref<108xf32, #tpu.memory_space<smem>>
    %215 = vector.broadcast %214 : f32 to vector<2x256xf32>
    %216 = arith.mulf %205, %215 : vector<2x256xf32>
    %217 = arith.addf %204, %216 : vector<2x256xf32>
    %c222_i32_10 = arith.constant 222 : i32
    %218 = tpu.dynamic_rotate %114 by %c222_i32_10 dim 1 : vector<2x256xf32>, i32 -> vector<2x256xf32>
    %c17 = arith.constant 17 : index
    %219 = memref.load %arg2[%c17] : memref<108xf32, #tpu.memory_space<smem>>
    %220 = vector.broadcast %219 : f32 to vector<2x256xf32>
    %221 = arith.mulf %218, %220 : vector<2x256xf32>
    %222 = arith.addf %209, %221 : vector<2x256xf32>
    %c53 = arith.constant 53 : index
    %223 = memref.load %arg2[%c53] : memref<108xf32, #tpu.memory_space<smem>>
    %224 = vector.broadcast %223 : f32 to vector<2x256xf32>
    %225 = arith.mulf %218, %224 : vector<2x256xf32>
    %226 = arith.addf %213, %225 : vector<2x256xf32>
    %c89 = arith.constant 89 : index
    %227 = memref.load %arg2[%c89] : memref<108xf32, #tpu.memory_space<smem>>
    %228 = vector.broadcast %227 : f32 to vector<2x256xf32>
    %229 = arith.mulf %218, %228 : vector<2x256xf32>
    %230 = arith.addf %217, %229 : vector<2x256xf32>
    %c0_11 = arith.constant 0 : index
    %c512 = arith.constant 512 : index
    %231 = vector.load %arg1[%c0_11, %c512] : memref<2x1024xf32, #tpu.memory_space<vmem>>, vector<2x256xf32>
    %c18 = arith.constant 18 : index
    %232 = memref.load %arg2[%c18] : memref<108xf32, #tpu.memory_space<smem>>
    %233 = vector.broadcast %232 : f32 to vector<2x256xf32>
    %234 = arith.mulf %231, %233 : vector<2x256xf32>
    %235 = arith.addf %222, %234 : vector<2x256xf32>
    %c54 = arith.constant 54 : index
    %236 = memref.load %arg2[%c54] : memref<108xf32, #tpu.memory_space<smem>>
    %237 = vector.broadcast %236 : f32 to vector<2x256xf32>
    %238 = arith.mulf %231, %237 : vector<2x256xf32>
    %239 = arith.addf %226, %238 : vector<2x256xf32>
    %c90 = arith.constant 90 : index
    %240 = memref.load %arg2[%c90] : memref<108xf32, #tpu.memory_space<smem>>
    %241 = vector.broadcast %240 : f32 to vector<2x256xf32>
    %242 = arith.mulf %231, %241 : vector<2x256xf32>
    %243 = arith.addf %230, %242 : vector<2x256xf32>
    %c255_i32_12 = arith.constant 255 : i32
    %244 = tpu.dynamic_rotate %231 by %c255_i32_12 dim 1 : vector<2x256xf32>, i32 -> vector<2x256xf32>
    %c19 = arith.constant 19 : index
    %245 = memref.load %arg2[%c19] : memref<108xf32, #tpu.memory_space<smem>>
    %246 = vector.broadcast %245 : f32 to vector<2x256xf32>
    %247 = arith.mulf %244, %246 : vector<2x256xf32>
    %248 = arith.addf %235, %247 : vector<2x256xf32>
    %c55 = arith.constant 55 : index
    %249 = memref.load %arg2[%c55] : memref<108xf32, #tpu.memory_space<smem>>
    %250 = vector.broadcast %249 : f32 to vector<2x256xf32>
    %251 = arith.mulf %244, %250 : vector<2x256xf32>
    %252 = arith.addf %239, %251 : vector<2x256xf32>
    %c91 = arith.constant 91 : index
    %253 = memref.load %arg2[%c91] : memref<108xf32, #tpu.memory_space<smem>>
    %254 = vector.broadcast %253 : f32 to vector<2x256xf32>
    %255 = arith.mulf %244, %254 : vector<2x256xf32>
    %256 = arith.addf %243, %255 : vector<2x256xf32>
    %c254_i32_13 = arith.constant 254 : i32
    %257 = tpu.dynamic_rotate %231 by %c254_i32_13 dim 1 : vector<2x256xf32>, i32 -> vector<2x256xf32>
    %c20 = arith.constant 20 : index
    %258 = memref.load %arg2[%c20] : memref<108xf32, #tpu.memory_space<smem>>
    %259 = vector.broadcast %258 : f32 to vector<2x256xf32>
    %260 = arith.mulf %257, %259 : vector<2x256xf32>
    %261 = arith.addf %248, %260 : vector<2x256xf32>
    %c56 = arith.constant 56 : index
    %262 = memref.load %arg2[%c56] : memref<108xf32, #tpu.memory_space<smem>>
    %263 = vector.broadcast %262 : f32 to vector<2x256xf32>
    %264 = arith.mulf %257, %263 : vector<2x256xf32>
    %265 = arith.addf %252, %264 : vector<2x256xf32>
    %c92 = arith.constant 92 : index
    %266 = memref.load %arg2[%c92] : memref<108xf32, #tpu.memory_space<smem>>
    %267 = vector.broadcast %266 : f32 to vector<2x256xf32>
    %268 = arith.mulf %257, %267 : vector<2x256xf32>
    %269 = arith.addf %256, %268 : vector<2x256xf32>
    %c240_i32_14 = arith.constant 240 : i32
    %270 = tpu.dynamic_rotate %231 by %c240_i32_14 dim 1 : vector<2x256xf32>, i32 -> vector<2x256xf32>
    %c21 = arith.constant 21 : index
    %271 = memref.load %arg2[%c21] : memref<108xf32, #tpu.memory_space<smem>>
    %272 = vector.broadcast %271 : f32 to vector<2x256xf32>
    %273 = arith.mulf %270, %272 : vector<2x256xf32>
    %274 = arith.addf %261, %273 : vector<2x256xf32>
    %c57 = arith.constant 57 : index
    %275 = memref.load %arg2[%c57] : memref<108xf32, #tpu.memory_space<smem>>
    %276 = vector.broadcast %275 : f32 to vector<2x256xf32>
    %277 = arith.mulf %270, %276 : vector<2x256xf32>
    %278 = arith.addf %265, %277 : vector<2x256xf32>
    %c93 = arith.constant 93 : index
    %279 = memref.load %arg2[%c93] : memref<108xf32, #tpu.memory_space<smem>>
    %280 = vector.broadcast %279 : f32 to vector<2x256xf32>
    %281 = arith.mulf %270, %280 : vector<2x256xf32>
    %282 = arith.addf %269, %281 : vector<2x256xf32>
    %c239_i32_15 = arith.constant 239 : i32
    %283 = tpu.dynamic_rotate %231 by %c239_i32_15 dim 1 : vector<2x256xf32>, i32 -> vector<2x256xf32>
    %c22 = arith.constant 22 : index
    %284 = memref.load %arg2[%c22] : memref<108xf32, #tpu.memory_space<smem>>
    %285 = vector.broadcast %284 : f32 to vector<2x256xf32>
    %286 = arith.mulf %283, %285 : vector<2x256xf32>
    %287 = arith.addf %274, %286 : vector<2x256xf32>
    %c58 = arith.constant 58 : index
    %288 = memref.load %arg2[%c58] : memref<108xf32, #tpu.memory_space<smem>>
    %289 = vector.broadcast %288 : f32 to vector<2x256xf32>
    %290 = arith.mulf %283, %289 : vector<2x256xf32>
    %291 = arith.addf %278, %290 : vector<2x256xf32>
    %c94 = arith.constant 94 : index
    %292 = memref.load %arg2[%c94] : memref<108xf32, #tpu.memory_space<smem>>
    %293 = vector.broadcast %292 : f32 to vector<2x256xf32>
    %294 = arith.mulf %283, %293 : vector<2x256xf32>
    %295 = arith.addf %282, %294 : vector<2x256xf32>
    %c238_i32_16 = arith.constant 238 : i32
    %296 = tpu.dynamic_rotate %231 by %c238_i32_16 dim 1 : vector<2x256xf32>, i32 -> vector<2x256xf32>
    %c23 = arith.constant 23 : index
    %297 = memref.load %arg2[%c23] : memref<108xf32, #tpu.memory_space<smem>>
    %298 = vector.broadcast %297 : f32 to vector<2x256xf32>
    %299 = arith.mulf %296, %298 : vector<2x256xf32>
    %300 = arith.addf %287, %299 : vector<2x256xf32>
    %c59 = arith.constant 59 : index
    %301 = memref.load %arg2[%c59] : memref<108xf32, #tpu.memory_space<smem>>
    %302 = vector.broadcast %301 : f32 to vector<2x256xf32>
    %303 = arith.mulf %296, %302 : vector<2x256xf32>
    %304 = arith.addf %291, %303 : vector<2x256xf32>
    %c95 = arith.constant 95 : index
    %305 = memref.load %arg2[%c95] : memref<108xf32, #tpu.memory_space<smem>>
    %306 = vector.broadcast %305 : f32 to vector<2x256xf32>
    %307 = arith.mulf %296, %306 : vector<2x256xf32>
    %308 = arith.addf %295, %307 : vector<2x256xf32>
    %c224_i32_17 = arith.constant 224 : i32
    %309 = tpu.dynamic_rotate %231 by %c224_i32_17 dim 1 : vector<2x256xf32>, i32 -> vector<2x256xf32>
    %c24 = arith.constant 24 : index
    %310 = memref.load %arg2[%c24] : memref<108xf32, #tpu.memory_space<smem>>
    %311 = vector.broadcast %310 : f32 to vector<2x256xf32>
    %312 = arith.mulf %309, %311 : vector<2x256xf32>
    %313 = arith.addf %300, %312 : vector<2x256xf32>
    %c60 = arith.constant 60 : index
    %314 = memref.load %arg2[%c60] : memref<108xf32, #tpu.memory_space<smem>>
    %315 = vector.broadcast %314 : f32 to vector<2x256xf32>
    %316 = arith.mulf %309, %315 : vector<2x256xf32>
    %317 = arith.addf %304, %316 : vector<2x256xf32>
    %c96 = arith.constant 96 : index
    %318 = memref.load %arg2[%c96] : memref<108xf32, #tpu.memory_space<smem>>
    %319 = vector.broadcast %318 : f32 to vector<2x256xf32>
    %320 = arith.mulf %309, %319 : vector<2x256xf32>
    %321 = arith.addf %308, %320 : vector<2x256xf32>
    %c223_i32_18 = arith.constant 223 : i32
    %322 = tpu.dynamic_rotate %231 by %c223_i32_18 dim 1 : vector<2x256xf32>, i32 -> vector<2x256xf32>
    %c25 = arith.constant 25 : index
    %323 = memref.load %arg2[%c25] : memref<108xf32, #tpu.memory_space<smem>>
    %324 = vector.broadcast %323 : f32 to vector<2x256xf32>
    %325 = arith.mulf %322, %324 : vector<2x256xf32>
    %326 = arith.addf %313, %325 : vector<2x256xf32>
    %c61 = arith.constant 61 : index
    %327 = memref.load %arg2[%c61] : memref<108xf32, #tpu.memory_space<smem>>
    %328 = vector.broadcast %327 : f32 to vector<2x256xf32>
    %329 = arith.mulf %322, %328 : vector<2x256xf32>
    %330 = arith.addf %317, %329 : vector<2x256xf32>
    %c97 = arith.constant 97 : index
    %331 = memref.load %arg2[%c97] : memref<108xf32, #tpu.memory_space<smem>>
    %332 = vector.broadcast %331 : f32 to vector<2x256xf32>
    %333 = arith.mulf %322, %332 : vector<2x256xf32>
    %334 = arith.addf %321, %333 : vector<2x256xf32>
    %c222_i32_19 = arith.constant 222 : i32
    %335 = tpu.dynamic_rotate %231 by %c222_i32_19 dim 1 : vector<2x256xf32>, i32 -> vector<2x256xf32>
    %c26 = arith.constant 26 : index
    %336 = memref.load %arg2[%c26] : memref<108xf32, #tpu.memory_space<smem>>
    %337 = vector.broadcast %336 : f32 to vector<2x256xf32>
    %338 = arith.mulf %335, %337 : vector<2x256xf32>
    %339 = arith.addf %326, %338 : vector<2x256xf32>
    %c62 = arith.constant 62 : index
    %340 = memref.load %arg2[%c62] : memref<108xf32, #tpu.memory_space<smem>>
    %341 = vector.broadcast %340 : f32 to vector<2x256xf32>
    %342 = arith.mulf %335, %341 : vector<2x256xf32>
    %343 = arith.addf %330, %342 : vector<2x256xf32>
    %c98 = arith.constant 98 : index
    %344 = memref.load %arg2[%c98] : memref<108xf32, #tpu.memory_space<smem>>
    %345 = vector.broadcast %344 : f32 to vector<2x256xf32>
    %346 = arith.mulf %335, %345 : vector<2x256xf32>
    %347 = arith.addf %334, %346 : vector<2x256xf32>
    %c0_20 = arith.constant 0 : index
    %c768 = arith.constant 768 : index
    %348 = vector.load %arg1[%c0_20, %c768] : memref<2x1024xf32, #tpu.memory_space<vmem>>, vector<2x256xf32>
    %c27 = arith.constant 27 : index
    %349 = memref.load %arg2[%c27] : memref<108xf32, #tpu.memory_space<smem>>
    %350 = vector.broadcast %349 : f32 to vector<2x256xf32>
    %351 = arith.mulf %348, %350 : vector<2x256xf32>
    %352 = arith.addf %339, %351 : vector<2x256xf32>
    %c63 = arith.constant 63 : index
    %353 = memref.load %arg2[%c63] : memref<108xf32, #tpu.memory_space<smem>>
    %354 = vector.broadcast %353 : f32 to vector<2x256xf32>
    %355 = arith.mulf %348, %354 : vector<2x256xf32>
    %356 = arith.addf %343, %355 : vector<2x256xf32>
    %c99 = arith.constant 99 : index
    %357 = memref.load %arg2[%c99] : memref<108xf32, #tpu.memory_space<smem>>
    %358 = vector.broadcast %357 : f32 to vector<2x256xf32>
    %359 = arith.mulf %348, %358 : vector<2x256xf32>
    %360 = arith.addf %347, %359 : vector<2x256xf32>
    %c255_i32_21 = arith.constant 255 : i32
    %361 = tpu.dynamic_rotate %348 by %c255_i32_21 dim 1 : vector<2x256xf32>, i32 -> vector<2x256xf32>
    %c28 = arith.constant 28 : index
    %362 = memref.load %arg2[%c28] : memref<108xf32, #tpu.memory_space<smem>>
    %363 = vector.broadcast %362 : f32 to vector<2x256xf32>
    %364 = arith.mulf %361, %363 : vector<2x256xf32>
    %365 = arith.addf %352, %364 : vector<2x256xf32>
    %c64 = arith.constant 64 : index
    %366 = memref.load %arg2[%c64] : memref<108xf32, #tpu.memory_space<smem>>
    %367 = vector.broadcast %366 : f32 to vector<2x256xf32>
    %368 = arith.mulf %361, %367 : vector<2x256xf32>
    %369 = arith.addf %356, %368 : vector<2x256xf32>
    %c100 = arith.constant 100 : index
    %370 = memref.load %arg2[%c100] : memref<108xf32, #tpu.memory_space<smem>>
    %371 = vector.broadcast %370 : f32 to vector<2x256xf32>
    %372 = arith.mulf %361, %371 : vector<2x256xf32>
    %373 = arith.addf %360, %372 : vector<2x256xf32>
    %c254_i32_22 = arith.constant 254 : i32
    %374 = tpu.dynamic_rotate %348 by %c254_i32_22 dim 1 : vector<2x256xf32>, i32 -> vector<2x256xf32>
    %c29 = arith.constant 29 : index
    %375 = memref.load %arg2[%c29] : memref<108xf32, #tpu.memory_space<smem>>
    %376 = vector.broadcast %375 : f32 to vector<2x256xf32>
    %377 = arith.mulf %374, %376 : vector<2x256xf32>
    %378 = arith.addf %365, %377 : vector<2x256xf32>
    %c65 = arith.constant 65 : index
    %379 = memref.load %arg2[%c65] : memref<108xf32, #tpu.memory_space<smem>>
    %380 = vector.broadcast %379 : f32 to vector<2x256xf32>
    %381 = arith.mulf %374, %380 : vector<2x256xf32>
    %382 = arith.addf %369, %381 : vector<2x256xf32>
    %c101 = arith.constant 101 : index
    %383 = memref.load %arg2[%c101] : memref<108xf32, #tpu.memory_space<smem>>
    %384 = vector.broadcast %383 : f32 to vector<2x256xf32>
    %385 = arith.mulf %374, %384 : vector<2x256xf32>
    %386 = arith.addf %373, %385 : vector<2x256xf32>
    %c240_i32_23 = arith.constant 240 : i32
    %387 = tpu.dynamic_rotate %348 by %c240_i32_23 dim 1 : vector<2x256xf32>, i32 -> vector<2x256xf32>
    %c30 = arith.constant 30 : index
    %388 = memref.load %arg2[%c30] : memref<108xf32, #tpu.memory_space<smem>>
    %389 = vector.broadcast %388 : f32 to vector<2x256xf32>
    %390 = arith.mulf %387, %389 : vector<2x256xf32>
    %391 = arith.addf %378, %390 : vector<2x256xf32>
    %c66 = arith.constant 66 : index
    %392 = memref.load %arg2[%c66] : memref<108xf32, #tpu.memory_space<smem>>
    %393 = vector.broadcast %392 : f32 to vector<2x256xf32>
    %394 = arith.mulf %387, %393 : vector<2x256xf32>
    %395 = arith.addf %382, %394 : vector<2x256xf32>
    %c102 = arith.constant 102 : index
    %396 = memref.load %arg2[%c102] : memref<108xf32, #tpu.memory_space<smem>>
    %397 = vector.broadcast %396 : f32 to vector<2x256xf32>
    %398 = arith.mulf %387, %397 : vector<2x256xf32>
    %399 = arith.addf %386, %398 : vector<2x256xf32>
    %c239_i32_24 = arith.constant 239 : i32
    %400 = tpu.dynamic_rotate %348 by %c239_i32_24 dim 1 : vector<2x256xf32>, i32 -> vector<2x256xf32>
    %c31 = arith.constant 31 : index
    %401 = memref.load %arg2[%c31] : memref<108xf32, #tpu.memory_space<smem>>
    %402 = vector.broadcast %401 : f32 to vector<2x256xf32>
    %403 = arith.mulf %400, %402 : vector<2x256xf32>
    %404 = arith.addf %391, %403 : vector<2x256xf32>
    %c67 = arith.constant 67 : index
    %405 = memref.load %arg2[%c67] : memref<108xf32, #tpu.memory_space<smem>>
    %406 = vector.broadcast %405 : f32 to vector<2x256xf32>
    %407 = arith.mulf %400, %406 : vector<2x256xf32>
    %408 = arith.addf %395, %407 : vector<2x256xf32>
    %c103 = arith.constant 103 : index
    %409 = memref.load %arg2[%c103] : memref<108xf32, #tpu.memory_space<smem>>
    %410 = vector.broadcast %409 : f32 to vector<2x256xf32>
    %411 = arith.mulf %400, %410 : vector<2x256xf32>
    %412 = arith.addf %399, %411 : vector<2x256xf32>
    %c238_i32_25 = arith.constant 238 : i32
    %413 = tpu.dynamic_rotate %348 by %c238_i32_25 dim 1 : vector<2x256xf32>, i32 -> vector<2x256xf32>
    %c32 = arith.constant 32 : index
    %414 = memref.load %arg2[%c32] : memref<108xf32, #tpu.memory_space<smem>>
    %415 = vector.broadcast %414 : f32 to vector<2x256xf32>
    %416 = arith.mulf %413, %415 : vector<2x256xf32>
    %417 = arith.addf %404, %416 : vector<2x256xf32>
    %c68 = arith.constant 68 : index
    %418 = memref.load %arg2[%c68] : memref<108xf32, #tpu.memory_space<smem>>
    %419 = vector.broadcast %418 : f32 to vector<2x256xf32>
    %420 = arith.mulf %413, %419 : vector<2x256xf32>
    %421 = arith.addf %408, %420 : vector<2x256xf32>
    %c104 = arith.constant 104 : index
    %422 = memref.load %arg2[%c104] : memref<108xf32, #tpu.memory_space<smem>>
    %423 = vector.broadcast %422 : f32 to vector<2x256xf32>
    %424 = arith.mulf %413, %423 : vector<2x256xf32>
    %425 = arith.addf %412, %424 : vector<2x256xf32>
    %c224_i32_26 = arith.constant 224 : i32
    %426 = tpu.dynamic_rotate %348 by %c224_i32_26 dim 1 : vector<2x256xf32>, i32 -> vector<2x256xf32>
    %c33 = arith.constant 33 : index
    %427 = memref.load %arg2[%c33] : memref<108xf32, #tpu.memory_space<smem>>
    %428 = vector.broadcast %427 : f32 to vector<2x256xf32>
    %429 = arith.mulf %426, %428 : vector<2x256xf32>
    %430 = arith.addf %417, %429 : vector<2x256xf32>
    %c69 = arith.constant 69 : index
    %431 = memref.load %arg2[%c69] : memref<108xf32, #tpu.memory_space<smem>>
    %432 = vector.broadcast %431 : f32 to vector<2x256xf32>
    %433 = arith.mulf %426, %432 : vector<2x256xf32>
    %434 = arith.addf %421, %433 : vector<2x256xf32>
    %c105 = arith.constant 105 : index
    %435 = memref.load %arg2[%c105] : memref<108xf32, #tpu.memory_space<smem>>
    %436 = vector.broadcast %435 : f32 to vector<2x256xf32>
    %437 = arith.mulf %426, %436 : vector<2x256xf32>
    %438 = arith.addf %425, %437 : vector<2x256xf32>
    %c223_i32_27 = arith.constant 223 : i32
    %439 = tpu.dynamic_rotate %348 by %c223_i32_27 dim 1 : vector<2x256xf32>, i32 -> vector<2x256xf32>
    %c34 = arith.constant 34 : index
    %440 = memref.load %arg2[%c34] : memref<108xf32, #tpu.memory_space<smem>>
    %441 = vector.broadcast %440 : f32 to vector<2x256xf32>
    %442 = arith.mulf %439, %441 : vector<2x256xf32>
    %443 = arith.addf %430, %442 : vector<2x256xf32>
    %c70 = arith.constant 70 : index
    %444 = memref.load %arg2[%c70] : memref<108xf32, #tpu.memory_space<smem>>
    %445 = vector.broadcast %444 : f32 to vector<2x256xf32>
    %446 = arith.mulf %439, %445 : vector<2x256xf32>
    %447 = arith.addf %434, %446 : vector<2x256xf32>
    %c106 = arith.constant 106 : index
    %448 = memref.load %arg2[%c106] : memref<108xf32, #tpu.memory_space<smem>>
    %449 = vector.broadcast %448 : f32 to vector<2x256xf32>
    %450 = arith.mulf %439, %449 : vector<2x256xf32>
    %451 = arith.addf %438, %450 : vector<2x256xf32>
    %c222_i32_28 = arith.constant 222 : i32
    %452 = tpu.dynamic_rotate %348 by %c222_i32_28 dim 1 : vector<2x256xf32>, i32 -> vector<2x256xf32>
    %c35 = arith.constant 35 : index
    %453 = memref.load %arg2[%c35] : memref<108xf32, #tpu.memory_space<smem>>
    %454 = vector.broadcast %453 : f32 to vector<2x256xf32>
    %455 = arith.mulf %452, %454 : vector<2x256xf32>
    %456 = arith.addf %443, %455 : vector<2x256xf32>
    %c71 = arith.constant 71 : index
    %457 = memref.load %arg2[%c71] : memref<108xf32, #tpu.memory_space<smem>>
    %458 = vector.broadcast %457 : f32 to vector<2x256xf32>
    %459 = arith.mulf %452, %458 : vector<2x256xf32>
    %460 = arith.addf %447, %459 : vector<2x256xf32>
    %c107 = arith.constant 107 : index
    %461 = memref.load %arg2[%c107] : memref<108xf32, #tpu.memory_space<smem>>
    %462 = vector.broadcast %461 : f32 to vector<2x256xf32>
    %463 = arith.mulf %452, %462 : vector<2x256xf32>
    %464 = arith.addf %451, %463 : vector<2x256xf32>
    %c0_29 = arith.constant 0 : index
    %465 = memref.load %arg3[%c0_29] : memref<3xf32, #tpu.memory_space<smem>>
    %466 = vector.broadcast %465 : f32 to vector<2x256xf32>
    %467 = arith.addf %456, %466 : vector<2x256xf32>
    %cst = arith.constant 0.00999999977 : f32
    %468 = vector.broadcast %cst : f32 to vector<2x256xf32>
    %469 = arith.mulf %468, %467 : vector<2x256xf32>
    %470 = arith.maximumf %467, %469 : vector<2x256xf32>
    %c1_30 = arith.constant 1 : index
    %471 = memref.load %arg3[%c1_30] : memref<3xf32, #tpu.memory_space<smem>>
    %472 = vector.broadcast %471 : f32 to vector<2x256xf32>
    %473 = arith.addf %460, %472 : vector<2x256xf32>
    %cst_31 = arith.constant 0.00999999977 : f32
    %474 = vector.broadcast %cst_31 : f32 to vector<2x256xf32>
    %475 = arith.mulf %474, %473 : vector<2x256xf32>
    %476 = arith.maximumf %473, %475 : vector<2x256xf32>
    %c2_32 = arith.constant 2 : index
    %477 = memref.load %arg3[%c2_32] : memref<3xf32, #tpu.memory_space<smem>>
    %478 = vector.broadcast %477 : f32 to vector<2x256xf32>
    %479 = arith.addf %464, %478 : vector<2x256xf32>
    %cst_33 = arith.constant 0.00999999977 : f32
    %480 = vector.broadcast %cst_33 : f32 to vector<2x256xf32>
    %481 = arith.mulf %480, %479 : vector<2x256xf32>
    %482 = arith.maximumf %479, %481 : vector<2x256xf32>
    %c0_34 = arith.constant 0 : index
    %483 = memref.load %arg4[%c0_34] : memref<81xf32, #tpu.memory_space<smem>>
    %484 = vector.broadcast %483 : f32 to vector<2x256xf32>
    %485 = arith.mulf %470, %484 : vector<2x256xf32>
    %c27_35 = arith.constant 27 : index
    %486 = memref.load %arg4[%c27_35] : memref<81xf32, #tpu.memory_space<smem>>
    %487 = vector.broadcast %486 : f32 to vector<2x256xf32>
    %488 = arith.mulf %470, %487 : vector<2x256xf32>
    %c54_36 = arith.constant 54 : index
    %489 = memref.load %arg4[%c54_36] : memref<81xf32, #tpu.memory_space<smem>>
    %490 = vector.broadcast %489 : f32 to vector<2x256xf32>
    %491 = arith.mulf %470, %490 : vector<2x256xf32>
    %c255_i32_37 = arith.constant 255 : i32
    %492 = tpu.dynamic_rotate %470 by %c255_i32_37 dim 1 : vector<2x256xf32>, i32 -> vector<2x256xf32>
    %c1_38 = arith.constant 1 : index
    %493 = memref.load %arg4[%c1_38] : memref<81xf32, #tpu.memory_space<smem>>
    %494 = vector.broadcast %493 : f32 to vector<2x256xf32>
    %495 = arith.mulf %492, %494 : vector<2x256xf32>
    %496 = arith.addf %485, %495 : vector<2x256xf32>
    %c28_39 = arith.constant 28 : index
    %497 = memref.load %arg4[%c28_39] : memref<81xf32, #tpu.memory_space<smem>>
    %498 = vector.broadcast %497 : f32 to vector<2x256xf32>
    %499 = arith.mulf %492, %498 : vector<2x256xf32>
    %500 = arith.addf %488, %499 : vector<2x256xf32>
    %c55_40 = arith.constant 55 : index
    %501 = memref.load %arg4[%c55_40] : memref<81xf32, #tpu.memory_space<smem>>
    %502 = vector.broadcast %501 : f32 to vector<2x256xf32>
    %503 = arith.mulf %492, %502 : vector<2x256xf32>
    %504 = arith.addf %491, %503 : vector<2x256xf32>
    %c254_i32_41 = arith.constant 254 : i32
    %505 = tpu.dynamic_rotate %470 by %c254_i32_41 dim 1 : vector<2x256xf32>, i32 -> vector<2x256xf32>
    %c2_42 = arith.constant 2 : index
    %506 = memref.load %arg4[%c2_42] : memref<81xf32, #tpu.memory_space<smem>>
    %507 = vector.broadcast %506 : f32 to vector<2x256xf32>
    %508 = arith.mulf %505, %507 : vector<2x256xf32>
    %509 = arith.addf %496, %508 : vector<2x256xf32>
    %c29_43 = arith.constant 29 : index
    %510 = memref.load %arg4[%c29_43] : memref<81xf32, #tpu.memory_space<smem>>
    %511 = vector.broadcast %510 : f32 to vector<2x256xf32>
    %512 = arith.mulf %505, %511 : vector<2x256xf32>
    %513 = arith.addf %500, %512 : vector<2x256xf32>
    %c56_44 = arith.constant 56 : index
    %514 = memref.load %arg4[%c56_44] : memref<81xf32, #tpu.memory_space<smem>>
    %515 = vector.broadcast %514 : f32 to vector<2x256xf32>
    %516 = arith.mulf %505, %515 : vector<2x256xf32>
    %517 = arith.addf %504, %516 : vector<2x256xf32>
    %c240_i32_45 = arith.constant 240 : i32
    %518 = tpu.dynamic_rotate %470 by %c240_i32_45 dim 1 : vector<2x256xf32>, i32 -> vector<2x256xf32>
    %c3_46 = arith.constant 3 : index
    %519 = memref.load %arg4[%c3_46] : memref<81xf32, #tpu.memory_space<smem>>
    %520 = vector.broadcast %519 : f32 to vector<2x256xf32>
    %521 = arith.mulf %518, %520 : vector<2x256xf32>
    %522 = arith.addf %509, %521 : vector<2x256xf32>
    %c30_47 = arith.constant 30 : index
    %523 = memref.load %arg4[%c30_47] : memref<81xf32, #tpu.memory_space<smem>>
    %524 = vector.broadcast %523 : f32 to vector<2x256xf32>
    %525 = arith.mulf %518, %524 : vector<2x256xf32>
    %526 = arith.addf %513, %525 : vector<2x256xf32>
    %c57_48 = arith.constant 57 : index
    %527 = memref.load %arg4[%c57_48] : memref<81xf32, #tpu.memory_space<smem>>
    %528 = vector.broadcast %527 : f32 to vector<2x256xf32>
    %529 = arith.mulf %518, %528 : vector<2x256xf32>
    %530 = arith.addf %517, %529 : vector<2x256xf32>
    %c239_i32_49 = arith.constant 239 : i32
    %531 = tpu.dynamic_rotate %470 by %c239_i32_49 dim 1 : vector<2x256xf32>, i32 -> vector<2x256xf32>
    %c4_50 = arith.constant 4 : index
    %532 = memref.load %arg4[%c4_50] : memref<81xf32, #tpu.memory_space<smem>>
    %533 = vector.broadcast %532 : f32 to vector<2x256xf32>
    %534 = arith.mulf %531, %533 : vector<2x256xf32>
    %535 = arith.addf %522, %534 : vector<2x256xf32>
    %c31_51 = arith.constant 31 : index
    %536 = memref.load %arg4[%c31_51] : memref<81xf32, #tpu.memory_space<smem>>
    %537 = vector.broadcast %536 : f32 to vector<2x256xf32>
    %538 = arith.mulf %531, %537 : vector<2x256xf32>
    %539 = arith.addf %526, %538 : vector<2x256xf32>
    %c58_52 = arith.constant 58 : index
    %540 = memref.load %arg4[%c58_52] : memref<81xf32, #tpu.memory_space<smem>>
    %541 = vector.broadcast %540 : f32 to vector<2x256xf32>
    %542 = arith.mulf %531, %541 : vector<2x256xf32>
    %543 = arith.addf %530, %542 : vector<2x256xf32>
    %c238_i32_53 = arith.constant 238 : i32
    %544 = tpu.dynamic_rotate %470 by %c238_i32_53 dim 1 : vector<2x256xf32>, i32 -> vector<2x256xf32>
    %c5_54 = arith.constant 5 : index
    %545 = memref.load %arg4[%c5_54] : memref<81xf32, #tpu.memory_space<smem>>
    %546 = vector.broadcast %545 : f32 to vector<2x256xf32>
    %547 = arith.mulf %544, %546 : vector<2x256xf32>
    %548 = arith.addf %535, %547 : vector<2x256xf32>
    %c32_55 = arith.constant 32 : index
    %549 = memref.load %arg4[%c32_55] : memref<81xf32, #tpu.memory_space<smem>>
    %550 = vector.broadcast %549 : f32 to vector<2x256xf32>
    %551 = arith.mulf %544, %550 : vector<2x256xf32>
    %552 = arith.addf %539, %551 : vector<2x256xf32>
    %c59_56 = arith.constant 59 : index
    %553 = memref.load %arg4[%c59_56] : memref<81xf32, #tpu.memory_space<smem>>
    %554 = vector.broadcast %553 : f32 to vector<2x256xf32>
    %555 = arith.mulf %544, %554 : vector<2x256xf32>
    %556 = arith.addf %543, %555 : vector<2x256xf32>
    %c224_i32_57 = arith.constant 224 : i32
    %557 = tpu.dynamic_rotate %470 by %c224_i32_57 dim 1 : vector<2x256xf32>, i32 -> vector<2x256xf32>
    %c6_58 = arith.constant 6 : index
    %558 = memref.load %arg4[%c6_58] : memref<81xf32, #tpu.memory_space<smem>>
    %559 = vector.broadcast %558 : f32 to vector<2x256xf32>
    %560 = arith.mulf %557, %559 : vector<2x256xf32>
    %561 = arith.addf %548, %560 : vector<2x256xf32>
    %c33_59 = arith.constant 33 : index
    %562 = memref.load %arg4[%c33_59] : memref<81xf32, #tpu.memory_space<smem>>
    %563 = vector.broadcast %562 : f32 to vector<2x256xf32>
    %564 = arith.mulf %557, %563 : vector<2x256xf32>
    %565 = arith.addf %552, %564 : vector<2x256xf32>
    %c60_60 = arith.constant 60 : index
    %566 = memref.load %arg4[%c60_60] : memref<81xf32, #tpu.memory_space<smem>>
    %567 = vector.broadcast %566 : f32 to vector<2x256xf32>
    %568 = arith.mulf %557, %567 : vector<2x256xf32>
    %569 = arith.addf %556, %568 : vector<2x256xf32>
    %c223_i32_61 = arith.constant 223 : i32
    %570 = tpu.dynamic_rotate %470 by %c223_i32_61 dim 1 : vector<2x256xf32>, i32 -> vector<2x256xf32>
    %c7_62 = arith.constant 7 : index
    %571 = memref.load %arg4[%c7_62] : memref<81xf32, #tpu.memory_space<smem>>
    %572 = vector.broadcast %571 : f32 to vector<2x256xf32>
    %573 = arith.mulf %570, %572 : vector<2x256xf32>
    %574 = arith.addf %561, %573 : vector<2x256xf32>
    %c34_63 = arith.constant 34 : index
    %575 = memref.load %arg4[%c34_63] : memref<81xf32, #tpu.memory_space<smem>>
    %576 = vector.broadcast %575 : f32 to vector<2x256xf32>
    %577 = arith.mulf %570, %576 : vector<2x256xf32>
    %578 = arith.addf %565, %577 : vector<2x256xf32>
    %c61_64 = arith.constant 61 : index
    %579 = memref.load %arg4[%c61_64] : memref<81xf32, #tpu.memory_space<smem>>
    %580 = vector.broadcast %579 : f32 to vector<2x256xf32>
    %581 = arith.mulf %570, %580 : vector<2x256xf32>
    %582 = arith.addf %569, %581 : vector<2x256xf32>
    %c222_i32_65 = arith.constant 222 : i32
    %583 = tpu.dynamic_rotate %470 by %c222_i32_65 dim 1 : vector<2x256xf32>, i32 -> vector<2x256xf32>
    %c8_66 = arith.constant 8 : index
    %584 = memref.load %arg4[%c8_66] : memref<81xf32, #tpu.memory_space<smem>>
    %585 = vector.broadcast %584 : f32 to vector<2x256xf32>
    %586 = arith.mulf %583, %585 : vector<2x256xf32>
    %587 = arith.addf %574, %586 : vector<2x256xf32>
    %c35_67 = arith.constant 35 : index
    %588 = memref.load %arg4[%c35_67] : memref<81xf32, #tpu.memory_space<smem>>
    %589 = vector.broadcast %588 : f32 to vector<2x256xf32>
    %590 = arith.mulf %583, %589 : vector<2x256xf32>
    %591 = arith.addf %578, %590 : vector<2x256xf32>
    %c62_68 = arith.constant 62 : index
    %592 = memref.load %arg4[%c62_68] : memref<81xf32, #tpu.memory_space<smem>>
    %593 = vector.broadcast %592 : f32 to vector<2x256xf32>
    %594 = arith.mulf %583, %593 : vector<2x256xf32>
    %595 = arith.addf %582, %594 : vector<2x256xf32>
    %c9_69 = arith.constant 9 : index
    %596 = memref.load %arg4[%c9_69] : memref<81xf32, #tpu.memory_space<smem>>
    %597 = vector.broadcast %596 : f32 to vector<2x256xf32>
    %598 = arith.mulf %476, %597 : vector<2x256xf32>
    %599 = arith.addf %587, %598 : vector<2x256xf32>
    %c36_70 = arith.constant 36 : index
    %600 = memref.load %arg4[%c36_70] : memref<81xf32, #tpu.memory_space<smem>>
    %601 = vector.broadcast %600 : f32 to vector<2x256xf32>
    %602 = arith.mulf %476, %601 : vector<2x256xf32>
    %603 = arith.addf %591, %602 : vector<2x256xf32>
    %c63_71 = arith.constant 63 : index
    %604 = memref.load %arg4[%c63_71] : memref<81xf32, #tpu.memory_space<smem>>
    %605 = vector.broadcast %604 : f32 to vector<2x256xf32>
    %606 = arith.mulf %476, %605 : vector<2x256xf32>
    %607 = arith.addf %595, %606 : vector<2x256xf32>
    %c255_i32_72 = arith.constant 255 : i32
    %608 = tpu.dynamic_rotate %476 by %c255_i32_72 dim 1 : vector<2x256xf32>, i32 -> vector<2x256xf32>
    %c10_73 = arith.constant 10 : index
    %609 = memref.load %arg4[%c10_73] : memref<81xf32, #tpu.memory_space<smem>>
    %610 = vector.broadcast %609 : f32 to vector<2x256xf32>
    %611 = arith.mulf %608, %610 : vector<2x256xf32>
    %612 = arith.addf %599, %611 : vector<2x256xf32>
    %c37_74 = arith.constant 37 : index
    %613 = memref.load %arg4[%c37_74] : memref<81xf32, #tpu.memory_space<smem>>
    %614 = vector.broadcast %613 : f32 to vector<2x256xf32>
    %615 = arith.mulf %608, %614 : vector<2x256xf32>
    %616 = arith.addf %603, %615 : vector<2x256xf32>
    %c64_75 = arith.constant 64 : index
    %617 = memref.load %arg4[%c64_75] : memref<81xf32, #tpu.memory_space<smem>>
    %618 = vector.broadcast %617 : f32 to vector<2x256xf32>
    %619 = arith.mulf %608, %618 : vector<2x256xf32>
    %620 = arith.addf %607, %619 : vector<2x256xf32>
    %c254_i32_76 = arith.constant 254 : i32
    %621 = tpu.dynamic_rotate %476 by %c254_i32_76 dim 1 : vector<2x256xf32>, i32 -> vector<2x256xf32>
    %c11_77 = arith.constant 11 : index
    %622 = memref.load %arg4[%c11_77] : memref<81xf32, #tpu.memory_space<smem>>
    %623 = vector.broadcast %622 : f32 to vector<2x256xf32>
    %624 = arith.mulf %621, %623 : vector<2x256xf32>
    %625 = arith.addf %612, %624 : vector<2x256xf32>
    %c38_78 = arith.constant 38 : index
    %626 = memref.load %arg4[%c38_78] : memref<81xf32, #tpu.memory_space<smem>>
    %627 = vector.broadcast %626 : f32 to vector<2x256xf32>
    %628 = arith.mulf %621, %627 : vector<2x256xf32>
    %629 = arith.addf %616, %628 : vector<2x256xf32>
    %c65_79 = arith.constant 65 : index
    %630 = memref.load %arg4[%c65_79] : memref<81xf32, #tpu.memory_space<smem>>
    %631 = vector.broadcast %630 : f32 to vector<2x256xf32>
    %632 = arith.mulf %621, %631 : vector<2x256xf32>
    %633 = arith.addf %620, %632 : vector<2x256xf32>
    %c240_i32_80 = arith.constant 240 : i32
    %634 = tpu.dynamic_rotate %476 by %c240_i32_80 dim 1 : vector<2x256xf32>, i32 -> vector<2x256xf32>
    %c12_81 = arith.constant 12 : index
    %635 = memref.load %arg4[%c12_81] : memref<81xf32, #tpu.memory_space<smem>>
    %636 = vector.broadcast %635 : f32 to vector<2x256xf32>
    %637 = arith.mulf %634, %636 : vector<2x256xf32>
    %638 = arith.addf %625, %637 : vector<2x256xf32>
    %c39_82 = arith.constant 39 : index
    %639 = memref.load %arg4[%c39_82] : memref<81xf32, #tpu.memory_space<smem>>
    %640 = vector.broadcast %639 : f32 to vector<2x256xf32>
    %641 = arith.mulf %634, %640 : vector<2x256xf32>
    %642 = arith.addf %629, %641 : vector<2x256xf32>
    %c66_83 = arith.constant 66 : index
    %643 = memref.load %arg4[%c66_83] : memref<81xf32, #tpu.memory_space<smem>>
    %644 = vector.broadcast %643 : f32 to vector<2x256xf32>
    %645 = arith.mulf %634, %644 : vector<2x256xf32>
    %646 = arith.addf %633, %645 : vector<2x256xf32>
    %c239_i32_84 = arith.constant 239 : i32
    %647 = tpu.dynamic_rotate %476 by %c239_i32_84 dim 1 : vector<2x256xf32>, i32 -> vector<2x256xf32>
    %c13_85 = arith.constant 13 : index
    %648 = memref.load %arg4[%c13_85] : memref<81xf32, #tpu.memory_space<smem>>
    %649 = vector.broadcast %648 : f32 to vector<2x256xf32>
    %650 = arith.mulf %647, %649 : vector<2x256xf32>
    %651 = arith.addf %638, %650 : vector<2x256xf32>
    %c40_86 = arith.constant 40 : index
    %652 = memref.load %arg4[%c40_86] : memref<81xf32, #tpu.memory_space<smem>>
    %653 = vector.broadcast %652 : f32 to vector<2x256xf32>
    %654 = arith.mulf %647, %653 : vector<2x256xf32>
    %655 = arith.addf %642, %654 : vector<2x256xf32>
    %c67_87 = arith.constant 67 : index
    %656 = memref.load %arg4[%c67_87] : memref<81xf32, #tpu.memory_space<smem>>
    %657 = vector.broadcast %656 : f32 to vector<2x256xf32>
    %658 = arith.mulf %647, %657 : vector<2x256xf32>
    %659 = arith.addf %646, %658 : vector<2x256xf32>
    %c238_i32_88 = arith.constant 238 : i32
    %660 = tpu.dynamic_rotate %476 by %c238_i32_88 dim 1 : vector<2x256xf32>, i32 -> vector<2x256xf32>
    %c14_89 = arith.constant 14 : index
    %661 = memref.load %arg4[%c14_89] : memref<81xf32, #tpu.memory_space<smem>>
    %662 = vector.broadcast %661 : f32 to vector<2x256xf32>
    %663 = arith.mulf %660, %662 : vector<2x256xf32>
    %664 = arith.addf %651, %663 : vector<2x256xf32>
    %c41_90 = arith.constant 41 : index
    %665 = memref.load %arg4[%c41_90] : memref<81xf32, #tpu.memory_space<smem>>
    %666 = vector.broadcast %665 : f32 to vector<2x256xf32>
    %667 = arith.mulf %660, %666 : vector<2x256xf32>
    %668 = arith.addf %655, %667 : vector<2x256xf32>
    %c68_91 = arith.constant 68 : index
    %669 = memref.load %arg4[%c68_91] : memref<81xf32, #tpu.memory_space<smem>>
    %670 = vector.broadcast %669 : f32 to vector<2x256xf32>
    %671 = arith.mulf %660, %670 : vector<2x256xf32>
    %672 = arith.addf %659, %671 : vector<2x256xf32>
    %c224_i32_92 = arith.constant 224 : i32
    %673 = tpu.dynamic_rotate %476 by %c224_i32_92 dim 1 : vector<2x256xf32>, i32 -> vector<2x256xf32>
    %c15_93 = arith.constant 15 : index
    %674 = memref.load %arg4[%c15_93] : memref<81xf32, #tpu.memory_space<smem>>
    %675 = vector.broadcast %674 : f32 to vector<2x256xf32>
    %676 = arith.mulf %673, %675 : vector<2x256xf32>
    %677 = arith.addf %664, %676 : vector<2x256xf32>
    %c42_94 = arith.constant 42 : index
    %678 = memref.load %arg4[%c42_94] : memref<81xf32, #tpu.memory_space<smem>>
    %679 = vector.broadcast %678 : f32 to vector<2x256xf32>
    %680 = arith.mulf %673, %679 : vector<2x256xf32>
    %681 = arith.addf %668, %680 : vector<2x256xf32>
    %c69_95 = arith.constant 69 : index
    %682 = memref.load %arg4[%c69_95] : memref<81xf32, #tpu.memory_space<smem>>
    %683 = vector.broadcast %682 : f32 to vector<2x256xf32>
    %684 = arith.mulf %673, %683 : vector<2x256xf32>
    %685 = arith.addf %672, %684 : vector<2x256xf32>
    %c223_i32_96 = arith.constant 223 : i32
    %686 = tpu.dynamic_rotate %476 by %c223_i32_96 dim 1 : vector<2x256xf32>, i32 -> vector<2x256xf32>
    %c16_97 = arith.constant 16 : index
    %687 = memref.load %arg4[%c16_97] : memref<81xf32, #tpu.memory_space<smem>>
    %688 = vector.broadcast %687 : f32 to vector<2x256xf32>
    %689 = arith.mulf %686, %688 : vector<2x256xf32>
    %690 = arith.addf %677, %689 : vector<2x256xf32>
    %c43_98 = arith.constant 43 : index
    %691 = memref.load %arg4[%c43_98] : memref<81xf32, #tpu.memory_space<smem>>
    %692 = vector.broadcast %691 : f32 to vector<2x256xf32>
    %693 = arith.mulf %686, %692 : vector<2x256xf32>
    %694 = arith.addf %681, %693 : vector<2x256xf32>
    %c70_99 = arith.constant 70 : index
    %695 = memref.load %arg4[%c70_99] : memref<81xf32, #tpu.memory_space<smem>>
    %696 = vector.broadcast %695 : f32 to vector<2x256xf32>
    %697 = arith.mulf %686, %696 : vector<2x256xf32>
    %698 = arith.addf %685, %697 : vector<2x256xf32>
    %c222_i32_100 = arith.constant 222 : i32
    %699 = tpu.dynamic_rotate %476 by %c222_i32_100 dim 1 : vector<2x256xf32>, i32 -> vector<2x256xf32>
    %c17_101 = arith.constant 17 : index
    %700 = memref.load %arg4[%c17_101] : memref<81xf32, #tpu.memory_space<smem>>
    %701 = vector.broadcast %700 : f32 to vector<2x256xf32>
    %702 = arith.mulf %699, %701 : vector<2x256xf32>
    %703 = arith.addf %690, %702 : vector<2x256xf32>
    %c44_102 = arith.constant 44 : index
    %704 = memref.load %arg4[%c44_102] : memref<81xf32, #tpu.memory_space<smem>>
    %705 = vector.broadcast %704 : f32 to vector<2x256xf32>
    %706 = arith.mulf %699, %705 : vector<2x256xf32>
    %707 = arith.addf %694, %706 : vector<2x256xf32>
    %c71_103 = arith.constant 71 : index
    %708 = memref.load %arg4[%c71_103] : memref<81xf32, #tpu.memory_space<smem>>
    %709 = vector.broadcast %708 : f32 to vector<2x256xf32>
    %710 = arith.mulf %699, %709 : vector<2x256xf32>
    %711 = arith.addf %698, %710 : vector<2x256xf32>
    %c18_104 = arith.constant 18 : index
    %712 = memref.load %arg4[%c18_104] : memref<81xf32, #tpu.memory_space<smem>>
    %713 = vector.broadcast %712 : f32 to vector<2x256xf32>
    %714 = arith.mulf %482, %713 : vector<2x256xf32>
    %715 = arith.addf %703, %714 : vector<2x256xf32>
    %c45_105 = arith.constant 45 : index
    %716 = memref.load %arg4[%c45_105] : memref<81xf32, #tpu.memory_space<smem>>
    %717 = vector.broadcast %716 : f32 to vector<2x256xf32>
    %718 = arith.mulf %482, %717 : vector<2x256xf32>
    %719 = arith.addf %707, %718 : vector<2x256xf32>
    %c72_106 = arith.constant 72 : index
    %720 = memref.load %arg4[%c72_106] : memref<81xf32, #tpu.memory_space<smem>>
    %721 = vector.broadcast %720 : f32 to vector<2x256xf32>
    %722 = arith.mulf %482, %721 : vector<2x256xf32>
    %723 = arith.addf %711, %722 : vector<2x256xf32>
    %c255_i32_107 = arith.constant 255 : i32
    %724 = tpu.dynamic_rotate %482 by %c255_i32_107 dim 1 : vector<2x256xf32>, i32 -> vector<2x256xf32>
    %c19_108 = arith.constant 19 : index
    %725 = memref.load %arg4[%c19_108] : memref<81xf32, #tpu.memory_space<smem>>
    %726 = vector.broadcast %725 : f32 to vector<2x256xf32>
    %727 = arith.mulf %724, %726 : vector<2x256xf32>
    %728 = arith.addf %715, %727 : vector<2x256xf32>
    %c46_109 = arith.constant 46 : index
    %729 = memref.load %arg4[%c46_109] : memref<81xf32, #tpu.memory_space<smem>>
    %730 = vector.broadcast %729 : f32 to vector<2x256xf32>
    %731 = arith.mulf %724, %730 : vector<2x256xf32>
    %732 = arith.addf %719, %731 : vector<2x256xf32>
    %c73_110 = arith.constant 73 : index
    %733 = memref.load %arg4[%c73_110] : memref<81xf32, #tpu.memory_space<smem>>
    %734 = vector.broadcast %733 : f32 to vector<2x256xf32>
    %735 = arith.mulf %724, %734 : vector<2x256xf32>
    %736 = arith.addf %723, %735 : vector<2x256xf32>
    %c254_i32_111 = arith.constant 254 : i32
    %737 = tpu.dynamic_rotate %482 by %c254_i32_111 dim 1 : vector<2x256xf32>, i32 -> vector<2x256xf32>
    %c20_112 = arith.constant 20 : index
    %738 = memref.load %arg4[%c20_112] : memref<81xf32, #tpu.memory_space<smem>>
    %739 = vector.broadcast %738 : f32 to vector<2x256xf32>
    %740 = arith.mulf %737, %739 : vector<2x256xf32>
    %741 = arith.addf %728, %740 : vector<2x256xf32>
    %c47_113 = arith.constant 47 : index
    %742 = memref.load %arg4[%c47_113] : memref<81xf32, #tpu.memory_space<smem>>
    %743 = vector.broadcast %742 : f32 to vector<2x256xf32>
    %744 = arith.mulf %737, %743 : vector<2x256xf32>
    %745 = arith.addf %732, %744 : vector<2x256xf32>
    %c74_114 = arith.constant 74 : index
    %746 = memref.load %arg4[%c74_114] : memref<81xf32, #tpu.memory_space<smem>>
    %747 = vector.broadcast %746 : f32 to vector<2x256xf32>
    %748 = arith.mulf %737, %747 : vector<2x256xf32>
    %749 = arith.addf %736, %748 : vector<2x256xf32>
    %c240_i32_115 = arith.constant 240 : i32
    %750 = tpu.dynamic_rotate %482 by %c240_i32_115 dim 1 : vector<2x256xf32>, i32 -> vector<2x256xf32>
    %c21_116 = arith.constant 21 : index
    %751 = memref.load %arg4[%c21_116] : memref<81xf32, #tpu.memory_space<smem>>
    %752 = vector.broadcast %751 : f32 to vector<2x256xf32>
    %753 = arith.mulf %750, %752 : vector<2x256xf32>
    %754 = arith.addf %741, %753 : vector<2x256xf32>
    %c48_117 = arith.constant 48 : index
    %755 = memref.load %arg4[%c48_117] : memref<81xf32, #tpu.memory_space<smem>>
    %756 = vector.broadcast %755 : f32 to vector<2x256xf32>
    %757 = arith.mulf %750, %756 : vector<2x256xf32>
    %758 = arith.addf %745, %757 : vector<2x256xf32>
    %c75_118 = arith.constant 75 : index
    %759 = memref.load %arg4[%c75_118] : memref<81xf32, #tpu.memory_space<smem>>
    %760 = vector.broadcast %759 : f32 to vector<2x256xf32>
    %761 = arith.mulf %750, %760 : vector<2x256xf32>
    %762 = arith.addf %749, %761 : vector<2x256xf32>
    %c239_i32_119 = arith.constant 239 : i32
    %763 = tpu.dynamic_rotate %482 by %c239_i32_119 dim 1 : vector<2x256xf32>, i32 -> vector<2x256xf32>
    %c22_120 = arith.constant 22 : index
    %764 = memref.load %arg4[%c22_120] : memref<81xf32, #tpu.memory_space<smem>>
    %765 = vector.broadcast %764 : f32 to vector<2x256xf32>
    %766 = arith.mulf %763, %765 : vector<2x256xf32>
    %767 = arith.addf %754, %766 : vector<2x256xf32>
    %c49_121 = arith.constant 49 : index
    %768 = memref.load %arg4[%c49_121] : memref<81xf32, #tpu.memory_space<smem>>
    %769 = vector.broadcast %768 : f32 to vector<2x256xf32>
    %770 = arith.mulf %763, %769 : vector<2x256xf32>
    %771 = arith.addf %758, %770 : vector<2x256xf32>
    %c76_122 = arith.constant 76 : index
    %772 = memref.load %arg4[%c76_122] : memref<81xf32, #tpu.memory_space<smem>>
    %773 = vector.broadcast %772 : f32 to vector<2x256xf32>
    %774 = arith.mulf %763, %773 : vector<2x256xf32>
    %775 = arith.addf %762, %774 : vector<2x256xf32>
    %c238_i32_123 = arith.constant 238 : i32
    %776 = tpu.dynamic_rotate %482 by %c238_i32_123 dim 1 : vector<2x256xf32>, i32 -> vector<2x256xf32>
    %c23_124 = arith.constant 23 : index
    %777 = memref.load %arg4[%c23_124] : memref<81xf32, #tpu.memory_space<smem>>
    %778 = vector.broadcast %777 : f32 to vector<2x256xf32>
    %779 = arith.mulf %776, %778 : vector<2x256xf32>
    %780 = arith.addf %767, %779 : vector<2x256xf32>
    %c50_125 = arith.constant 50 : index
    %781 = memref.load %arg4[%c50_125] : memref<81xf32, #tpu.memory_space<smem>>
    %782 = vector.broadcast %781 : f32 to vector<2x256xf32>
    %783 = arith.mulf %776, %782 : vector<2x256xf32>
    %784 = arith.addf %771, %783 : vector<2x256xf32>
    %c77_126 = arith.constant 77 : index
    %785 = memref.load %arg4[%c77_126] : memref<81xf32, #tpu.memory_space<smem>>
    %786 = vector.broadcast %785 : f32 to vector<2x256xf32>
    %787 = arith.mulf %776, %786 : vector<2x256xf32>
    %788 = arith.addf %775, %787 : vector<2x256xf32>
    %c224_i32_127 = arith.constant 224 : i32
    %789 = tpu.dynamic_rotate %482 by %c224_i32_127 dim 1 : vector<2x256xf32>, i32 -> vector<2x256xf32>
    %c24_128 = arith.constant 24 : index
    %790 = memref.load %arg4[%c24_128] : memref<81xf32, #tpu.memory_space<smem>>
    %791 = vector.broadcast %790 : f32 to vector<2x256xf32>
    %792 = arith.mulf %789, %791 : vector<2x256xf32>
    %793 = arith.addf %780, %792 : vector<2x256xf32>
    %c51_129 = arith.constant 51 : index
    %794 = memref.load %arg4[%c51_129] : memref<81xf32, #tpu.memory_space<smem>>
    %795 = vector.broadcast %794 : f32 to vector<2x256xf32>
    %796 = arith.mulf %789, %795 : vector<2x256xf32>
    %797 = arith.addf %784, %796 : vector<2x256xf32>
    %c78_130 = arith.constant 78 : index
    %798 = memref.load %arg4[%c78_130] : memref<81xf32, #tpu.memory_space<smem>>
    %799 = vector.broadcast %798 : f32 to vector<2x256xf32>
    %800 = arith.mulf %789, %799 : vector<2x256xf32>
    %801 = arith.addf %788, %800 : vector<2x256xf32>
    %c223_i32_131 = arith.constant 223 : i32
    %802 = tpu.dynamic_rotate %482 by %c223_i32_131 dim 1 : vector<2x256xf32>, i32 -> vector<2x256xf32>
    %c25_132 = arith.constant 25 : index
    %803 = memref.load %arg4[%c25_132] : memref<81xf32, #tpu.memory_space<smem>>
    %804 = vector.broadcast %803 : f32 to vector<2x256xf32>
    %805 = arith.mulf %802, %804 : vector<2x256xf32>
    %806 = arith.addf %793, %805 : vector<2x256xf32>
    %c52_133 = arith.constant 52 : index
    %807 = memref.load %arg4[%c52_133] : memref<81xf32, #tpu.memory_space<smem>>
    %808 = vector.broadcast %807 : f32 to vector<2x256xf32>
    %809 = arith.mulf %802, %808 : vector<2x256xf32>
    %810 = arith.addf %797, %809 : vector<2x256xf32>
    %c79_134 = arith.constant 79 : index
    %811 = memref.load %arg4[%c79_134] : memref<81xf32, #tpu.memory_space<smem>>
    %812 = vector.broadcast %811 : f32 to vector<2x256xf32>
    %813 = arith.mulf %802, %812 : vector<2x256xf32>
    %814 = arith.addf %801, %813 : vector<2x256xf32>
    %c222_i32_135 = arith.constant 222 : i32
    %815 = tpu.dynamic_rotate %482 by %c222_i32_135 dim 1 : vector<2x256xf32>, i32 -> vector<2x256xf32>
    %c26_136 = arith.constant 26 : index
    %816 = memref.load %arg4[%c26_136] : memref<81xf32, #tpu.memory_space<smem>>
    %817 = vector.broadcast %816 : f32 to vector<2x256xf32>
    %818 = arith.mulf %815, %817 : vector<2x256xf32>
    %819 = arith.addf %806, %818 : vector<2x256xf32>
    %c53_137 = arith.constant 53 : index
    %820 = memref.load %arg4[%c53_137] : memref<81xf32, #tpu.memory_space<smem>>
    %821 = vector.broadcast %820 : f32 to vector<2x256xf32>
    %822 = arith.mulf %815, %821 : vector<2x256xf32>
    %823 = arith.addf %810, %822 : vector<2x256xf32>
    %c80_138 = arith.constant 80 : index
    %824 = memref.load %arg4[%c80_138] : memref<81xf32, #tpu.memory_space<smem>>
    %825 = vector.broadcast %824 : f32 to vector<2x256xf32>
    %826 = arith.mulf %815, %825 : vector<2x256xf32>
    %827 = arith.addf %814, %826 : vector<2x256xf32>
    %c0_139 = arith.constant 0 : index
    %828 = memref.load %arg5[%c0_139] : memref<3xf32, #tpu.memory_space<smem>>
    %829 = vector.broadcast %828 : f32 to vector<2x256xf32>
    %830 = arith.addf %819, %829 : vector<2x256xf32>
    %cst_140 = arith.constant 0.00999999977 : f32
    %831 = vector.broadcast %cst_140 : f32 to vector<2x256xf32>
    %832 = arith.mulf %831, %830 : vector<2x256xf32>
    %833 = arith.maximumf %830, %832 : vector<2x256xf32>
    %c1_141 = arith.constant 1 : index
    %834 = memref.load %arg5[%c1_141] : memref<3xf32, #tpu.memory_space<smem>>
    %835 = vector.broadcast %834 : f32 to vector<2x256xf32>
    %836 = arith.addf %823, %835 : vector<2x256xf32>
    %cst_142 = arith.constant 0.00999999977 : f32
    %837 = vector.broadcast %cst_142 : f32 to vector<2x256xf32>
    %838 = arith.mulf %837, %836 : vector<2x256xf32>
    %839 = arith.maximumf %836, %838 : vector<2x256xf32>
    %c2_143 = arith.constant 2 : index
    %840 = memref.load %arg5[%c2_143] : memref<3xf32, #tpu.memory_space<smem>>
    %841 = vector.broadcast %840 : f32 to vector<2x256xf32>
    %842 = arith.addf %827, %841 : vector<2x256xf32>
    %cst_144 = arith.constant 0.00999999977 : f32
    %843 = vector.broadcast %cst_144 : f32 to vector<2x256xf32>
    %844 = arith.mulf %843, %842 : vector<2x256xf32>
    %845 = arith.maximumf %842, %844 : vector<2x256xf32>
    %846 = tpu.concatenate %833, %839, %845 in 1 : vector<2x256xf32>, vector<2x256xf32>, vector<2x256xf32> -> vector<2x768xf32>
    %c0_145 = arith.constant 0 : index
    %c0_146 = arith.constant 0 : index
    %847 = vector.load %arg6[%c0_145, %c0_146] : memref<768x32xf32, #tpu.memory_space<vmem>>, vector<768x32xf32>
    %cst_147 = arith.constant dense<0.000000e+00> : vector<2x32xf32>
    %848 = tpu.matmul %846, %847, %cst_147 {dimension_numbers = #tpu.dot_dimension_numbers<[1], [0], [0], [1], [0, 0, 1, 1], [], []>} : vector<2x768xf32>, vector<768x32xf32>, vector<2x32xf32> -> vector<2x32xf32>
    %c0_148 = arith.constant 0 : index
    %c0_149 = arith.constant 0 : index
    %849 = vector.load %arg7[%c0_148, %c0_149] : memref<1x32xf32, #tpu.memory_space<vmem>>, vector<1x32xf32>
    %850 = vector.broadcast %849 : vector<1x32xf32> to vector<2x32xf32>
    %851 = arith.addf %848, %850 : vector<2x32xf32>
    %cst_150 = arith.constant 0.00999999977 : f32
    %852 = vector.broadcast %cst_150 : f32 to vector<2x32xf32>
    %853 = arith.mulf %852, %851 : vector<2x32xf32>
    %854 = arith.maximumf %851, %853 : vector<2x32xf32>
    %c0_151 = arith.constant 0 : index
    %c0_152 = arith.constant 0 : index
    %855 = vector.load %arg8[%c0_151, %c0_152] : memref<32x4xf32, #tpu.memory_space<vmem>>, vector<32x4xf32>
    %cst_153 = arith.constant dense<0.000000e+00> : vector<2x4xf32>
    %856 = tpu.matmul %854, %855, %cst_153 {dimension_numbers = #tpu.dot_dimension_numbers<[1], [0], [0], [1], [0, 0, 1, 1], [], []>} : vector<2x32xf32>, vector<32x4xf32>, vector<2x4xf32> -> vector<2x4xf32>
    %c0_154 = arith.constant 0 : index
    %c0_155 = arith.constant 0 : index
    %857 = vector.load %arg9[%c0_154, %c0_155] : memref<1x4xf32, #tpu.memory_space<vmem>>, vector<1x4xf32>
    %858 = vector.broadcast %857 : vector<1x4xf32> to vector<2x4xf32>
    %859 = arith.addf %856, %858 : vector<2x4xf32>
    %c0_156 = arith.constant 0 : index
    %c0_157 = arith.constant 0 : index
    %860 = vector.load %arg10[%c0_156, %c0_157] : memref<2x4xf32, #tpu.memory_space<vmem>>, vector<2x4xf32>
    tpu.vector_store %arg10[%c0_156, %c0_157], %859 {strides = array<i32>} : memref<2x4xf32, #tpu.memory_space<vmem>>, vector<2x4xf32>,
    return
  }
  func.func @transform_0(%arg0: i32) -> (i32, i32) {
    %c0_i32 = arith.constant 0 : i32
    %c0_i32_0 = arith.constant 0 : i32
    return %arg0, %c0_i32 : i32, i32
  }
  func.func @transform_1(%arg0: i32) -> i32 {
    %c0_i32 = arith.constant 0 : i32
    %c0_i32_0 = arith.constant 0 : i32
    return %c0_i32 : i32
  }
  func.func @transform_2(%arg0: i32) -> i32 {
    %c0_i32 = arith.constant 0 : i32
    %c0_i32_0 = arith.constant 0 : i32
    return %c0_i32 : i32
  }
  func.func @transform_3(%arg0: i32) -> i32 {
    %c0_i32 = arith.constant 0 : i32
    %c0_i32_0 = arith.constant 0 : i32
    return %c0_i32 : i32
  }
  func.func @transform_4(%arg0: i32) -> i32 {
    %c0_i32 = arith.constant 0 : i32
    %c0_i32_0 = arith.constant 0 : i32
    return %c0_i32 : i32
  }
  func.func @transform_5(%arg0: i32) -> (i32, i32) {
    %c0_i32 = arith.constant 0 : i32
    %c0_i32_0 = arith.constant 0 : i32
    %c0_i32_1 = arith.constant 0 : i32
    return %c0_i32, %c0_i32_0 : i32, i32
  }
  func.func @transform_6(%arg0: i32) -> (i32, i32) {
    %c0_i32 = arith.constant 0 : i32
    %c0_i32_0 = arith.constant 0 : i32
    %c0_i32_1 = arith.constant 0 : i32
    return %c0_i32, %c0_i32_0 : i32, i32
  }
  func.func @transform_7(%arg0: i32) -> (i32, i32) {
    %c0_i32 = arith.constant 0 : i32
    %c0_i32_0 = arith.constant 0 : i32
    %c0_i32_1 = arith.constant 0 : i32
    return %c0_i32, %c0_i32_0 : i32, i32
  }
  func.func @transform_8(%arg0: i32) -> (i32, i32) {
    %c0_i32 = arith.constant 0 : i32
    %c0_i32_0 = arith.constant 0 : i32
    %c0_i32_1 = arith.constant 0 : i32
    return %c0_i32, %c0_i32_0 : i32, i32
  }
  func.func @transform_9(%arg0: i32) -> (i32, i32) {
    %c0_i32 = arith.constant 0 : i32
    %c0_i32_0 = arith.constant 0 : i32
    return %arg0, %c0_i32 : i32, i32
  }
}

</mosaic_0001>

<bundles_post_ra>
// kernel: tpu_custom_call.1
= control target key start
LH: loop header
LB: loop body
LE: loop exit
PB: predicated region body
PF: predicated region fallthrough
CT: control target
= control target key end

     0   :  { %s6764_s0 = inlined_call_operand.vmem [shape: f32[2,1024], index: 0, kind: input, shape index: {}]   ;;  %s6765_s1 = inlined_call_operand.vmem [shape: f32[108], index: 1, kind: input, shape index: {}]   ;;  %s6766_s2 = inlined_call_operand.vmem [shape: f32[3], index: 2, kind: input, shape index: {}]   ;;  %s6767_s3 = inlined_call_operand.vmem [shape: f32[81], index: 3, kind: input, shape index: {}]   ;;  %s6768_s4 = inlined_call_operand.vmem [shape: f32[3], index: 4, kind: input, shape index: {}]   ;;  %s6769_s5 = inlined_call_operand.vmem [shape: f32[768,32], index: 5, kind: input, shape index: {}]   ;;  %s6770_s6 = inlined_call_operand.vmem [shape: f32[1,32], index: 6, kind: input, shape index: {}]   ;;  %s6771_s7 = inlined_call_operand.vmem [shape: f32[32,4], index: 7, kind: input, shape index: {}]   ;;  %s6772_s8 = inlined_call_operand.vmem [shape: f32[1,4], index: 8, kind: input, shape index: {}]   ;;  %s6773_s9 = inlined_call_operand.hbm [shape: f32[2,4], index: 9, kind: output, shape index: {}]  }
   0x1   :  { %6954 = sst [smem:[#allocation63_spill]] %s6764_s0 }
   0x2   :  { %6955 = sst [smem:[#allocation64_spill]] %s6769_s5 }
   0x3   :  { %6956 = sst [smem:[#allocation65_spill]] %s6770_s6 }
   0x4   :  { %6957 = sst [smem:[#allocation66_spill]] %s6771_s7 }
   0x5   :  { %6958 = sst [smem:[#allocation67_spill]] %s6772_s8 }
   0x6   :  { %6959 = sst [smem:[#allocation68_spill]] %s6773_s9 }
   0x7   :  { %14 = vsyncpa [#allocation4], 0 }
   0x8   :  { %15 = vsyncpa [#allocation6], 0 }
   0x9   :  { %16 = vsyncpa [#allocation9], 0  ;;  %s36_s11 = sshll.u32 %s6766_s2, 4  ;;  %s37_s11 = int_to_ptr.vmem [resolvable:$true] %s36_s11 }
   0xa   :  { %17 = vsyncpa [#allocation3], 0  ;;  %s26_s14 = sshll.u32 %s6765_s1, 4  ;;  %s4191_s15 = scalar_lea.vmem %s37_s11, 16  ;;  %s27_s14 = int_to_ptr.vmem [resolvable:$true] %s26_s14 }
   0xb   :  { %p4192_p0 = scmp.ne.s32.totalorder %s37_s11, %s4191_s15  ;;  %p4196_p1 = scmp.lt.s32.totalorder %s37_s11, %s37_s11 }
   0xc   :  { %p4197_p2 = scmp.lt.s32.totalorder %s4191_s15, %s4191_s15 }
   0xe   :  { %p4198_p3 = por %p4197_p2, %p4196_p1 }
  0x10   :  { %p4199_p4 = pnand %p4198_p3, %p4192_p0 }
  0x12   :  { %4202 = shalt.err (!%p4199_p4)
}
  0x13   :  { %s4269_s16 = smov [#allocation5]   ;;  %s4203_s17 = scalar_lea.vmem %s27_s14, 16 }
  0x14   :  { %39 = dma.vmem_to_smem %s37_s11, 16, %s4269_s16, [#allocation6]  }
  0x15   :  { %p4204_p5 = scmp.ne.s32.totalorder %s27_s14, %s4203_s17  ;;  %p4208_p6 = scmp.lt.s32.totalorder %s27_s14, %s27_s14 }
  0x16   :  { %p4209_p7 = scmp.lt.s32.totalorder %s4203_s17, %s4203_s17 }
  0x18   :  { %p4210_p8 = por %p4209_p7, %p4208_p6 }
  0x1a   :  { %p4211_p9 = pnand %p4210_p8, %p4204_p5 }
  0x1c   :  { %4214 = shalt.err (!%p4211_p9)
}
  0x1d   :  { %s4270_s2 = smov [#allocation2]   ;;  %s46_s19 = sshll.u32 %s6767_s3, 4  ;;  %s47_s19 = int_to_ptr.vmem [resolvable:$true] %s46_s19 }
  0x1e   :  { %29 = dma.vmem_to_smem %s27_s14, 16, %s4270_s2, [#allocation4]  }
  0x1f   :  { %s56_s22 = sshll.u32 %s6768_s4, 4  ;;  %s4215_s23 = scalar_lea.vmem %s47_s19, 16  ;;  %s57_s22 = int_to_ptr.vmem [resolvable:$true] %s56_s22 }
  0x20   :  { %p4216_p10 = scmp.ne.s32.totalorder %s47_s19, %s4215_s23  ;;  %p4220_p11 = scmp.lt.s32.totalorder %s47_s19, %s47_s19 }
  0x21   :  { %p4221_p12 = scmp.lt.s32.totalorder %s4215_s23, %s4215_s23 }
  0x23   :  { %p4222_p13 = por %p4221_p12, %p4220_p11 }
  0x25   :  { %p4223_p0 = pnand %p4222_p13, %p4216_p10 }
  0x27   :  { %4226 = shalt.err (!%p4223_p0)
}
  0x28   :  { %s4271_s24 = smov [#allocation7]   ;;  %s4227_s25 = scalar_lea.vmem %s57_s22, 16 }
  0x29   :  { %49 = dma.vmem_to_smem %s47_s19, 16, %s4271_s24, [#allocation6]  }
  0x2a   :  { %p4228_p1 = scmp.ne.s32.totalorder %s57_s22, %s4227_s25  ;;  %p4232_p2 = scmp.lt.s32.totalorder %s57_s22, %s57_s22 }
  0x2b   :  { %p4233_p3 = scmp.lt.s32.totalorder %s4227_s25, %s4227_s25 }
  0x2d   :  { %p4234_p4 = por %p4233_p3, %p4232_p2 }
  0x2f   :  { %p4235_p5 = pnand %p4234_p4, %p4228_p1 }
  0x31   :  { %4238 = shalt.err (!%p4235_p5)
}
  0x32   :  { %s4272_s3 = smov [#allocation8]  }
  0x33   :  { %59 = dma.vmem_to_smem %s57_s22, 16, %s4272_s3, [#allocation9]  }
  0x34   :  { %4261 = dma.done.wait [#allocation4], 16  }
  0x35   :  { %4262 = vsyncadd [#allocation4], 4294967280 }
  0x36   :  { %4263 = dma.done.wait [#allocation6], 32  }
  0x37   :  { %4264 = vsyncadd [#allocation6], 4294967264 }
  0x38   :  { %4265 = dma.done.wait [#allocation9], 16  }
  0x39   :  { %4266 = vsyncadd [#allocation9], 4294967280 }
  0x3a   :  { %80 = sfence }
  0x3b   :  { %v95_v0 = vlaneseq  ;;  %v4273_v1 = vmov 1983009808   ;;  %v4352_v5 = vld [vmem:[%s6764_s0] sm:$0xf]  ;;  %s6784_s27 = smov 126   ;;  %s6786_s28 = smov 127  }
  0x3c   :  { %v93_v2 = vunpack.c.l.s4 %v4273_v1  ;;  %s6782_s29 = smov 112   ;;  %s6780_s30 = smov 111   ;;  %v4373_v9 = vld [vmem:[%s6764_s0 + $0x4] sm:$0xf]  ;;  %v4396_v12 = vld [vmem:[%s6764_s0 + $0x8] sm:$0xf] }
  0x3d   :  { %v96_v3 = vshrl.u32 %v95_v0, 7  ;;  %s6778_s10 = smov 110   ;;  %s6776_s11 = smov 96   ;;  %v4425_v15 = vld [vmem:[%s6764_s0 + $0xc] sm:$0xf]  ;;  %v4531_v21 = vand.u32 127, %v95_v0 }
  0x3e   :  { %v94_v4 = vunpack.c.0.s8 %v93_v2  ;;  %s6774_s14 = smov 95   ;;  %s6789_s15 = smov 94   ;;  %vm4283_vm8 = vmmov 0   ;;  %vm3663_vm9 = vcmask 261120   ;;  %vm3737_vm10 = vcmask 25600  }
  0x3f   :  { %s4414_s2 = sld [smem:[#allocation2 + $0x2]]  ;;  %s4418_s1 = sld [smem:[#allocation2 + $0x26]]  ;;  %vm163_vm0 = vcmp.lt.s32.totalorder %v4531_v21, 126  ;;  %vm218_vm1 = vcmp.lt.s32.totalorder %v4531_v21, 112  ;;  %vm108_vm2 = vcmp.lt.s32.totalorder %v4531_v21, 127  ;;  %vm273_vm3 = vcmp.lt.s32.totalorder %v4531_v21, 111 }
  0x40   :  { %v4354_v6 = vsub.s32 %v94_v4, %v96_v3  ;;  %s4420_s18 = sld [smem:[#allocation2 + $0x4a]]  ;;  %s4427_s21 = sld [smem:[#allocation2 + $0x3]]  ;;  %vm328_vm4 = vcmp.lt.s32.totalorder %v4531_v21, 110  ;;  %vm383_vm5 = vcmp.lt.s32.totalorder %v4531_v21, 96  ;;  %vm438_vm6 = vcmp.lt.s32.totalorder %v4531_v21, 95 }
  0x41   :  { %s4429_s22 = sld [smem:[#allocation2 + $0x27]]  ;;  %s4431_s23 = sld [smem:[#allocation2 + $0x4b]]  ;;  %vm493_vm7 = vcmp.lt.s32.totalorder %v4531_v21, 94 }
  0x42   :  { %v98_v7 = vrot.slane %v4352_v5, %v4354_v6  ;;  %v564_v10 = vrot.slane %v4373_v9, %v4354_v6  ;;  %v1020_v13 = vrot.slane %v4396_v12, %v4354_v6  ;;  %s4433_s24 = sld [smem:[#allocation2]]  ;;  %s4435_s25 = sld [smem:[#allocation2 + $0x24]]  ;;  %v4443_v16 = vrot.slane %v4425_v15, %v4354_v6 }
  0x43   :  { %s4437_s3 = sld [smem:[#allocation2 + $0x48]]  ;;  %s4445_s4 = sld [smem:[#allocation2 + $0x1]] }
  0x44   :  { %159 = vrot.lane.b32.xlu1 %v98_v7, %s6784_s27  ;;  %102 = vrot.lane.b32.xlu0 %v98_v7, %s6786_s28  ;;  %v99_v8 = vcombine.high %v98_v7, %v98_v7  ;;  %v565_v11 = vcombine.high %v564_v10, %v564_v10  ;;  %v1021_v14 = vcombine.high %v1020_v13, %v1020_v13  ;;  %s4447_s26 = sld [smem:[#allocation2 + $0x25]]  ;;  %s4449_s12 = sld [smem:[#allocation2 + $0x49]] }
  0x45   :  { %6960 = sst [smem:[#allocation15_spill]] %s4414_s2  ;;  %s4451_s13 = sld [smem:[#allocation2 + $0x4]]  ;;  %v4465_v17 = vcombine.high %v4443_v16, %v4443_v16  ;;  %v167_v18 = vstv %s4414_s2  ;;  %v183_v19 = vstv %s4418_s1 }
  0x46   :  { %6961 = sst [smem:[#allocation16_spill]] %s4418_s1  ;;  %s4453_s16 = sld [smem:[#allocation2 + $0x28]]  ;;  %v199_v20 = vstv %s4420_s18  ;;  %v222_v22 = vstv %s4427_s21 }
  0x47   :  { %6962 = sst [smem:[#allocation17_spill]] %s4420_s18  ;;  %s4455_s17 = sld [smem:[#allocation2 + $0x4c]]  ;;  %v238_v23 = vstv %s4429_s22  ;;  %v254_v24 = vstv %s4431_s23 }
  0x48   :  { %214 = vrot.lane.b32.xlu0 %v98_v7, %s6782_s29  ;;  %161 = vrot.lane.b32.xlu1 %v99_v8, %s6784_s27  ;;  %6963 = sst [smem:[#allocation18_spill]] %s4427_s21  ;;  %s4457_s19 = sld [smem:[#allocation2 + $0x5]]  ;;  %v83_v25 = vstv %s4433_s24  ;;  %v86_v26 = vstv %s4435_s25 }
  0x49   :  { %6964 = sst [smem:[#allocation19_spill]] %s4429_s22  ;;  %s4459_s20 = sld [smem:[#allocation2 + $0x29]]  ;;  %v89_v27 = vstv %s4437_s3  ;;  %v112_v28 = vstv %s4445_s4  ;;  %v4569_v36 = vmul.f32 %v83_v25, %v4352_v5  ;;  %v4572_v37 = vmul.f32 %v86_v26, %v4352_v5 }
  0x4a   :  { %6965 = sst [smem:[#allocation20_spill]] %s4431_s23  ;;  %s4481_s9 = sld [smem:[#allocation2 + $0x8]]  ;;  %v128_v29 = vstv %s4447_s26  ;;  %v144_v30 = vstv %s4449_s12  ;;  %v4611_v52 = vmul.f32 %v89_v27, %v4352_v5 }
  0x4b   :  { %6966 = sst [smem:[#allocation21_spill]] %s4445_s4  ;;  %s4487_s8 = sld [smem:[#allocation2 + $0x2c]]  ;;  %v277_v31 = vstv %s4451_s13 }
  0x4c   :  { %216 = vrot.lane.b32.xlu1 %v99_v8, %s6782_s29  ;;  %104 = vrot.lane.b32.xlu0 %v99_v8, %s6786_s28  ;;  %6967 = sst [smem:[#allocation22_spill]] %s4447_s26  ;;  %s4489_s6 = sld [smem:[#allocation2 + $0x50]]  ;;  %v293_v32 = vstv %s4453_s16 }
  0x4d   :  { %6968 = sst [smem:[#allocation23_spill]] %s4449_s12  ;;  %s4491_s7 = sld [smem:[#allocation2 + $0xa]]  ;;  %v309_v33 = vstv %s4455_s17 }
  0x4e   :  { %6969 = sst [smem:[#allocation24_spill]] %s4451_s13  ;;  %s4493_s5 = sld [smem:[#allocation2 + $0x2e]]  ;;  %v332_v34 = vstv %s4457_s19 }
  0x4f   :  { %6970 = sst [smem:[#allocation25_spill]] %s4453_s16  ;;  %s4495_s0 = sld [smem:[#allocation2 + $0x9]]  ;;  %v348_v35 = vstv %s4459_s20 }
  0x50   :  { %271 = vrot.lane.b32.xlu1 %v99_v8, %s6780_s30  ;;  %269 = vrot.lane.b32.xlu0 %v98_v7, %s6780_s30  ;;  %6971 = sst [smem:[#allocation26_spill]] %s4455_s17  ;;  %s4535_s18 = sld [smem:[#allocation2 + $0x55]] }
  0x51   :  { %6972 = sst [smem:[#allocation27_spill]] %s4457_s19  ;;  %s4537_s1 = sld [smem:[#allocation2 + $0xe]]  ;;  %v513_v47 = vstv %s4487_s8 }
  0x52   :  { %6973 = sst [smem:[#allocation28_spill]] %s4459_s20  ;;  %s4543_s2 = sld [smem:[#allocation2 + $0x32]] }
  0x53   :  { %6979 = sst [smem:[#allocation34_spill]] %s4481_s9  ;;  %s4497_s9 = sld [smem:[#allocation2 + $0x52]] }
  0x54   :  { %326 = vrot.lane.b32.xlu1 %v99_v8, %s6778_s10  ;;  %324 = vrot.lane.b32.xlu0 %v98_v7, %s6778_s10  ;;  %6981 = sst [smem:[#allocation35_spill]] %s4489_s6  ;;  %s4509_s6 = sld [smem:[#allocation2 + $0x2f]] }
  0x55   :  { %6982 = sst [smem:[#allocation36_spill]] %s4491_s7  ;;  %s4507_s7 = sld [smem:[#allocation2 + $0xb]]  ;;  %v546_v43 = vstv %s4495_s0 }
  0x56   :  { %6983 = sst [smem:[#allocation37_spill]] %s4493_s5  ;;  %s4511_s5 = sld [smem:[#allocation2 + $0x53]]  ;;  %v4614_v53 = vmul.f32 %v546_v43, %v4373_v9  ;;  %v769_v2 = vstv %s4535_s18 }
  0x57   :  { %6992 = sst [smem:[#allocation44_spill]] %s4537_s1  ;;  %s4551_s22 = sld [smem:[#allocation2 + $0xf]] }
  0x58   :  { %381 = vrot.lane.b32.xlu1 %v99_v8, %s6776_s11  ;;  %379 = vrot.lane.b32.xlu0 %v98_v7, %s6776_s11  ;;  %6993 = sst [smem:[#allocation45_spill]] %s4543_s2  ;;  %s4553_s21 = sld [smem:[#allocation2 + $0x33]] }
  0x59   :  { %6984 = sst [smem:[#allocation38_spill]] %s4497_s9  ;;  %s4513_s9 = sld [smem:[#allocation2 + $0xc]] }
  0x5a   :  { %6988 = sst [smem:[#allocation41_spill]] %s4509_s6  ;;  %s4524_s6 = sld [smem:[#allocation2 + $0x31]] }
  0x5b   :  { %s4559_s24 = sld [smem:[#allocation2 + $0x57]]  ;;  %s4561_s25 = sld [smem:[#allocation2 + $0x10]]  ;;  %v629_v56 = vstv %s4507_s7 }
  0x5c   :  { %436 = vrot.lane.b32.xlu1 %v99_v8, %s6774_s14  ;;  %434 = vrot.lane.b32.xlu0 %v98_v7, %s6774_s14  ;;  %6989 = sst [smem:[#allocation42_spill]] %s4511_s5  ;;  %s6991_s5 = smov 112  }
  0x5d   :  { %s6996_s3 = smov 111   ;;  %s6999_s16 = sld [smem:[#allocation34_spill]] }
  0x5e   :  { %s7000_s20 = sld [smem:[#allocation35_spill]]  ;;  %s7001_s19 = sld [smem:[#allocation36_spill]] }
  0x5f   :  { %6990 = sst [smem:[#allocation43_spill]] %s4513_s9  ;;  %s7003_s26 = sld [smem:[#allocation37_spill]]  ;;  %v683_v59 = vstv %s4513_s9 }
  0x60   :  { %491 = vrot.lane.b32.xlu1 %v99_v8, %s6789_s15  ;;  %489 = vrot.lane.b32.xlu0 %v98_v7, %s6789_s15  ;;  %s4576_s17 = sld [smem:[#allocation2 + $0x34]]  ;;  %s4578_s4 = sld [smem:[#allocation2 + $0x58]] }
  0x61   :  { %6994 = sst [smem:[#allocation46_spill]] %s4559_s24  ;;  %s4584_s23 = sld [smem:[#allocation2 + $0x11]] }
  0x62   :  { %6995 = sst [smem:[#allocation47_spill]] %s4561_s25  ;;  %s4586_s25 = sld [smem:[#allocation2 + $0x35]] }
  0x63   :  { %v497_v46 = vstv %s6999_s16  ;;  %s4592_s24 = sld [smem:[#allocation2 + $0x59]]  ;;  %s4600_s0 = sld [smem:[#allocation2 + $0x12]] }
  0x64   :  { %570 = vrot.lane.b32.xlu1 %v565_v11, %s6786_s28  ;;  %568 = vrot.lane.b32.xlu0 %v564_v10, %s6786_s28  ;;  %v529_v48 = vstv %s7000_s20  ;;  %v575_v49 = vstv %s7001_s19  ;;  %s7013_s16 = smov 110   ;;  %s7016_s19 = sld [smem:[#allocation46_spill]] }
  0x65   :  { %v591_v50 = vstv %s7003_s26  ;;  %s4624_s26 = sld [smem:[#allocation2 + $0x5b]]  ;;  %s7020_s9 = smov 96  }
  0x66   :  { %7004 = sst [smem:[#allocation35_spill]] %s4578_s4  ;;  %s7011_s4 = sld [smem:[#allocation41_spill]] }
  0x67   :  { %7006 = sst [smem:[#allocation48_spill]] %s4584_s23  ;;  %s4839_s2 = sld [smem:[#allocation2 + $0x5d]] }
  0x68   :  { %624 = vrot.lane.b32.xlu1 %v565_v11, %s6784_s27  ;;  %622 = vrot.lane.b32.xlu0 %v564_v10, %s6784_s27  ;;  %7007 = sst [smem:[#allocation49_spill]] %s4586_s25  ;;  %s7024_s25 = smov 95  }
  0x69   :  { %s4847_s1 = sld [smem:[#allocation2 + $0x16]]  ;;  %s4861_s8 = sld [smem:[#allocation2 + $0x3b]] }
  0x6a   :  { %s4863_s23 = sld [smem:[#allocation2 + $0x5f]]  ;;  %s4868_s20 = sld [smem:[#allocation2 + $0x18]] }
  0x6b   :  { %7015 = sst [smem:[#allocation41_spill]] %s4624_s26  ;;  %s4885_s26 = sld [smem:[#allocation2 + $0x19]] }
  0x6c   :  { %678 = vrot.lane.b32.xlu1 %v565_v11, %s6782_s29  ;;  %676 = vrot.lane.b32.xlu0 %v564_v10, %s6782_s29  ;;  %v645_v57 = vstv %s7011_s4  ;;  %s4991_s7 = sld [smem:[#allocation2 + $0x3f]]  ;;  %s7077_s18 = sld [smem:[#allocation47_spill]] }
  0x6d   :  { %7047 = sst [smem:[#allocation17_spill]] %s4839_s2  ;;  %s5083_s4 = sld [smem:[#allocation2 + $0x1d]] }
  0x6f   :  { %7049 = sst [smem:[#allocation19_spill]] %s4861_s8  ;;  %s4925_s8 = sld [smem:[#allocation2 + $0x40]] }
  0x70   :  { %732 = vrot.lane.b32.xlu1 %v565_v11, %s6780_s30  ;;  %730 = vrot.lane.b32.xlu0 %v564_v10, %s6780_s30 }
  0x74   :  { %786 = vrot.lane.b32.xlu1 %v565_v11, %s6778_s10  ;;  %784 = vrot.lane.b32.xlu0 %v564_v10, %s6778_s10 }
  0x78   :  { %840 = vrot.lane.b32.xlu1 %v565_v11, %s6776_s11  ;;  %838 = vrot.lane.b32.xlu0 %v564_v10, %s6776_s11 }
  0x7c   :  { %894 = vrot.lane.b32.xlu1 %v565_v11, %s6774_s14  ;;  %892 = vrot.lane.b32.xlu0 %v564_v10, %s6774_s14 }
  0x80   :  { %948 = vrot.lane.b32.xlu1 %v565_v11, %s6789_s15  ;;  %946 = vrot.lane.b32.xlu0 %v564_v10, %s6789_s15 }
  0x84   :  { %1026 = vrot.lane.b32.xlu1 %v1021_v14, %s6786_s28  ;;  %1024 = vrot.lane.b32.xlu0 %v1020_v13, %s6786_s28  ;;  %s4479_s28 = sld [smem:[#allocation2 + $0x4f]] }
  0x88   :  { %1080 = vrot.lane.b32.xlu1 %v1021_v14, %s6784_s27  ;;  %1078 = vrot.lane.b32.xlu0 %v1020_v13, %s6784_s27  ;;  %s4477_s27 = sld [smem:[#allocation2 + $0x2b]] }
  0x8a   :  { %6978 = sst [smem:[#allocation33_spill]] %s4479_s28  ;;  %s4499_s28 = sld [smem:[#allocation2 + $0x2d]] }
  0x8b   :  { %s6998_s13 = sld [smem:[#allocation33_spill]] }
  0x8c   :  { %1134 = vrot.lane.b32.xlu1 %v1021_v14, %s6782_s29  ;;  %1132 = vrot.lane.b32.xlu0 %v1020_v13, %s6782_s29  ;;  %s4475_s29 = sld [smem:[#allocation2 + $0x7]]  ;;  %7002 = sst [smem:[#allocation33_spill]] %s4576_s17 }
  0x8d   :  { %s4594_s17 = sld [smem:[#allocation2 + $0x13]] }
  0x8e   :  { %6977 = sst [smem:[#allocation32_spill]] %s4477_s27 }
  0x8f   :  { %s4501_s27 = sld [smem:[#allocation2 + $0x51]] }
  0x90   :  { %1188 = vrot.lane.b32.xlu1 %v1021_v14, %s6780_s30  ;;  %1186 = vrot.lane.b32.xlu0 %v1020_v13, %s6780_s30  ;;  %s4473_s30 = sld [smem:[#allocation2 + $0x4e]]  ;;  %6985 = sst [smem:[#allocation39_spill]] %s4499_s28 }
  0x91   :  { %s4515_s28 = sld [smem:[#allocation2 + $0x30]]  ;;  %s6997_s12 = sld [smem:[#allocation32_spill]]  ;;  %v474_v45 = vstv %s6998_s13 }
  0x92   :  { %v442_v42 = vstv %s4475_s29  ;;  %s4825_s29 = sld [smem:[#allocation2 + $0x5c]]  ;;  %s4830_s13 = sld [smem:[#allocation2 + $0x15]] }
  0x94   :  { %1242 = vrot.lane.b32.xlu1 %v1021_v14, %s6778_s10  ;;  %1240 = vrot.lane.b32.xlu0 %v1020_v13, %s6778_s10  ;;  %s4471_s10 = sld [smem:[#allocation2 + $0x2a]] }
  0x95   :  { %6986 = sst [smem:[#allocation40_spill]] %s4501_s27  ;;  %s4517_s27 = sld [smem:[#allocation2 + $0x54]] }
  0x96   :  { %6976 = sst [smem:[#allocation31_spill]] %s4473_s30  ;;  %v419_v41 = vstv %s4473_s30  ;;  %s7012_s30 = sld [smem:[#allocation42_spill]] }
  0x97   :  { %v458_v44 = vstv %s6997_s12  ;;  %s4602_s12 = sld [smem:[#allocation2 + $0x36]] }
  0x98   :  { %1296 = vrot.lane.b32.xlu1 %v1021_v14, %s6776_s11  ;;  %1294 = vrot.lane.b32.xlu0 %v1020_v13, %s6776_s11  ;;  %s4469_s11 = sld [smem:[#allocation2 + $0x6]]  ;;  %7045 = sst [smem:[#allocation15_spill]] %s4830_s13 }
  0x9a   :  { %v403_v40 = vstv %s4471_s10  ;;  %s4855_s10 = sld [smem:[#allocation2 + $0x5e]] }
  0x9b   :  { %v715_v63 = vstv %s4517_s27  ;;  %s4966_s27 = sld [smem:[#allocation2 + $0x1b]] }
  0x9c   :  { %1350 = vrot.lane.b32.xlu1 %v1021_v14, %s6774_s14  ;;  %1348 = vrot.lane.b32.xlu0 %v1020_v13, %s6774_s14  ;;  %s4467_s14 = sld [smem:[#allocation2 + $0x4d]]  ;;  %v661_v58 = vstv %s7012_s30  ;;  %s4934_s30 = sld [smem:[#allocation2 + $0x64]] }
  0x9d   :  { %v1006_v4 = vstv %s4602_s12  ;;  %s4819_s12 = sld [smem:[#allocation2 + $0x38]] }
  0x9e   :  { %6975 = sst [smem:[#allocation30_spill]] %s4469_s11  ;;  %v387_v39 = vstv %s4469_s11  ;;  %s7009_s11 = sld [smem:[#allocation40_spill]] }
  0xa0   :  { %1404 = vrot.lane.b32.xlu1 %v1021_v14, %s6789_s15  ;;  %1402 = vrot.lane.b32.xlu0 %v1020_v13, %s6789_s15  ;;  %s6980_s15 = smov 127   ;;  %v1002_v14 = vstv %s4600_s0  ;;  %s4832_s0 = sld [smem:[#allocation2 + $0x39]] }
  0xa2   :  { %6974 = sst [smem:[#allocation29_spill]] %s4467_s14  ;;  %v364_v38 = vstv %s4467_s14  ;;  %s7008_s14 = sld [smem:[#allocation39_spill]] }
  0xa3   :  { %7010 = sst [smem:[#allocation39_spill]] %s4594_s17  ;;  %s4894_s17 = sld [smem:[#allocation2 + $0x61]] }
  0xa4   :  { %1482 = vrot.lane.b32.xlu1 %v4465_v17, %s6980_s15  ;;  %1480 = vrot.lane.b32.xlu0 %v4443_v16, %s6980_s15  ;;  %s6987_s15 = smov 126   ;;  %v554_v55 = vstv %s7009_s11  ;;  %s7019_s11 = sld [smem:[#allocation35_spill]] }
  0xa5   :  { %v4644_v8 = vmul.f32 %v554_v55, %v4373_v9  ;;  %7043 = sst [smem:[#allocation46_spill]] %s4819_s12 }
  0xa6   :  { %7044 = sst [smem:[#allocation35_spill]] %s4825_s29 }
  0xa7   :  { %7046 = sst [smem:[#allocation16_spill]] %s4832_s0 }
  0xa8   :  { %1536 = vrot.lane.b32.xlu1 %v4465_v17, %s6987_s15  ;;  %1534 = vrot.lane.b32.xlu0 %v4443_v16, %s6987_s15  ;;  %s4522_s15 = sld [smem:[#allocation2 + $0xd]]  ;;  %v550_v54 = vstv %s7008_s14  ;;  %s4873_s14 = sld [smem:[#allocation2 + $0x3c]] }
  0xa9   :  { %v4641_v7 = vmul.f32 %v550_v54, %v4373_v9 }
  0xac   :  { %1590 = vrot.lane.b32.xlu1 %v4465_v17, %s6991_s5  ;;  %1588 = vrot.lane.b32.xlu0 %v4443_v16, %s6991_s5  ;;  %s4545_s5 = sld [smem:[#allocation2 + $0x56]] }
  0xb0   :  { %1644 = vrot.lane.b32.xlu1 %v4465_v17, %s6996_s3  ;;  %1642 = vrot.lane.b32.xlu0 %v4443_v16, %s6996_s3  ;;  %s7005_s3 = sld [smem:[#allocation38_spill]] }
  0xb2   :  { %v823_v5 = vstv %s4545_s5  ;;  %s7062_s5 = sld [smem:[#allocation44_spill]] }
  0xb4   :  { %1698 = vrot.lane.b32.xlu1 %v4465_v17, %s7013_s16  ;;  %1696 = vrot.lane.b32.xlu0 %v4443_v16, %s7013_s16  ;;  %s4622_s16 = sld [smem:[#allocation2 + $0x37]] }
  0xb6   :  { %v607_v51 = vstv %s7005_s3  ;;  %v160_v60 = vpop.permute.xlu1 %159  ;;  %v4626_v61 = vpop.permute.xlu0 %102  ;;  %s4880_s3 = sld [smem:[#allocation2 + $0x60]] }
  0xb8   :  { %1752 = vrot.lane.b32.xlu1 %v4465_v17, %s7020_s9  ;;  %1750 = vrot.lane.b32.xlu0 %v4443_v16, %s7020_s9  ;;  %s4817_s9 = sld [smem:[#allocation2 + $0x14]] }
  0xba   :  { %7014 = sst [smem:[#allocation40_spill]] %s4622_s16  ;;  %v215_v27 = vpop.permute.xlu0 %214  ;;  %v162_v43 = vpop.permute.xlu1 %161  ;;  %s4745_s16 = sld [smem:[#allocation2 + $0x5a]] }
  0xbb   :  { %v164_v10 = vsel %vm163_vm0, %v160_v60, %v162_v43  ;;  %v165_v25 = vsel %vm163_vm0, %v162_v43, %v160_v60 }
  0xbc   :  { %v168_v3 = vmul.f32 %v167_v18, %v164_v10  ;;  %v169_v26 = vmul.f32 %v167_v18, %v165_v25  ;;  %v184_v13 = vmul.f32 %v183_v19, %v164_v10  ;;  %v185_v9 = vmul.f32 %v183_v19, %v165_v25  ;;  %1806 = vrot.lane.b32.xlu1 %v4465_v17, %s7024_s25 }
  0xbd   :  { %v200_v11 = vmul.f32 %v199_v20, %v164_v10  ;;  %v201_v54 = vmul.f32 %v199_v20, %v165_v25  ;;  %1804 = vrot.lane.b32.xlu0 %v4443_v16, %s7024_s25  ;;  %v4683_v10 = vmul.f32 %v1002_v14, %v4396_v12  ;;  %v4686_v20 = vmul.f32 %v1006_v4, %v4396_v12  ;;  %s7030_s25 = smov 94  }
  0xbe   :  { %v172_v55 = vcombine.low %v168_v3, %v169_v26  ;;  %v188_v18 = vcombine.low %v184_v13, %v185_v9  ;;  %v217_v1 = vpop.permute.xlu1 %216  ;;  %v105_v19 = vpop.permute.xlu0 %104  ;;  %7042 = sst [smem:[#allocation42_spill]] %s4817_s9 }
  0xbf   :  { %v204_v25 = vcombine.low %v200_v11, %v201_v54  ;;  %v219_v60 = vsel %vm218_vm1, %v215_v27, %v217_v1  ;;  %v220_v3 = vsel %vm218_vm1, %v217_v1, %v215_v27  ;;  %v109_v13 = vsel %vm108_vm2, %v4626_v61, %v105_v19 }
  0xc0   :  { %v179_v26 = vrot.slane %v172_v55, %v4354_v6  ;;  %v195_v14 = vrot.slane %v188_v18, %v4354_v6  ;;  %v223_v4 = vmul.f32 %v222_v22, %v219_v60  ;;  %v224_v11 = vmul.f32 %v222_v22, %v220_v3  ;;  %1860 = vrot.lane.b32.xlu1 %v4465_v17, %s7030_s25 }
  0xc1   :  { %v211_v1 = vrot.slane %v204_v25, %v4354_v6  ;;  %v239_v27 = vmul.f32 %v238_v23, %v219_v60  ;;  %v240_v9 = vmul.f32 %v238_v23, %v220_v3  ;;  %v255_v54 = vmul.f32 %v254_v24, %v219_v60  ;;  %1858 = vrot.lane.b32.xlu0 %v4443_v16, %s7030_s25  ;;  %s4857_s25 = sld [smem:[#allocation2 + $0x17]] }
  0xc2   :  { %v227_v55 = vcombine.low %v223_v4, %v224_v11  ;;  %v256_v22 = vmul.f32 %v254_v24, %v220_v3  ;;  %v110_v17 = vsel %vm108_vm2, %v105_v19, %v4626_v61  ;;  %v113_v18 = vmul.f32 %v112_v28, %v109_v13  ;;  %v272_v25 = vpop.permute.xlu1 %271  ;;  %v270_v43 = vpop.permute.xlu0 %269 }
  0xc3   :  { %v243_v0 = vcombine.low %v239_v27, %v240_v9  ;;  %v114_v23 = vmul.f32 %v112_v28, %v110_v17  ;;  %v129_v60 = vmul.f32 %v128_v29, %v109_v13  ;;  %v130_v62 = vmul.f32 %v128_v29, %v110_v17 }
  0xc4   :  { %v234_v16 = vrot.slane %v227_v55, %v4354_v6  ;;  %v259_v4 = vcombine.low %v255_v54, %v256_v22  ;;  %v145_v24 = vmul.f32 %v144_v30, %v109_v13  ;;  %v146_v61 = vmul.f32 %v144_v30, %v110_v17 }
  0xc5   :  { %v250_v19 = vrot.slane %v243_v0, %v4354_v6  ;;  %v117_v3 = vcombine.low %v113_v18, %v114_v23  ;;  %v133_v28 = vcombine.low %v129_v60, %v130_v62  ;;  %v274_v29 = vsel %vm273_vm3, %v270_v43, %v272_v25 }
  0xc6   :  { %v266_v11 = vrot.slane %v259_v4, %v4354_v6  ;;  %v149_v27 = vcombine.low %v145_v24, %v146_v61  ;;  %v275_v13 = vsel %vm273_vm3, %v272_v25, %v270_v43  ;;  %v278_v30 = vmul.f32 %v277_v31, %v274_v29  ;;  %v327_v9 = vpop.permute.xlu1 %326  ;;  %v325_v54 = vpop.permute.xlu0 %324 }
  0xc7   :  { %v124_v0 = vrot.slane %v117_v3, %v4354_v6  ;;  %v140_v55 = vrot.slane %v133_v28, %v4354_v6  ;;  %v279_v62 = vmul.f32 %v277_v31, %v275_v13  ;;  %v294_v22 = vmul.f32 %v293_v32, %v274_v29 }
  0xc8   :  { %v156_v17 = vrot.slane %v149_v27, %v4354_v6  ;;  %v295_v18 = vmul.f32 %v293_v32, %v275_v13  ;;  %v310_v43 = vmul.f32 %v309_v33, %v274_v29  ;;  %v311_v25 = vmul.f32 %v309_v33, %v275_v13 }
  0xc9   :  { %v126_v23 = vadd.f32 %v124_v0, %v4569_v36  ;;  %v142_v60 = vadd.f32 %v140_v55, %v4572_v37  ;;  %v282_v31 = vcombine.low %v278_v30, %v279_v62  ;;  %v329_v4 = vsel %vm328_vm4, %v325_v54, %v327_v9 }
  0xca   :  { %v158_v24 = vadd.f32 %v156_v17, %v4611_v52  ;;  %v298_v61 = vcombine.low %v294_v22, %v295_v18  ;;  %v314_v32 = vcombine.low %v310_v43, %v311_v25  ;;  %v330_v33 = vsel %vm328_vm4, %v327_v9, %v325_v54  ;;  %v382_v3 = vpop.permute.xlu1 %381  ;;  %v380_v28 = vpop.permute.xlu0 %379 }
  0xcb   :  { %v181_v36 = vadd.f32 %v179_v26, %v126_v23  ;;  %v197_v37 = vadd.f32 %v195_v14, %v142_v60  ;;  %v289_v29 = vrot.slane %v282_v31, %v4354_v6  ;;  %v333_v27 = vmul.f32 %v332_v34, %v329_v4 }
  0xcc   :  { %v213_v13 = vadd.f32 %v211_v1, %v158_v24  ;;  %v305_v52 = vrot.slane %v298_v61, %v4354_v6  ;;  %v321_v30 = vrot.slane %v314_v32, %v4354_v6  ;;  %v334_v0 = vmul.f32 %v332_v34, %v330_v33 }
  0xcd   :  { %v236_v9 = vadd.f32 %v234_v16, %v181_v36  ;;  %v252_v54 = vadd.f32 %v250_v19, %v197_v37  ;;  %v349_v26 = vmul.f32 %v348_v35, %v329_v4  ;;  %v350_v14 = vmul.f32 %v348_v35, %v330_v33 }
  0xce   :  { %v268_v55 = vadd.f32 %v266_v11, %v213_v13  ;;  %v337_v62 = vcombine.low %v333_v27, %v334_v0  ;;  %v365_v1 = vmul.f32 %v364_v38, %v329_v4  ;;  %v366_v22 = vmul.f32 %v364_v38, %v330_v33  ;;  %v437_v17 = vpop.permute.xlu1 %436  ;;  %v435_v34 = vpop.permute.xlu0 %434 }
  0xcf   :  { %v291_v18 = vadd.f32 %v289_v29, %v236_v9  ;;  %v353_v16 = vcombine.low %v349_v26, %v350_v14  ;;  %v384_v19 = vsel %vm383_vm5, %v380_v28, %v382_v3  ;;  %v1010_v43 = vstv %s4745_s16  ;;  %s4849_s16 = sld [smem:[#allocation2 + $0x3a]] }
  0xd0   :  { %v307_v35 = vadd.f32 %v305_v52, %v252_v54  ;;  %v323_v11 = vadd.f32 %v321_v30, %v268_v55  ;;  %v369_v25 = vcombine.low %v365_v1, %v366_v22  ;;  %v385_v23 = vsel %vm383_vm5, %v382_v3, %v380_v28 }
  0xd1   :  { %v344_v60 = vrot.slane %v337_v62, %v4354_v6  ;;  %v388_v38 = vmul.f32 %v387_v39, %v384_v19  ;;  %v389_v31 = vmul.f32 %v387_v39, %v385_v23  ;;  %v404_v4 = vmul.f32 %v403_v40, %v384_v19 }
  0xd2   :  { %v360_v24 = vrot.slane %v353_v16, %v4354_v6  ;;  %v376_v61 = vrot.slane %v369_v25, %v4354_v6  ;;  %v405_v32 = vmul.f32 %v403_v40, %v385_v23  ;;  %v420_v33 = vmul.f32 %v419_v41, %v384_v19  ;;  %v492_v3 = vpop.permute.xlu1 %491  ;;  %v490_v28 = vpop.permute.xlu0 %489 }
  0xd3   :  { %v392_v36 = vcombine.low %v388_v38, %v389_v31  ;;  %v421_v39 = vmul.f32 %v419_v41, %v385_v23  ;;  %v439_v37 = vsel %vm438_vm6, %v435_v34, %v437_v17  ;;  %v4801_v29 = vmul.f32 %v1010_v43, %v4396_v12 }
  0xd4   :  { %v378_v27 = vadd.f32 %v376_v61, %v323_v11  ;;  %v408_v13 = vcombine.low %v404_v4, %v405_v32  ;;  %v440_v40 = vsel %vm438_vm6, %v437_v17, %v435_v34  ;;  %v443_v52 = vmul.f32 %v442_v42, %v439_v37 }
  0xd5   :  { %v346_v30 = vadd.f32 %v344_v60, %v291_v18  ;;  %v424_v0 = vcombine.low %v420_v33, %v421_v39  ;;  %v444_v9 = vmul.f32 %v442_v42, %v440_v40  ;;  %v459_v54 = vmul.f32 %v458_v44, %v439_v37  ;;  %7048 = sst [smem:[#allocation18_spill]] %s4849_s16 }
  0xd6   :  { %v362_v41 = vadd.f32 %v360_v24, %v307_v35  ;;  %v460_v26 = vmul.f32 %v458_v44, %v440_v40  ;;  %v475_v14 = vmul.f32 %v474_v45, %v439_v37  ;;  %v476_v12 = vmul.f32 %v474_v45, %v440_v40  ;;  %v571_v55 = vpop.permute.xlu1 %570  ;;  %v569_v62 = vpop.permute.xlu0 %568 }
  0xd7   :  { %v399_v1 = vrot.slane %v392_v36, %v4354_v6  ;;  %v431_v42 = vrot.slane %v424_v0, %v4354_v6  ;;  %v447_v22 = vcombine.low %v443_v52, %v444_v9  ;;  %v494_v44 = vsel %vm493_vm7, %v490_v28, %v492_v3 }
  0xd8   :  { %v415_v45 = vrot.slane %v408_v13, %v4354_v6  ;;  %v463_v17 = vcombine.low %v459_v54, %v460_v26  ;;  %v479_v34 = vcombine.low %v475_v14, %v476_v12  ;;  %v495_v18 = vsel %vm493_vm7, %v492_v3, %v490_v28 }
  0xd9   :  { %v433_v16 = vadd.f32 %v431_v42, %v378_v27  ;;  %v454_v19 = vrot.slane %v447_v22, %v4354_v6  ;;  %v498_v43 = vmul.f32 %v497_v46, %v494_v44  ;;  %v499_v35 = vmul.f32 %v497_v46, %v495_v18 }
  0xda   :  { %v470_v11 = vrot.slane %v463_v17, %v4354_v6  ;;  %v486_v25 = vrot.slane %v479_v34, %v4354_v6  ;;  %v514_v23 = vmul.f32 %v513_v47, %v494_v44  ;;  %v515_v60 = vmul.f32 %v513_v47, %v495_v18  ;;  %v625_v38 = vpop.permute.xlu1 %624  ;;  %v623_v31 = vpop.permute.xlu0 %622 }
  0xdb   :  { %v401_v4 = vadd.f32 %v399_v1, %v346_v30  ;;  %v502_v24 = vcombine.low %v498_v43, %v499_v35  ;;  %v530_v46 = vmul.f32 %v529_v48, %v494_v44  ;;  %v531_v61 = vmul.f32 %v529_v48, %v495_v18 }
  0xdc   :  { %v417_v32 = vadd.f32 %v415_v45, %v362_v41  ;;  %v488_v47 = vadd.f32 %v486_v25, %v433_v16  ;;  %v518_v33 = vcombine.low %v514_v23, %v515_v60  ;;  %v572_v3 = vsel %vm108_vm2, %v569_v62, %v571_v55 }
  0xdd   :  { %v456_v28 = vadd.f32 %v454_v19, %v401_v4  ;;  %v509_v48 = vrot.slane %v502_v24, %v4354_v6  ;;  %v534_v36 = vcombine.low %v530_v46, %v531_v61  ;;  %v573_v39 = vsel %vm108_vm2, %v571_v55, %v569_v62 }
  0xde   :  { %v472_v37 = vadd.f32 %v470_v11, %v417_v32  ;;  %v525_v27 = vrot.slane %v518_v33, %v4354_v6  ;;  %v679_v13 = vpop.permute.xlu1 %678  ;;  %v677_v40 = vpop.permute.xlu0 %676  ;;  %v1085_v52 = vstv %s4817_s9  ;;  %v1101_v30 = vstv %s4819_s12  ;;  %s4887_s12 = sld [smem:[#allocation2 + $0x3d]]  ;;  %s5137_s9 = sld [smem:[#allocation2 + $0x1e]] }
  0xdf   :  { %v511_v0 = vadd.f32 %v509_v48, %v456_v28  ;;  %v541_v9 = vrot.slane %v534_v36, %v4354_v6  ;;  %v608_v54 = vmul.f32 %v607_v51, %v572_v3  ;;  %v609_v41 = vmul.f32 %v607_v51, %v573_v39 }
  0xe0   :  { %v527_v26 = vadd.f32 %v525_v27, %v472_v37  ;;  %v1117_v14 = vstv %s4825_s29  ;;  %v1139_v12 = vstv %s4830_s13  ;;  %v1155_v55 = vstv %s4832_s0  ;;  %s4896_s0 = sld [smem:[#allocation2 + $0x1a]]  ;;  %s4905_s13 = sld [smem:[#allocation2 + $0x3e]] }
  0xe1   :  { %v543_v62 = vadd.f32 %v541_v9, %v488_v47  ;;  %v4890_v1 = vadd.f32 %v4614_v53, %v511_v0  ;;  %v612_v51 = vcombine.low %v608_v54, %v609_v41  ;;  %v626_v42 = vsel %vm163_vm0, %v623_v31, %v625_v38  ;;  %s5655_s29 = sld [smem:[#allocation7 + $0x1b]] }
  0xe2   :  { %v4899_v22 = vadd.f32 %v4641_v7, %v527_v26  ;;  %v627_v44 = vsel %vm163_vm0, %v625_v38, %v623_v31  ;;  %v733_v53 = vpop.permute.xlu1 %732  ;;  %v731_v45 = vpop.permute.xlu0 %730  ;;  %v1171_v17 = vstv %s4839_s2  ;;  %v1193_v34 = vstv %s4847_s1  ;;  %s4916_s2 = sld [smem:[#allocation2 + $0x62]]  ;;  %s5493_s1 = sld [smem:[#allocation2 + $0x23]] }
  0xe3   :  { %v556_v18 = vadd.f32 %v4644_v8, %v543_v62  ;;  %v619_v16 = vrot.slane %v612_v51, %v4354_v6  ;;  %v1209_v19 = vstv %s4849_s16  ;;  %v1225_v7 = vstv %s4855_s10  ;;  %s4923_s16 = sld [smem:[#allocation2 + $0x1c]]  ;;  %s5220_s10 = sld [smem:[#allocation2 + $0x21]] }
  0xe4   :  { %v662_v43 = vmul.f32 %v661_v58, %v626_v42  ;;  %v1247_v35 = vstv %s4857_s25  ;;  %v1279_v25 = vstv %s4863_s23  ;;  %v663_v60 = vmul.f32 %v661_v58, %v627_v44  ;;  %s7105_s25 = sld [smem:[#allocation19_spill]]  ;;  %s5665_s23 = sld [smem:[#allocation7 + $0x3f]] }
  0xe5   :  { %v621_v23 = vadd.f32 %v619_v16, %v556_v18  ;;  %v680_v8 = vsel %vm218_vm1, %v677_v40, %v679_v13  ;;  %v1301_v38 = vstv %s4868_s20  ;;  %v576_v31 = vmul.f32 %v575_v49, %v572_v3  ;;  %s5541_s20 = sld [smem:[#allocation2 + $0x44]] }
  0xe6   :  { %v577_v4 = vmul.f32 %v575_v49, %v573_v39  ;;  %v681_v58 = vsel %vm218_vm1, %v679_v13, %v677_v40  ;;  %v787_v24 = vpop.permute.xlu1 %786  ;;  %v785_v46 = vpop.permute.xlu0 %784  ;;  %v592_v32 = vmul.f32 %v591_v50, %v572_v3  ;;  %v593_v47 = vmul.f32 %v591_v50, %v573_v39 }
  0xe7   :  { %v666_v33 = vcombine.low %v662_v43, %v663_v60  ;;  %v1333_v28 = vstv %s4880_s3  ;;  %v716_v49 = vmul.f32 %v715_v63, %v680_v8  ;;  %v717_v48 = vmul.f32 %v715_v63, %v681_v58  ;;  %s5671_s3 = sld [smem:[#allocation7 + $0x2d]] }
  0xe8   :  { %v1355_v36 = vstv %s4885_s26  ;;  %v734_v3 = vsel %vm273_vm3, %v731_v45, %v733_v53  ;;  %v1387_v50 = vstv %s4894_s17  ;;  %v580_v13 = vcombine.low %v576_v31, %v577_v4  ;;  %s5371_s26 = sld [smem:[#allocation2 + $0x22]]  ;;  %s5555_s17 = sld [smem:[#allocation2 + $0x45]] }
  0xe9   :  { %v673_v27 = vrot.slane %v666_v33, %v4354_v6  ;;  %v720_v40 = vcombine.low %v716_v49, %v717_v48  ;;  %v735_v63 = vsel %vm273_vm3, %v733_v53, %v731_v45  ;;  %v596_v41 = vcombine.low %v592_v32, %v593_v47 }
  0xea   :  { %v841_v0 = vpop.permute.xlu1 %840  ;;  %v839_v9 = vpop.permute.xlu0 %838  ;;  %v630_v26 = vmul.f32 %v629_v56, %v626_v42  ;;  %v631_v62 = vmul.f32 %v629_v56, %v627_v44  ;;  %v646_v18 = vmul.f32 %v645_v57, %v626_v42  ;;  %v647_v16 = vmul.f32 %v645_v57, %v627_v44 }
  0xeb   :  { %v675_v51 = vadd.f32 %v673_v27, %v621_v23  ;;  %v727_v43 = vrot.slane %v720_v40, %v4354_v6  ;;  %v770_v60 = vmul.f32 %v769_v2, %v734_v3  ;;  %v771_v53 = vmul.f32 %v769_v2, %v735_v63 }
  0xec   :  { %v1441_v45 = vstv %s4916_s2  ;;  %v4975_v57 = vsel %vm328_vm4, %v785_v46, %v787_v24  ;;  %v4979_v42 = vsel %vm328_vm4, %v787_v24, %v785_v46  ;;  %v587_v32 = vrot.slane %v580_v13, %v4354_v6  ;;  %s5351_s2 = sld [smem:[#allocation2 + $0x69]] }
  0xed   :  { %v729_v23 = vadd.f32 %v727_v43, %v675_v51  ;;  %v603_v47 = vrot.slane %v596_v41, %v4354_v6  ;;  %v634_v33 = vcombine.low %v630_v26, %v631_v62  ;;  %v774_v49 = vcombine.low %v770_v60, %v771_v53 }
  0xee   :  { %v895_v44 = vpop.permute.xlu1 %894  ;;  %v893_v2 = vpop.permute.xlu0 %892  ;;  %v650_v48 = vcombine.low %v646_v18, %v647_v16  ;;  %v684_v27 = vmul.f32 %v683_v59, %v680_v8  ;;  %v685_v24 = vmul.f32 %v683_v59, %v681_v58  ;;  %v824_v46 = vmul.f32 %v823_v5, %v4975_v57 }
  0xef   :  { %v7054_v40 = vstv %s4515_s28  ;;  %v781_v41 = vrot.slane %v774_v49, %v4354_v6  ;;  %v825_v26 = vmul.f32 %v823_v5, %v4979_v42  ;;  %v7056_v62 = vstv %s4522_s15  ;;  %s7063_s28 = sld [smem:[#allocation45_spill]]  ;;  %s7076_s15 = sld [smem:[#allocation41_spill]] }
  0xf0   :  { %v700_v51 = vmul.f32 %v7054_v40, %v680_v8  ;;  %v7055_v43 = vmov %v7054_v40  ;;  %v738_v18 = vmul.f32 %v7056_v62, %v734_v3  ;;  %v7057_v16 = vmov %v7056_v62 }
  0xf1   :  { %v701_v13 = vmul.f32 %v7055_v43, %v681_v58  ;;  %v739_v59 = vmul.f32 %v7057_v16, %v735_v63  ;;  %v842_v60 = vsel %vm383_vm5, %v839_v9, %v841_v0  ;;  %v843_v8 = vsel %vm383_vm5, %v841_v0, %v839_v9 }
  0xf2   :  { %v949_v53 = vpop.permute.xlu1 %948  ;;  %v947_v58 = vpop.permute.xlu0 %946  ;;  %v7058_v40 = vstv %s4524_s6  ;;  %v783_v54 = vadd.f32 %v781_v41, %v729_v23  ;;  %v828_v5 = vcombine.low %v824_v46, %v825_v26  ;;  %v641_v62 = vrot.slane %v634_v33, %v4354_v6  ;;  %s5027_s6 = sld [smem:[#allocation2 + $0x63]] }
  0xf3   :  { %v754_v43 = vmul.f32 %v7058_v40, %v734_v3  ;;  %v7059_v49 = vmov %v7058_v40  ;;  %v657_v37 = vrot.slane %v650_v48, %v4354_v6  ;;  %v688_v16 = vcombine.low %v684_v27, %v685_v24 }
  0xf4   :  { %v755_v56 = vmul.f32 %v7059_v49, %v735_v63  ;;  %v1458_v31 = vstv %s4966_s27  ;;  %v704_v61 = vcombine.low %v700_v51, %v701_v13  ;;  %v835_v39 = vrot.slane %v828_v5, %v4354_v6  ;;  %s5124_s27 = sld [smem:[#allocation2 + $0x65]] }
  0xf5   :  { %v7060_v11 = vstv %s7016_s19  ;;  %v589_v3 = vadd.f32 %v587_v32, %v4890_v1  ;;  %v605_v63 = vadd.f32 %v603_v47, %v4899_v22  ;;  %v742_v23 = vcombine.low %v738_v18, %v739_v59  ;;  %s7084_s19 = sld [smem:[#allocation49_spill]] }
  0xf6   :  { %v878_v4 = vmul.f32 %v7060_v11, %v842_v60  ;;  %v7061_v0 = vmov %v7060_v11  ;;  %v896_v33 = vsel %vm438_vm6, %v893_v2, %v895_v44  ;;  %v1027_v48 = vpop.permute.xlu1 %1026  ;;  %v1025_v27 = vpop.permute.xlu0 %1024  ;;  %v758_v24 = vcombine.low %v754_v43, %v755_v56 }
  0xf7   :  { %v879_v9 = vmul.f32 %v7061_v0, %v843_v8  ;;  %v837_v46 = vadd.f32 %v835_v39, %v783_v54  ;;  %v897_v51 = vsel %vm438_vm6, %v895_v44, %v893_v2  ;;  %v643_v1 = vadd.f32 %v641_v62, %v589_v3 }
  0xf8   :  { %v659_v22 = vadd.f32 %v657_v37, %v605_v63  ;;  %v695_v32 = vrot.slane %v688_v16, %v4354_v6  ;;  %v1462_v47 = vstv %s4991_s7  ;;  %v711_v13 = vrot.slane %v704_v61, %v4354_v6  ;;  %s7122_s7 = smov 127  }
  0xf9   :  { %v882_v11 = vcombine.low %v878_v4, %v879_v9  ;;  %v7064_v56 = vstv %s7019_s11  ;;  %v749_v2 = vrot.slane %v742_v23, %v4354_v6  ;;  %v7066_v37 = vstv %s7062_s5  ;;  %s5186_s11 = sld [smem:[#allocation2 + $0x20]] }
  0xfa   :  { %v932_v39 = vmul.f32 %v7064_v56, %v896_v33  ;;  %v7065_v54 = vmov %v7064_v56  ;;  %v792_v4 = vmul.f32 %v7066_v37, %v4975_v57  ;;  %v7067_v26 = vmov %v7066_v37  ;;  %v1081_v59 = vpop.permute.xlu1 %1080  ;;  %v1079_v40 = vpop.permute.xlu0 %1078  ;;  %s5201_s5 = sld [smem:[#allocation2 + $0x68]] }
  0xfb   :  { %v889_v41 = vrot.slane %v882_v11, %v4354_v6  ;;  %v933_v44 = vmul.f32 %v7065_v54, %v897_v51  ;;  %v793_v18 = vmul.f32 %v7067_v26, %v4979_v42  ;;  %v950_v61 = vsel %vm493_vm7, %v947_v58, %v949_v53 }
  0xfc   :  { %v765_v43 = vrot.slane %v758_v24, %v4354_v6  ;;  %v951_v62 = vsel %vm493_vm7, %v949_v53, %v947_v58  ;;  %v7068_v16 = vstv %s7063_s28  ;;  %v7070_v63 = vstv %s4551_s22  ;;  %s7079_s22 = sld [smem:[#allocation48_spill]]  ;;  %s7093_s28 = sld [smem:[#allocation63_spill]] }
  0xfd   :  { %v891_v49 = vadd.f32 %v889_v41, %v837_v46  ;;  %v936_v5 = vcombine.low %v932_v39, %v933_v44  ;;  %v808_v0 = vmul.f32 %v7068_v16, %v4975_v57  ;;  %v7069_v9 = vmov %v7068_v16 }
  0xfe   :  { %v809_v3 = vmul.f32 %v7069_v9, %v4979_v42  ;;  %v846_v23 = vmul.f32 %v7070_v63, %v842_v60  ;;  %v7071_v11 = vmov %v7070_v63  ;;  %v7072_v54 = vstv %s4553_s21  ;;  %v1135_v16 = vpop.permute.xlu1 %1134  ;;  %v1133_v9 = vpop.permute.xlu0 %1132  ;;  %s7078_s21 = sld [smem:[#allocation33_spill]] }
  0xff   :  { %v847_v56 = vmul.f32 %v7071_v11, %v843_v8  ;;  %v862_v37 = vmul.f32 %v7072_v54, %v842_v60  ;;  %v7073_v26 = vmov %v7072_v54  ;;  %v943_v46 = vrot.slane %v936_v5, %v4354_v6 }
 0x100   :  { %v863_v24 = vmul.f32 %v7073_v26, %v843_v8  ;;  %v7074_v41 = vstv %s4592_s24  ;;  %v697_v53 = vadd.f32 %v695_v32, %v643_v1  ;;  %v713_v58 = vadd.f32 %v711_v13, %v659_v22  ;;  %s5093_s24 = sld [smem:[#allocation2 + $0x41]] }
 0x101   :  { %v986_v39 = vmul.f32 %v7074_v41, %v950_v61  ;;  %v7075_v44 = vmov %v7074_v41  ;;  %v5070_v42 = vsel %vm108_vm2, %v1025_v27, %v1027_v48  ;;  %v945_v60 = vadd.f32 %v943_v46, %v891_v49 }
 0x102   :  { %v987_v57 = vmul.f32 %v7075_v44, %v951_v62  ;;  %v5074_v8 = vsel %vm108_vm2, %v1027_v48, %v1025_v27  ;;  %v5077_v1 = vmul.f32 %v1458_v31, %v4425_v15  ;;  %v1466_v22 = vstv %s5027_s6  ;;  %s5661_s6 = sld [smem:[#allocation7 + $0x9]] }
 0x103   :  { %v751_v32 = vadd.f32 %v749_v2, %v697_v53  ;;  %v767_v13 = vadd.f32 %v765_v43, %v713_v58  ;;  %v796_v5 = vcombine.low %v792_v4, %v793_v18  ;;  %v812_v11 = vcombine.low %v808_v0, %v809_v3  ;;  %v1189_v18 = vpop.permute.xlu1 %1188  ;;  %v1187_v0 = vpop.permute.xlu0 %1186 }
 0x104   :  { %v990_v63 = vcombine.low %v986_v39, %v987_v57  ;;  %v850_v54 = vcombine.low %v846_v23, %v847_v56  ;;  %v866_v49 = vcombine.low %v862_v37, %v863_v24  ;;  %v7080_v26 = vstv %s7076_s15  ;;  %s5148_s15 = sld [smem:[#allocation2 + $0x66]] }
 0x105   :  { %v1064_v46 = vmul.f32 %v7080_v26, %v5070_v42  ;;  %v7081_v48 = vstv %s7077_s18  ;;  %v7083_v43 = vmov %v7080_v26  ;;  %v7085_v3 = vstv %s7078_s21  ;;  %s7094_s18 = sld [smem:[#allocation39_spill]]  ;;  %s7095_s21 = sld [smem:[#allocation40_spill]] }
 0x106   :  { %v900_v15 = vmul.f32 %v7081_v48, %v896_v33  ;;  %v7082_v31 = vmov %v7081_v48  ;;  %v997_v2 = vrot.slane %v990_v63, %v4354_v6  ;;  %v1065_v4 = vmul.f32 %v7083_v43, %v5074_v8 }
 0x107   :  { %v901_v27 = vmul.f32 %v7082_v31, %v897_v51  ;;  %v916_v23 = vmul.f32 %v7085_v3, %v896_v33  ;;  %v7086_v56 = vmov %v7085_v3  ;;  %v7087_v24 = vstv %s7079_s22  ;;  %s5165_s22 = sld [smem:[#allocation2 + $0x1f]] }
 0x108   :  { %v917_v37 = vmul.f32 %v7086_v56, %v897_v51  ;;  %v954_v41 = vmul.f32 %v7087_v24, %v950_v61  ;;  %v7088_v39 = vmov %v7087_v24  ;;  %v803_v58 = vrot.slane %v796_v5, %v4354_v6 }
 0x109   :  { %v955_v53 = vmul.f32 %v7088_v39, %v951_v62  ;;  %v999_v44 = vadd.f32 %v997_v2, %v945_v60  ;;  %v1068_v57 = vcombine.low %v1064_v46, %v1065_v4  ;;  %v5106_v63 = vsel %vm163_vm0, %v1079_v40, %v1081_v59  ;;  %v1243_v4 = vpop.permute.xlu1 %1242 }
 0x10a   :  { %v819_v26 = vrot.slane %v812_v11, %v4354_v6  ;;  %v857_v33 = vrot.slane %v850_v54, %v4354_v6  ;;  %v873_v51 = vrot.slane %v866_v49, %v4354_v6  ;;  %v5113_v48 = vsel %vm163_vm0, %v1081_v59, %v1079_v40  ;;  %v1241_v11 = vpop.permute.xlu0 %1240 }
 0x10b   :  { %v7090_v31 = vstv %s7084_s19  ;;  %v1012_v46 = vadd.f32 %v4801_v29, %v999_v44  ;;  %v1075_v43 = vrot.slane %v1068_v57, %v4354_v6  ;;  %v904_v3 = vcombine.low %v900_v15, %v901_v27  ;;  %v5142_v27 = vld [vmem:[%s7093_s28 + $0xc] sm:$0xf]  ;;  %s5177_s19 = sld [smem:[#allocation2 + $0x67]]  ;;  %s5669_s28 = sld [smem:[#allocation7 + $0x12]] }
 0x10c   :  { %v970_v5 = vmul.f32 %v7090_v31, %v950_v61  ;;  %v7091_v60 = vmov %v7090_v31  ;;  %v920_v56 = vcombine.low %v916_v23, %v917_v37  ;;  %v958_v54 = vcombine.low %v954_v41, %v955_v53 }
 0x10d   :  { %v971_v2 = vmul.f32 %v7091_v60, %v951_v62  ;;  %v1118_v49 = vmul.f32 %v1117_v14, %v5106_v63  ;;  %v1077_v59 = vadd.f32 %v1075_v43, %v1012_v46  ;;  %v1119_v61 = vmul.f32 %v1117_v14, %v5113_v48 }
 0x10e   :  { %v5131_v29 = vsel %vm218_vm1, %v1133_v9, %v1135_v16  ;;  %v5135_v40 = vsel %vm218_vm1, %v1135_v16, %v1133_v9  ;;  %v805_v62 = vadd.f32 %v803_v58, %v751_v32  ;;  %v821_v15 = vadd.f32 %v819_v26, %v767_v13  ;;  %v1297_v32 = vpop.permute.xlu1 %1296  ;;  %v1295_v13 = vpop.permute.xlu0 %1294 }
 0x10f   :  { %v5145_v14 = vmul.f32 %v5142_v27, %v1466_v22  ;;  %v1541_v23 = vstv %s5083_s4  ;;  %v974_v37 = vcombine.low %v970_v5, %v971_v2  ;;  %v1122_v16 = vcombine.low %v1118_v49, %v1119_v61  ;;  %s7123_s4 = smov 126  }
 0x110   :  { %v1172_v9 = vmul.f32 %v1171_v17, %v5131_v29  ;;  %v1557_v24 = vstv %s5093_s24  ;;  %v859_v41 = vadd.f32 %v857_v33, %v805_v62  ;;  %v875_v39 = vadd.f32 %v873_v51, %v821_v15  ;;  %s3863_s24 = sld [smem:[#allocation5 + $0x1]] }
 0x111   :  { %v911_v22 = vrot.slane %v904_v3, %v4354_v6  ;;  %v1173_v53 = vmul.f32 %v1171_v17, %v5135_v40  ;;  %v927_v58 = vrot.slane %v920_v56, %v4354_v6  ;;  %v965_v44 = vrot.slane %v958_v54, %v4354_v6 }
 0x112   :  { %v1129_v57 = vrot.slane %v1122_v16, %v4354_v6  ;;  %v5163_v26 = vsel %vm273_vm3, %v1187_v0, %v1189_v18  ;;  %v7096_v33 = vstv %s7094_s18  ;;  %v5175_v60 = vsel %vm273_vm3, %v1189_v18, %v1187_v0  ;;  %v1351_v49 = vpop.permute.xlu1 %1350  ;;  %v1349_v61 = vpop.permute.xlu0 %1348  ;;  %s7127_s18 = smov 96  }
 0x113   :  { %v1032_v51 = vmul.f32 %v7096_v33, %v5070_v42  ;;  %v7097_v31 = vmov %v7096_v33  ;;  %v1176_v5 = vcombine.low %v1172_v9, %v1173_v53  ;;  %v981_v2 = vrot.slane %v974_v37, %v4354_v6 }
 0x114   :  { %v1033_v17 = vmul.f32 %v7097_v31, %v5074_v8  ;;  %v7098_v46 = vstv %s7095_s21  ;;  %v1131_v54 = vadd.f32 %v1129_v57, %v1077_v59  ;;  %v913_v62 = vadd.f32 %v911_v22, %v859_v41  ;;  %s7128_s21 = smov 95  }
 0x115   :  { %v1048_v43 = vmul.f32 %v7098_v46, %v5070_v42  ;;  %v7099_v3 = vmov %v7098_v46  ;;  %v1183_v18 = vrot.slane %v1176_v5, %v4354_v6  ;;  %v1226_v0 = vmul.f32 %v1225_v7, %v5163_v26 }
 0x116   :  { %v1049_v56 = vmul.f32 %v7099_v3, %v5074_v8  ;;  %v1573_v15 = vstv %s5124_s27  ;;  %v929_v37 = vadd.f32 %v927_v58, %v875_v39  ;;  %v1227_v42 = vmul.f32 %v1225_v7, %v5175_v60  ;;  %v1405_v57 = vpop.permute.xlu1 %1404  ;;  %v1403_v33 = vpop.permute.xlu0 %1402  ;;  %s7124_s27 = smov 112  }
 0x117   :  { %v5198_v8 = vsel %vm328_vm4, %v1241_v11, %v1243_v4  ;;  %v1595_v59 = vstv %s5137_s9  ;;  %v967_v16 = vadd.f32 %v965_v44, %v913_v62  ;;  %v1185_v9 = vadd.f32 %v1183_v18, %v1131_v54  ;;  %s7125_s9 = smov 111  }
 0x118   :  { %v5205_v41 = vsel %vm328_vm4, %v1243_v4, %v1241_v11  ;;  %v1627_v39 = vstv %s5148_s15  ;;  %v983_v7 = vadd.f32 %v981_v2, %v929_v37  ;;  %v1036_v22 = vcombine.low %v1032_v51, %v1033_v17  ;;  %s7126_s15 = smov 110  }
 0x119   :  { %v1052_v53 = vcombine.low %v1048_v43, %v1049_v56  ;;  %v1230_v58 = vcombine.low %v1226_v0, %v1227_v42  ;;  %v1086_v31 = vmul.f32 %v1085_v52, %v5106_v63  ;;  %v1087_v44 = vmul.f32 %v1085_v52, %v5113_v48 }
 0x11a   :  { %v1280_v5 = vmul.f32 %v1279_v25, %v5198_v8  ;;  %v1281_v4 = vmul.f32 %v1279_v25, %v5205_v41  ;;  %v1102_v11 = vmul.f32 %v1101_v30, %v5106_v63  ;;  %v1103_v51 = vmul.f32 %v1101_v30, %v5113_v48  ;;  %v1483_v3 = vpop.permute.xlu1 %1482  ;;  %v1481_v56 = vpop.permute.xlu0 %1480 }
 0x11b   :  { %v1237_v17 = vrot.slane %v1230_v58, %v4354_v6  ;;  %v1649_v2 = vstv %s5165_s22  ;;  %v5232_v46 = vsel %vm383_vm5, %v1295_v13, %v1297_v32  ;;  %v5236_v25 = vsel %vm383_vm5, %v1297_v32, %v1295_v13  ;;  %s7129_s22 = smov 94  }
 0x11c   :  { %v1284_v52 = vcombine.low %v1280_v5, %v1281_v4  ;;  %v1681_v63 = vstv %s5177_s19  ;;  %v1004_v30 = vadd.f32 %v4683_v10, %v967_v16  ;;  %v1043_v48 = vrot.slane %v1036_v22, %v4354_v6  ;;  %s3864_s19 = sld [smem:[#allocation5 + $0x2]] }
 0x11d   :  { %v1239_v43 = vadd.f32 %v1237_v17, %v1185_v9  ;;  %v1703_v54 = vstv %s5186_s11  ;;  %v1008_v62 = vadd.f32 %v4686_v20, %v983_v7  ;;  %v1059_v18 = vrot.slane %v1052_v53, %v4354_v6  ;;  %s5653_s11 = sld [smem:[#allocation7]] }
 0x11e   :  { %v1090_v0 = vcombine.low %v1086_v31, %v1087_v44  ;;  %v1291_v32 = vrot.slane %v1284_v52, %v4354_v6  ;;  %v1106_v13 = vcombine.low %v1102_v11, %v1103_v51  ;;  %v1334_v37 = vmul.f32 %v1333_v28, %v5232_v46  ;;  %v1537_v5 = vpop.permute.xlu1 %1536  ;;  %v1535_v4 = vpop.permute.xlu0 %1534 }
 0x11f   :  { %v1335_v10 = vmul.f32 %v1333_v28, %v5236_v25  ;;  %v1735_v42 = vstv %s5201_s5  ;;  %v1140_v16 = vmul.f32 %v1139_v12, %v5131_v29  ;;  %v1141_v20 = vmul.f32 %v1139_v12, %v5135_v40  ;;  %s5659_s5 = sld [smem:[#allocation7 + $0x36]] }
 0x120   :  { %v1293_v9 = vadd.f32 %v1291_v32, %v1239_v43  ;;  %v5260_v7 = vsel %vm438_vm6, %v1349_v61, %v1351_v49  ;;  %v1156_v22 = vmul.f32 %v1155_v55, %v5131_v29  ;;  %v1157_v28 = vmul.f32 %v1155_v55, %v5135_v40 }
 0x121   :  { %v1338_v53 = vcombine.low %v1334_v37, %v1335_v10  ;;  %v5270_v58 = vsel %vm438_vm6, %v1351_v49, %v1349_v61  ;;  %v1045_v12 = vadd.f32 %v1043_v48, %v1004_v30  ;;  %v1061_v31 = vadd.f32 %v1059_v18, %v1008_v62 }
 0x122   :  { %v1097_v44 = vrot.slane %v1090_v0, %v4354_v6  ;;  %v1757_v11 = vstv %s5220_s10  ;;  %v1113_v29 = vrot.slane %v1106_v13, %v4354_v6  ;;  %v1388_v40 = vmul.f32 %v1387_v50, %v5260_v7  ;;  %v1589_v10 = vpop.permute.xlu0 %1588  ;;  %s5663_s10 = sld [smem:[#allocation7 + $0x24]] }
 0x123   :  { %v1345_v55 = vrot.slane %v1338_v53, %v4354_v6  ;;  %v1389_v49 = vmul.f32 %v1387_v50, %v5270_v58  ;;  %v1144_v61 = vcombine.low %v1140_v16, %v1141_v20  ;;  %v1194_v51 = vmul.f32 %v1193_v34, %v5163_v26 }
 0x124   :  { %v1195_v17 = vmul.f32 %v1193_v34, %v5175_v60  ;;  %v5290_v52 = vsel %vm493_vm7, %v1403_v33, %v1405_v57  ;;  %v1160_v30 = vcombine.low %v1156_v22, %v1157_v28  ;;  %v5294_v50 = vsel %vm493_vm7, %v1405_v57, %v1403_v33 }
 0x125   :  { %v1347_v48 = vadd.f32 %v1345_v55, %v1293_v9  ;;  %v1392_v43 = vcombine.low %v1388_v40, %v1389_v49  ;;  %v1210_v62 = vmul.f32 %v1209_v19, %v5163_v26  ;;  %v1211_v18 = vmul.f32 %v1209_v19, %v5175_v60  ;;  %v1591_v60 = vpop.permute.xlu1 %1590 }
 0x126   :  { %v1248_v34 = vmul.f32 %v1247_v35, %v5198_v8  ;;  %v1249_v0 = vmul.f32 %v1247_v35, %v5205_v41  ;;  %v1099_v32 = vadd.f32 %v1097_v44, %v1045_v12  ;;  %v1442_v37 = vmul.f32 %v1441_v45, %v5290_v52 }
 0x127   :  { %v1399_v13 = vrot.slane %v1392_v43, %v4354_v6  ;;  %v1443_v57 = vmul.f32 %v1441_v45, %v5294_v50  ;;  %v1115_v26 = vadd.f32 %v1113_v29, %v1061_v31  ;;  %v1198_v33 = vcombine.low %v1194_v51, %v1195_v17 }
 0x128   :  { %v1302_v19 = vmul.f32 %v1301_v38, %v5232_v46  ;;  %v5320_v35 = vsel %vm108_vm2, %v1481_v56, %v1483_v3  ;;  %v1303_v16 = vmul.f32 %v1301_v38, %v5236_v25  ;;  %v5327_v9 = vsel %vm108_vm2, %v1483_v3, %v1481_v56 }
 0x129   :  { %v1401_v45 = vadd.f32 %v1399_v13, %v1347_v48  ;;  %v1446_v20 = vcombine.low %v1442_v37, %v1443_v57  ;;  %v1151_v22 = vrot.slane %v1144_v61, %v4354_v6  ;;  %v1167_v28 = vrot.slane %v1160_v30, %v4354_v6  ;;  %v1645_v13 = vpop.permute.xlu1 %1644  ;;  %v1643_v37 = vpop.permute.xlu0 %1642 }
 0x12a   :  { %v1214_v53 = vcombine.low %v1210_v62, %v1211_v18  ;;  %v1252_v12 = vcombine.low %v1248_v34, %v1249_v0  ;;  %v1356_v31 = vmul.f32 %v1355_v36, %v5260_v7  ;;  %v1357_v38 = vmul.f32 %v1355_v36, %v5270_v58 }
 0x12b   :  { %v1453_v44 = vrot.slane %v1446_v20, %v4354_v6  ;;  %v7106_v29 = vstv %s4934_s30  ;;  %v1205_v3 = vrot.slane %v1198_v33, %v4354_v6  ;;  %v7107_v56 = vstv %s7105_s25  ;;  %s5572_s30 = sld [smem:[#allocation2 + $0x47]]  ;;  %s5673_s25 = sld [smem:[#allocation7 + $0x1]] }
 0x12c   :  { %v1520_v55 = vmul.f32 %v7106_v29, %v5320_v35  ;;  %v1264_v40 = vmul.f32 %v7107_v56, %v5198_v8  ;;  %v7108_v49 = vmov %v7107_v56  ;;  %v7109_v51 = vmov %v7106_v29 }
 0x12d   :  { %v1265_v61 = vmul.f32 %v7108_v49, %v5205_v41  ;;  %v1521_v17 = vmul.f32 %v7109_v51, %v5327_v9  ;;  %v1306_v30 = vcombine.low %v1302_v19, %v1303_v16  ;;  %v7110_v36 = vstv %s4896_s0  ;;  %v1699_v49 = vpop.permute.xlu1 %1698  ;;  %s5477_s0 = sld [smem:[#allocation2 + $0x42]] }
 0x12e   :  { %v1410_v48 = vmul.f32 %v7110_v36, %v5290_v52  ;;  %v7111_v43 = vmov %v7110_v36  ;;  %v1455_v18 = vadd.f32 %v1453_v44, %v1401_v45  ;;  %v1153_v34 = vadd.f32 %v1151_v22, %v1099_v32 }
 0x12f   :  { %v1411_v62 = vmul.f32 %v7111_v43, %v5294_v50  ;;  %v1524_v0 = vcombine.low %v1520_v55, %v1521_v17  ;;  %v5361_v8 = vsel %vm163_vm0, %v1535_v4, %v1537_v5  ;;  %v5365_v41 = vsel %vm163_vm0, %v1537_v5, %v1535_v4 }
 0x130   :  { %v1169_v57 = vadd.f32 %v1167_v28, %v1115_v26  ;;  %v1259_v33 = vrot.slane %v1252_v12, %v4354_v6  ;;  %v1360_v19 = vcombine.low %v1356_v31, %v1357_v38  ;;  %v1468_v32 = vadd.f32 %v5145_v14, %v1455_v18 }
 0x131   :  { %v1207_v16 = vadd.f32 %v1205_v3, %v1153_v34  ;;  %v1221_v45 = vrot.slane %v1214_v53, %v4354_v6  ;;  %v1268_v20 = vcombine.low %v1264_v40, %v1265_v61  ;;  %v1531_v22 = vrot.slane %v1524_v0, %v4354_v6  ;;  %v1697_v61 = vpop.permute.xlu0 %1696  ;;  %7130 = sst [smem:[#allocation20_spill]] %s5673_s25 }
 0x132   :  { %v1313_v5 = vrot.slane %v1306_v30, %v4354_v6  ;;  %v1414_v4 = vcombine.low %v1410_v48, %v1411_v62  ;;  %v1574_v26 = vmul.f32 %v1573_v15, %v5361_v8  ;;  %v1575_v28 = vmul.f32 %v1573_v15, %v5365_v41 }
 0x133   :  { %v7112_v14 = vstv %s4873_s14  ;;  %v1533_v53 = vadd.f32 %v1531_v22, %v1468_v32  ;;  %v5385_v31 = vsel %vm218_vm1, %v1589_v10, %v1591_v60  ;;  %v5389_v38 = vsel %vm218_vm1, %v1591_v60, %v1589_v10  ;;  %s5450_s14 = sld [smem:[#allocation2 + $0x6a]] }
 0x134   :  { %v1318_v12 = vmul.f32 %v7112_v14, %v5232_v46  ;;  %v1261_v44 = vadd.f32 %v1259_v33, %v1207_v16  ;;  %v7113_v29 = vmov %v7112_v14  ;;  %v1367_v15 = vrot.slane %v1360_v19, %v4354_v6 }
 0x135   :  { %v1319_v55 = vmul.f32 %v7113_v29, %v5236_v25  ;;  %v1578_v3 = vcombine.low %v1574_v26, %v1575_v28  ;;  %v1223_v46 = vadd.f32 %v1221_v45, %v1169_v57  ;;  %v1275_v56 = vrot.slane %v1268_v20, %v4354_v6  ;;  %v1753_v26 = vpop.permute.xlu1 %1752  ;;  %v1751_v28 = vpop.permute.xlu0 %1750 }
 0x136   :  { %v1628_v40 = vmul.f32 %v1627_v39, %v5385_v31  ;;  %v1789_v60 = vstv %s5351_s2  ;;  %v1315_v10 = vadd.f32 %v1313_v5, %v1261_v44  ;;  %v1421_v51 = vrot.slane %v1414_v4, %v4354_v6  ;;  %s5675_s2 = sld [smem:[#allocation7 + $0x48]] }
 0x137   :  { %v1585_v25 = vrot.slane %v1578_v3, %v4354_v6  ;;  %v1629_v17 = vmul.f32 %v1627_v39, %v5389_v38  ;;  %v7114_v30 = vstv %s4923_s16  ;;  %v5413_v62 = vsel %vm273_vm3, %v1643_v37, %v1645_v13  ;;  %s5535_s16 = sld [smem:[#allocation5]] }
 0x138   :  { %v1488_v36 = vmul.f32 %v7114_v30, %v5320_v35  ;;  %v7115_v48 = vmov %v7114_v30  ;;  %v5417_v18 = vsel %vm273_vm3, %v1645_v13, %v1643_v37  ;;  %v1322_v34 = vcombine.low %v1318_v12, %v1319_v55 }
 0x139   :  { %v1489_v43 = vmul.f32 %v7115_v48, %v5327_v9  ;;  %v1369_v0 = vadd.f32 %v1367_v15, %v1315_v10  ;;  %v1587_v39 = vadd.f32 %v1585_v25, %v1533_v53  ;;  %v1632_v57 = vcombine.low %v1628_v40, %v1629_v17 }
 0x13a   :  { %v5419_v33 = vadd.f32 %v1275_v56, %v1223_v46  ;;  %v1542_v19 = vmul.f32 %v1541_v23, %v5361_v8  ;;  %v1543_v32 = vmul.f32 %v1541_v23, %v5365_v41  ;;  %v1811_v16 = vstv %s5371_s26  ;;  %s5679_s26 = sld [smem:[#allocation7 + $0x1c]] }
 0x13b   :  { %v1423_v45 = vadd.f32 %v1421_v51, %v1369_v0  ;;  %v1639_v20 = vrot.slane %v1632_v57, %v4354_v6  ;;  %v1682_v13 = vmul.f32 %v1681_v63, %v5413_v62  ;;  %v1683_v37 = vmul.f32 %v1681_v63, %v5417_v18  ;;  %v1805_v0 = vpop.permute.xlu0 %1804 }
 0x13c   :  { %v1492_v22 = vcombine.low %v1488_v36, %v1489_v43  ;;  %v1596_v5 = vmul.f32 %v1595_v59, %v5385_v31  ;;  %v1597_v23 = vmul.f32 %v1595_v59, %v5389_v38  ;;  %v5443_v4 = vsel %vm328_vm4, %v1697_v61, %v1699_v49 }
 0x13d   :  { %v1329_v14 = vrot.slane %v1322_v34, %v4354_v6  ;;  %v1641_v12 = vadd.f32 %v1639_v20, %v1587_v39  ;;  %v1686_v63 = vcombine.low %v1682_v13, %v1683_v37  ;;  %v5448_v53 = vsel %vm328_vm4, %v1699_v49, %v1697_v61  ;;  %v1807_v34 = vpop.permute.xlu1 %1806 }
 0x13e   :  { %v7116_v59 = vstv %s4887_s12  ;;  %v1546_v29 = vcombine.low %v1542_v19, %v1543_v32  ;;  %v1650_v55 = vmul.f32 %v1649_v2, %v5413_v62  ;;  %v1651_v15 = vmul.f32 %v1649_v2, %v5417_v18  ;;  %s5505_s12 = sld [smem:[#allocation2 + $0x6b]] }
 0x13f   :  { %v1372_v44 = vmul.f32 %v7116_v59, %v5260_v7  ;;  %v1460_v3 = vadd.f32 %v5077_v1, %v1423_v45  ;;  %v1693_v46 = vrot.slane %v1686_v63, %v4354_v6  ;;  %v1736_v56 = vmul.f32 %v1735_v42, %v5443_v4 }
 0x140   :  { %v1737_v40 = vmul.f32 %v1735_v42, %v5448_v53  ;;  %v1499_v7 = vrot.slane %v1492_v22, %v4354_v6  ;;  %v1600_v49 = vcombine.low %v1596_v5, %v1597_v23  ;;  %v1704_v61 = vmul.f32 %v1703_v54, %v5443_v4  ;;  %7131 = sst [smem:[#allocation21_spill]] %s5679_s26 }
 0x141   :  { %v5475_v2 = vsel %vm383_vm5, %v1751_v28, %v1753_v26  ;;  %v1695_v1 = vadd.f32 %v1693_v46, %v1641_v12  ;;  %v1705_v42 = vmul.f32 %v1703_v54, %v5448_v53  ;;  %v5484_v51 = vsel %vm383_vm5, %v1753_v26, %v1751_v28 }
 0x142   :  { %v1740_v10 = vcombine.low %v1736_v56, %v1737_v40  ;;  %v7117_v25 = vmov %v7116_v59  ;;  %v7118_v30 = vstv %s4905_s13  ;;  %v1553_v48 = vrot.slane %v1546_v29, %v4354_v6  ;;  %s5526_s13 = sld [smem:[#allocation2 + $0x43]]  ;;  %v1861_v40 = vpop.permute.xlu1 %1860 }
 0x143   :  { %v1373_v17 = vmul.f32 %v7117_v25, %v5270_v58  ;;  %v1426_v36 = vmul.f32 %v7118_v30, %v5290_v52  ;;  %v1654_v43 = vcombine.low %v1650_v55, %v1651_v15  ;;  %v1758_v39 = vmul.f32 %v1757_v11, %v5475_v2 }
 0x144   :  { %v1747_v54 = vrot.slane %v1740_v10, %v4354_v6  ;;  %v1759_v57 = vmul.f32 %v1757_v11, %v5484_v51  ;;  %v1790_v58 = vmul.f32 %v1789_v60, %v5475_v2  ;;  %v7119_v52 = vmov %v7118_v30 }
 0x145   :  { %v1427_v19 = vmul.f32 %v7119_v52, %v5294_v50  ;;  %v1501_v32 = vadd.f32 %v1499_v7, %v1460_v3  ;;  %v1607_v45 = vrot.slane %v1600_v49, %v4354_v6  ;;  %v1791_v20 = vmul.f32 %v1789_v60, %v5484_v51  ;;  %v1859_v7 = vpop.permute.xlu0 %1858 }
 0x146   :  { %v1708_v13 = vcombine.low %v1704_v61, %v1705_v42  ;;  %v1749_v37 = vadd.f32 %v1747_v54, %v1695_v1  ;;  %v1843_v22 = vstv %s5450_s14  ;;  %v5517_v11 = vsel %vm438_vm6, %v1805_v0, %v1807_v34  ;;  %s5681_s14 = sld [smem:[#allocation7 + $0x37]] }
 0x147   :  { %v1376_v5 = vcombine.low %v1372_v44, %v1373_v17  ;;  %v1794_v23 = vcombine.low %v1790_v58, %v1791_v20  ;;  %v5521_v26 = vsel %vm438_vm6, %v1807_v34, %v1805_v0  ;;  %v1812_v50 = vmul.f32 %v1811_v16, %v5517_v11 }
 0x148   :  { %v1555_v28 = vadd.f32 %v1553_v48, %v1501_v32  ;;  %v1661_v12 = vrot.slane %v1654_v43, %v4354_v6  ;;  %v1762_v60 = vcombine.low %v1758_v39, %v1759_v57  ;;  %v1813_v63 = vmul.f32 %v1811_v16, %v5521_v26 }
 0x149   :  { %v1430_v59 = vcombine.low %v1426_v36, %v1427_v19  ;;  %v1801_v29 = vrot.slane %v1794_v23, %v4354_v6  ;;  %v1844_v44 = vmul.f32 %v1843_v22, %v5517_v11  ;;  %v1845_v55 = vmul.f32 %v1843_v22, %v5521_v26 }
 0x14a   :  { %v1611_v15 = vstv %s5477_s0  ;;  %v1609_v3 = vadd.f32 %v1607_v45, %v1555_v28  ;;  %v1715_v46 = vrot.slane %v1708_v13, %v4354_v6  ;;  %v1816_v56 = vcombine.low %v1812_v50, %v1813_v63  ;;  %s5683_s0 = sld [smem:[#allocation7 + $0x2]] }
 0x14b   :  { %v1331_v49 = vadd.f32 %v1329_v14, %v5419_v33  ;;  %v1803_v16 = vadd.f32 %v1801_v29, %v1749_v37  ;;  %v1848_v61 = vcombine.low %v1844_v44, %v1845_v55  ;;  %v1865_v1 = vstv %s5493_s1  ;;  %s5685_s1 = sld [smem:[#allocation7 + $0x1d]] }
 0x14c   :  { %v1383_v42 = vrot.slane %v1376_v5, %v4354_v6  ;;  %v1663_v10 = vadd.f32 %v1661_v12, %v1609_v3  ;;  %v1769_v25 = vrot.slane %v1762_v60, %v4354_v6  ;;  %v1897_v17 = vstv %s5505_s12  ;;  %7132 = sst [smem:[#allocation22_spill]] %s5681_s14  ;;  %s5705_s12 = sld [smem:[#allocation7 + $0x1e]] }
 0x14d   :  { %v1437_v30 = vrot.slane %v1430_v59, %v4354_v6  ;;  %v1855_v36 = vrot.slane %v1848_v61, %v4354_v6  ;;  %v1862_v33 = vsel %vm493_vm7, %v1859_v7, %v1861_v40  ;;  %v1863_v14 = vsel %vm493_vm7, %v1861_v40, %v1859_v7 }
 0x14e   :  { %v1717_v48 = vadd.f32 %v1715_v46, %v1663_v10  ;;  %v1823_v43 = vrot.slane %v1816_v56, %v4354_v6  ;;  %v1866_v34 = vmul.f32 %v1865_v1, %v1862_v33  ;;  %v1867_v0 = vmul.f32 %v1865_v1, %v1863_v14 }
 0x14f   :  { %v7120_v54 = vstv %s4925_s8  ;;  %v1857_v52 = vadd.f32 %v1855_v36, %v1803_v16  ;;  %v1898_v19 = vmul.f32 %v1897_v17, %v1862_v33  ;;  %v1385_v32 = vadd.f32 %v1383_v42, %v1331_v49  ;;  %s5567_s8 = sld [smem:[#allocation2 + $0x46]] }
 0x150   :  { %v1504_v39 = vmul.f32 %v7120_v54, %v5320_v35  ;;  %v7121_v57 = vmov %v7120_v54  ;;  %v1771_v45 = vadd.f32 %v1769_v25, %v1717_v48  ;;  %v1870_v20 = vcombine.low %v1866_v34, %v1867_v0  ;;  %7133 = sst [smem:[#allocation23_spill]] %s5683_s0 }
 0x151   :  { %v1505_v58 = vmul.f32 %v7121_v57, %v5327_v9  ;;  %v1899_v13 = vmul.f32 %v1897_v17, %v1863_v14  ;;  %v1463_v37 = vmul.f32 %v5142_v27, %v1462_v47  ;;  %v1558_v22 = vmul.f32 %v1557_v24, %v5361_v8  ;;  %7134 = sst [smem:[#allocation24_spill]] %s5685_s1 }
 0x152   :  { %v1559_v35 = vmul.f32 %v1557_v24, %v5365_v41  ;;  %v1665_v5 = vstv %s5526_s13  ;;  %v1439_v9 = vadd.f32 %v1437_v30, %v1385_v32  ;;  %v1825_v23 = vadd.f32 %v1823_v43, %v1771_v45  ;;  %7138 = sst [smem:[#allocation27_spill]] %s5705_s12  ;;  %s5725_s13 = sld [smem:[#allocation7 + $0x1f]] }
 0x153   :  { %v1877_v50 = vrot.slane %v1870_v20, %v4354_v6  ;;  %v1902_v28 = vcombine.low %v1898_v19, %v1899_v13  ;;  %v1508_v12 = vcombine.low %v1504_v39, %v1505_v58  ;;  %v1612_v60 = vmul.f32 %v1611_v15, %v5385_v31 }
 0x154   :  { %v1613_v47 = vmul.f32 %v1611_v15, %v5389_v38  ;;  %v1913_v27 = vstv %s5535_s16  ;;  %v1562_v41 = vcombine.low %v1558_v22, %v1559_v35  ;;  %v1666_v63 = vmul.f32 %v1665_v5, %v5413_v62  ;;  %s7135_s16 = sld [smem:[#allocation64_spill]] }
 0x155   :  { %v1879_v8 = vadd.f32 %v1877_v50, %v1825_v23  ;;  %v1909_v24 = vrot.slane %v1902_v28, %v4354_v6  ;;  %v1667_v59 = vmul.f32 %v1665_v5, %v5417_v18  ;;  %v1719_v29 = vstv %s5541_s20  ;;  %s5727_s20 = sld [smem:[#allocation7 + $0x3a]] }
 0x156   :  { %v1464_v31 = vadd.f32 %v1463_v37, %v1439_v9  ;;  %v1515_v38 = vrot.slane %v1508_v12, %v4354_v6  ;;  %v1616_v15 = vcombine.low %v1612_v60, %v1613_v47  ;;  %v1773_v3 = vstv %s5555_s17  ;;  %s5809_s17 = sld [smem:[#allocation7 + $0xa]] }
 0x157   :  { %v5579_v44 = vadd.f32 %v1909_v24, %v1857_v52  ;;  %v1914_v55 = vadd.f32 %v1913_v27, %v1879_v8  ;;  %v1720_v46 = vmul.f32 %v1719_v29, %v5443_v4  ;;  %v1721_v56 = vmul.f32 %v1719_v29, %v5448_v53 }
 0x158   :  { %v1569_v7 = vrot.slane %v1562_v41, %v4354_v6  ;;  %v1670_v62 = vcombine.low %v1666_v63, %v1667_v59  ;;  %v1827_v49 = vstv %s5567_s8  ;;  %v1774_v18 = vmul.f32 %v1773_v3, %v5475_v2  ;;  %s5695_s8 = sld [smem:[#allocation7 + $0x38]]  ;;  %7141 = sst [smem:[#allocation30_spill]] %s5725_s13 }
 0x159   :  { %v1915_v40 = vmul.f32 0.01, %v1914_v55  ;;  %v1775_v16 = vmul.f32 %v1773_v3, %v5484_v51  ;;  %v1517_v1 = vadd.f32 %v1515_v38, %v1464_v31  ;;  %v1623_v42 = vrot.slane %v1616_v15, %v4354_v6  ;;  %s5760_s13 = sld [smem:[#allocation7 + $0x6]] }
 0x15a   :  { %v1881_v10 = vstv %s5572_s30  ;;  %v1724_v25 = vcombine.low %v1720_v46, %v1721_v56  ;;  %v1828_v4 = vmul.f32 %v1827_v49, %v5517_v11  ;;  %v1829_v53 = vmul.f32 %v1827_v49, %v5521_v26  ;;  %v3353_v12 = vld [vmem:[%s7135_s16 + $0x80] sm:$0xff]  ;;  %v3354_v60 = vld [vmem:[%s7135_s16 + $0x88] sm:$0xff]  ;;  %s5697_s30 = sld [smem:[#allocation7 + $0x3]]  ;;  %v3355_v31 = vld [vmem:[%s7135_s16 + $0x90] sm:$0xff] }
 0x15b   :  { %v5589_v61 = vmax.f32 %v1914_v55, %v1915_v40  ;;  %v1571_v30 = vadd.f32 %v1569_v7, %v1517_v1  ;;  %v1677_v36 = vrot.slane %v1670_v62, %v4354_v6  ;;  %v1778_v2 = vcombine.low %v1774_v18, %v1775_v16  ;;  %v3337_v27 = vld [vmem:[%s7135_s16] sm:$0xff]  ;;  %v3338_v8 = vld [vmem:[%s7135_s16 + $0x8] sm:$0xff]  ;;  %7142 = sst [smem:[#allocation31_spill]] %s5727_s20  ;;  %v3356_v38 = vld [vmem:[%s7135_s16 + $0x98] sm:$0xff]  ;;  %s5762_s20 = sld [smem:[#allocation7 + $0x21]] }
 0x15c   :  { %v1882_v48 = vmul.f32 %v1881_v10, %v1862_v33  ;;  %v1883_v51 = vmul.f32 %v1881_v10, %v1863_v14  ;;  %v1731_v0 = vrot.slane %v1724_v25, %v4354_v6  ;;  %v1832_v54 = vcombine.low %v1828_v4, %v1829_v53  ;;  %v3385_v41 = vld [vmem:[%s7135_s16 + $0x180] sm:$0xff]  ;;  %v3386_v63 = vld [vmem:[%s7135_s16 + $0x188] sm:$0xff]  ;;  %v3339_v3 = vld [vmem:[%s7135_s16 + $0x10] sm:$0xff]  ;;  %7155 = sst [smem:[#allocation49_spill]] %s5809_s17  ;;  %s5896_s17 = sld [smem:[#allocation7 + $0x29]] }
 0x15d   :  { %v1943_v17 = vrot.slane %v5589_v61, %v4354_v6  ;;  %v1625_v34 = vadd.f32 %v1623_v42, %v1571_v30  ;;  %v1785_v26 = vrot.slane %v1778_v2, %v4354_v6  ;;  %v1918_v32 = vstv %s3863_s24  ;;  %v3369_v59 = vld [vmem:[%s7135_s16 + $0x100] sm:$0xff]  ;;  %s5739_s24 = sld [smem:[#allocation7 + $0x20]]  ;;  %v3340_v46 = vld [vmem:[%s7135_s16 + $0x18] sm:$0xff]  ;;  %v3387_v40 = vld [vmem:[%s7135_s16 + $0x190] sm:$0xff] }
 0x15e   :  { %v1886_v39 = vcombine.low %v1882_v48, %v1883_v51  ;;  %v1839_v33 = vrot.slane %v1832_v54, %v4354_v6  ;;  %v1923_v35 = vstv %s3864_s19  ;;  %7136 = sst [smem:[#allocation25_spill]] %s5695_s8  ;;  %v4071_v47 = vpack.c.bf16 %v3354_v60, %v3353_v12  ;;  %v3388_v7 = vld [vmem:[%s7135_s16 + $0x198] sm:$0xff]  ;;  %v3371_v62 = vld [vmem:[%s7135_s16 + $0x110] sm:$0xff]  ;;  %v3357_v1 = vld [vmem:[%s7135_s16 + $0xa0] sm:$0xff]  ;;  %s5781_s19 = sld [smem:[#allocation7 + $0x3d]] }
 0x15f   :  { %1947 = vrot.lane.b32.xlu0 %v1943_v17, %s7122_s7  ;;  %v1944_v43 = vcombine.high %v1943_v17, %v1943_v17  ;;  %v1679_v11 = vadd.f32 %v1677_v36, %v1625_v34  ;;  %v1924_v5 = vadd.f32 %v1923_v35, %v5579_v44  ;;  %v4073_v24 = vpack.c.bf16 %v3338_v8, %v3337_v27  ;;  %v3370_v44 = vld [vmem:[%s7135_s16 + $0x108] sm:$0xff]  ;;  %7146 = sst [smem:[#allocation36_spill]] %s5760_s13  ;;  %v3372_v18 = vld [vmem:[%s7135_s16 + $0x118] sm:$0xff]  ;;  %s5783_s8 = sld [smem:[#allocation7 + $0x8]]  ;;  %v3341_v25 = vld [vmem:[%s7135_s16 + $0x20] sm:$0xff] }
 0x160   :  { %v1893_v58 = vrot.slane %v1886_v39, %v4354_v6  ;;  %7137 = sst [smem:[#allocation26_spill]] %s5697_s30  ;;  %4072 = vmatprep.subr.bf16.mxu0 %v4071_v47  ;;  %v4103_v29 = vpack.c.bf16 %v3386_v63, %v3385_v41  ;;  %v4105_v55 = vpack.c.bf16 %v3370_v44, %v3369_v59  ;;  %v4075_v15 = vpack.c.bf16 %v3356_v38, %v3355_v31  ;;  %v3358_v42 = vld [vmem:[%s7135_s16 + $0xa8] sm:$0xff]  ;;  %v3389_v53 = vld [vmem:[%s7135_s16 + $0x1a0] sm:$0xff]  ;;  %v3343_v54 = vld [vmem:[%s7135_s16 + $0x30] sm:$0xff] }
 0x161   :  { %1949 = vrot.lane.b32.xlu1 %v1944_v43, %s7122_s7  ;;  %v1733_v57 = vadd.f32 %v1731_v0, %v1679_v11  ;;  %v1925_v9 = vmul.f32 0.01, %v1924_v5  ;;  %4074 = vmatpush3.bf16.msra.mxu0 %v4073_v24  ;;  %s5747_s30 = sld [smem:[#allocation7 + $0x3b]]  ;;  %v4077_v56 = vpack.c.bf16 %v3340_v46, %v3339_v3  ;;  %7147 = sst [smem:[#allocation37_spill]] %s5762_s20  ;;  %v4107_v49 = vpack.c.bf16 %v3388_v7, %v3387_v40  ;;  %v3342_v4 = vld [vmem:[%s7135_s16 + $0x28] sm:$0xff]  ;;  %v3373_v36 = vld [vmem:[%s7135_s16 + $0x120] sm:$0xff] }
 0x162   :  { %4104 = vmatprep.subr.bf16.mxu1 %v4103_v29  ;;  %4076 = vmatprep.subr.bf16.mxu0 %v4075_v15  ;;  %v4109_v16 = vpack.c.bf16 %v3372_v18, %v3371_v62  ;;  %s5779_s20 = sld [smem:[#allocation7 + $0x22]]  ;;  %v4079_v10 = vpack.c.bf16 %v3358_v42, %v3357_v1  ;;  %v3390_v30 = vld [vmem:[%s7135_s16 + $0x1a8] sm:$0xff]  ;;  %v1928_v34 = vstv %s5653_s11  ;;  %v3360_v0 = vld [vmem:[%s7135_s16 + $0xb8] sm:$0xff]  ;;  %v3345_v60 = vld [vmem:[%s7135_s16 + $0x40] sm:$0xff]  ;;  %7168 = sst [smem:[#allocation52_spill]] %s5896_s17 }
 0x163   :  { %2001 = vrot.lane.b32.xlu0 %v1943_v17, %s7123_s4  ;;  %v1787_v14 = vadd.f32 %v1785_v26, %v1733_v57  ;;  %v5635_v23 = vmax.f32 %v1924_v5, %v1925_v9  ;;  %7144 = sst [smem:[#allocation34_spill]] %s5739_s24  ;;  %4106 = vmatpush3.bf16.msra.mxu1 %v4105_v55  ;;  %s5769_s24 = sld [smem:[#allocation7 + $0x7]]  ;;  %v3374_v2 = vld [vmem:[%s7135_s16 + $0x128] sm:$0xff]  ;;  %v4111_v48 = vpack.c.bf16 %v3390_v30, %v3389_v53  ;;  %v3344_v11 = vld [vmem:[%s7135_s16 + $0x38] sm:$0xff]  ;;  %v3391_v57 = vld [vmem:[%s7135_s16 + $0x1b0] sm:$0xff] }
 0x164   :  { %7151 = sst [smem:[#allocation41_spill]] %s5781_s19  ;;  %4108 = vmatprep.subr.bf16.mxu1 %v4107_v49  ;;  %v4113_v51 = vpack.c.bf16 %v3374_v2, %v3373_v36  ;;  %s5815_s19 = sld [smem:[#allocation7 + $0x40]]  ;;  %v4085_v39 = vpack.c.bf16 %v3344_v11, %v3343_v54  ;;  %v3362_v35 = vld [vmem:[%s7135_s16 + $0xc8] sm:$0xff]  ;;  %v2388_v5 = vstv %s5665_s23  ;;  %v2835_v9 = vstv %s5669_s28  ;;  %v3393_v8 = vld [vmem:[%s7135_s16 + $0x1c0] sm:$0xff] }
 0x165   :  { %2003 = vrot.lane.b32.xlu1 %v1944_v43, %s7123_s4  ;;  %v1841_v52 = vadd.f32 %v1839_v33, %v1787_v14  ;;  %v5641_v50 = vrot.slane %v5635_v23, %v4354_v6  ;;  %4078 = vmatpush3.bf16.msra.mxu0 %v4077_v56  ;;  %7152 = sst [smem:[#allocation47_spill]] %s5783_s8  ;;  %s5834_s8 = sld [smem:[#allocation7 + $0x26]]  ;;  %v3392_v33 = vld [vmem:[%s7135_s16 + $0x1b8] sm:$0xff]  ;;  %v3375_v14 = vld [vmem:[%s7135_s16 + $0x130] sm:$0xff]  ;;  %v3346_v47 = vld [vmem:[%s7135_s16 + $0x48] sm:$0xff] }
 0x166   :  { %4080 = vmatprep.subr.bf16.mxu0 %v4079_v10  ;;  %v4089_v27 = vpack.c.bf16 %v3346_v47, %v3345_v60  ;;  %v3394_v24 = vld [vmem:[%s7135_s16 + $0x1c8] sm:$0xff]  ;;  %v3377_v41 = vld [vmem:[%s7135_s16 + $0x140] sm:$0xff]  ;;  %v1954_v63 = vstv %s5673_s25  ;;  %v2843_v59 = vstv %s5675_s2  ;;  %s7171_s25 = sld [smem:[#allocation25_spill]]  ;;  %s5929_s17 = sld [smem:[#allocation7 + $0x45]]  ;;  %v6036_v47 = vmul.f32 %v2835_v9, %v5635_v23 }
 0x167   :  { %2055 = vrot.lane.b32.xlu0 %v1943_v17, %s7124_s27  ;;  %v1895_v19 = vadd.f32 %v1893_v58, %v1841_v52  ;;  %v5649_v28 = vcombine.high %v5641_v50, %v5641_v50  ;;  %7145 = sst [smem:[#allocation38_spill]] %s5747_s30  ;;  %4110 = vmatpush3.bf16.msra.mxu1 %v4109_v16  ;;  %v1931_v58 = vstv %s5655_s29  ;;  %v1934_v52 = vstv %s5659_s5  ;;  %v3378_v44 = vld [vmem:[%s7135_s16 + $0x148] sm:$0xff]  ;;  %s6038_s29 = sld [smem:[#allocation7 + $0x13]] }
 0x168   :  { %7150 = sst [smem:[#allocation45_spill]] %s5779_s20  ;;  %4112 = vmatprep.subr.bf16.mxu1 %v4111_v48  ;;  %v4119_v29 = vpack.c.bf16 %v3394_v24, %v3393_v8  ;;  %v1970_v55 = vstv %s5679_s26  ;;  %v4121_v31 = vpack.c.bf16 %v3378_v44, %v3377_v41  ;;  %v3363_v38 = vld [vmem:[%s7135_s16 + $0xd0] sm:$0xff]  ;;  %v3364_v15 = vld [vmem:[%s7135_s16 + $0xd8] sm:$0xff]  ;;  %v1986_v3 = vstv %s5681_s14  ;;  %s5953_s26 = sld [smem:[#allocation7 + $0x2b]] }
 0x169   :  { %2057 = vrot.lane.b32.xlu1 %v1944_v43, %s7124_s27  ;;  %v1919_v45 = vadd.f32 %v1918_v32, %v1895_v19  ;;  %7149 = sst [smem:[#allocation44_spill]] %s5769_s24  ;;  %s5821_s24 = sld [smem:[#allocation7 + $0xb]]  ;;  %v2380_v19 = vstv %s5661_s6  ;;  %v4115_v32 = vpack.c.bf16 %v3392_v33, %v3391_v57  ;;  %v3347_v46 = vld [vmem:[%s7135_s16 + $0x50] sm:$0xff]  ;;  %v3348_v56 = vld [vmem:[%s7135_s16 + $0x58] sm:$0xff]  ;;  %v5989_v57 = vmul.f32 %v1934_v52, %v5589_v61 }
 0x16a   :  { %7157 = sst [smem:[#allocation17_spill]] %s5815_s19  ;;  %s5848_s19 = sld [smem:[#allocation7 + $0x41]]  ;;  %v3395_v40 = vld [vmem:[%s7135_s16 + $0x1d0] sm:$0xff]  ;;  %v2008_v7 = vstv %s5683_s0  ;;  %v4093_v62 = vpack.c.bf16 %v3348_v56, %v3347_v46  ;;  %v3396_v49 = vld [vmem:[%s7135_s16 + $0x1d8] sm:$0xff]  ;;  %v2024_v1 = vstv %s5685_s1 }
 0x16b   :  { %2109 = vrot.lane.b32.xlu0 %v1943_v17, %s7125_s9  ;;  %v1920_v20 = vmul.f32 0.01, %v1919_v45  ;;  %7159 = sst [smem:[#allocation40_spill]] %s5834_s8  ;;  %4114 = vmatpush3.bf16.msra.mxu1 %v4113_v51  ;;  %s5850_s8 = sld [smem:[#allocation7 + $0xc]]  ;;  %v3379_v18 = vld [vmem:[%s7135_s16 + $0x150] sm:$0xff]  ;;  %v3380_v16 = vld [vmem:[%s7135_s16 + $0x158] sm:$0xff]  ;;  %v4123_v42 = vpack.c.bf16 %v3396_v49, %v3395_v40  ;;  %v5967_v51 = vmul.f32 %v1928_v34, %v5589_v61  ;;  %v2078_v33 = vstv %s5705_s12 }
 0x16c   :  { %4116 = vmatprep.subr.bf16.mxu1 %v4115_v32  ;;  %7172 = sst [smem:[#allocation55_spill]] %s5929_s17  ;;  %v4125_v10 = vpack.c.bf16 %v3380_v16, %v3379_v18  ;;  %v3349_v53 = vld [vmem:[%s7135_s16 + $0x60] sm:$0xff]  ;;  %v3350_v36 = vld [vmem:[%s7135_s16 + $0x68] sm:$0xff]  ;;  %v3367_v34 = vld [vmem:[%s7135_s16 + $0xf0] sm:$0xff]  ;;  %s7178_s14 = sld [smem:[#allocation30_spill]]  ;;  %v2224_v44 = vstv %s5760_s13  ;;  %v6075_v49 = vmul.f32 %v2843_v59, %v5635_v23 }
 0x16d   :  { %2111 = vrot.lane.b32.xlu1 %v1944_v43, %s7125_s9  ;;  %v5614_v13 = vmax.f32 %v1919_v45, %v1920_v20  ;;  %v3376_v45 = vld [vmem:[%s7135_s16 + $0x138] sm:$0xff]  ;;  %v2384_v20 = vstv %s5663_s10  ;;  %v3397_v2 = vld [vmem:[%s7135_s16 + $0x1e0] sm:$0xff]  ;;  %s7179_s12 = sld [smem:[#allocation31_spill]]  ;;  %s6014_s0 = sld [smem:[#allocation7 + $0x2c]] }
 0x16e   :  { %7174 = sst [smem:[#allocation56_spill]] %s5953_s26  ;;  %v3398_v48 = vld [vmem:[%s7135_s16 + $0x1e8] sm:$0xff]  ;;  %v3381_v11 = vld [vmem:[%s7135_s16 + $0x160] sm:$0xff]  ;;  %v3368_v32 = vld [vmem:[%s7135_s16 + $0xf8] sm:$0xff]  ;;  %s7182_s10 = sld [smem:[#allocation34_spill]]  ;;  %v2294_v46 = vstv %s5779_s20 }
 0x16f   :  { %2163 = vrot.lane.b32.xlu0 %v1943_v17, %s7126_s15  ;;  %v2398_v37 = vrot.slane %v5614_v13, %v4354_v6  ;;  %7158 = sst [smem:[#allocation39_spill]] %s5821_s24  ;;  %v4127_v54 = vpack.c.bf16 %v3398_v48, %v3397_v2  ;;  %v6029_v60 = vmul.f32 %v2388_v5, %v5614_v13  ;;  %v3384_v8 = vld [vmem:[%s7135_s16 + $0x178] sm:$0xff]  ;;  %s7183_s5 = sld [smem:[#allocation37_spill]]  ;;  %v3417_v18 = vld [vmem:[%s7135_s16 + $0x280] sm:$0xff]  ;;  %v3418_v16 = vld [vmem:[%s7135_s16 + $0x288] sm:$0xff] }
 0x170   :  { %7160 = sst [smem:[#allocation42_spill]] %s5848_s19  ;;  %s7185_s23 = sld [smem:[#allocation44_spill]]  ;;  %v4135_v59 = vpack.c.bf16 %v3418_v16, %v3417_v18 }
 0x171   :  { %2165 = vrot.lane.b32.xlu1 %v1944_v43, %s7126_s15  ;;  %v2399_v22 = vcombine.high %v2398_v37, %v2398_v37  ;;  %7161 = sst [smem:[#allocation46_spill]] %s5850_s8  ;;  %s5882_s8 = sld [smem:[#allocation7 + $0x43]] }
 0x172   :  { %v2132_v24 = vstv %s7178_s14  ;;  %s6046_s6 = sld [smem:[#allocation7 + $0x2e]]  ;;  %s7186_s28 = sld [smem:[#allocation41_spill]] }
 0x173   :  { %2217 = vrot.lane.b32.xlu0 %v1943_v17, %s7127_s18  ;;  %7181 = sst [smem:[#allocation58_spill]] %s6014_s0  ;;  %v2148_v41 = vstv %s7179_s12  ;;  %s6053_s17 = sld [smem:[#allocation7 + $0x14]] }
 0x174   :  { %v2186_v9 = vstv %s7182_s10  ;;  %s7191_s12 = sld [smem:[#allocation49_spill]]  ;;  %s6077_s20 = sld [smem:[#allocation7 + $0x30]] }
 0x175   :  { %2219 = vrot.lane.b32.xlu1 %v1944_v43, %s7127_s18  ;;  %s6061_s10 = sld [smem:[#allocation7 + $0x4a]]  ;;  %s7252_s0 = sld [smem:[#allocation52_spill]] }
 0x176   :  { %s7195_s14 = sld [smem:[#allocation17_spill]] }
 0x177   :  { %2271 = vrot.lane.b32.xlu0 %v1943_v17, %s7128_s21  ;;  %7166 = sst [smem:[#allocation50_spill]] %s5882_s8 }
 0x178   :  { %v2310_v56 = vstv %s7186_s28  ;;  %s6128_s28 = sld [smem:[#allocation7 + $0x19]] }
 0x179   :  { %2273 = vrot.lane.b32.xlu1 %v1944_v43, %s7128_s21  ;;  %7188 = sst [smem:[#allocation59_spill]] %s6053_s17  ;;  %s6090_s17 = sld [smem:[#allocation7 + $0x16]] }
 0x17b   :  { %2325 = vrot.lane.b32.xlu0 %v1943_v17, %s7129_s22  ;;  %v4081_v17 = vpack.c.bf16 %v3342_v4, %v3341_v25  ;;  %v3365_v25 = vld [vmem:[%s7135_s16 + $0xe0] sm:$0xff]  ;;  %v3366_v4 = vld [vmem:[%s7135_s16 + $0xe8] sm:$0xff] }
 0x17c   :  { %v4095_v30 = vpack.c.bf16 %v3366_v4, %v3365_v25  ;;  %v2441_v25 = vstv %s7195_s14  ;;  %v2463_v4 = vstv %s5821_s24  ;;  %s6106_s14 = sld [smem:[#allocation7 + $0x32]]  ;;  %s6108_s24 = sld [smem:[#allocation7 + $0x4d]] }
 0x17d   :  { %2327 = vrot.lane.b32.xlu1 %v1944_v43, %s7129_s22  ;;  %4082 = vmatpush3.bf16.msra.mxu0 %v4081_v17  ;;  %v3359_v43 = vld [vmem:[%s7135_s16 + $0xb0] sm:$0xff]  ;;  %v2040_v17 = vstv %s7171_s25  ;;  %s7187_s25 = sld [smem:[#allocation47_spill]] }
 0x17e   :  { %v4083_v26 = vpack.c.bf16 %v3360_v0, %v3359_v43  ;;  %v4097_v0 = vpack.c.bf16 %v3350_v36, %v3349_v53 }
 0x17f   :  { %2402 = vrot.lane.b32.xlu0 %v2398_v37, %s7122_s7 }
 0x180   :  { %4084 = vmatprep.subr.bf16.mxu0 %v4083_v26  ;;  %v3382_v26 = vld [vmem:[%s7135_s16 + $0x168] sm:$0xff] }
 0x181   :  { %2404 = vrot.lane.b32.xlu1 %v2399_v22, %s7122_s7  ;;  %4086 = vmatpush3.bf16.msra.mxu0 %v4085_v39  ;;  %v5984_v39 = vmul.f32 %v1931_v58, %v5589_v61  ;;  %v3351_v58 = vld [vmem:[%s7135_s16 + $0x70] sm:$0xff]  ;;  %v3352_v61 = vld [vmem:[%s7135_s16 + $0x78] sm:$0xff] }
 0x182   :  { %v4101_v5 = vpack.c.bf16 %v3352_v61, %v3351_v58 }
 0x183   :  { %2456 = vrot.lane.b32.xlu0 %v2398_v37, %s7123_s4  ;;  %v2332_v40 = vstv %s7187_s25  ;;  %s6126_s25 = sld [smem:[#allocation7 + $0x4e]] }
 0x185   :  { %2458 = vrot.lane.b32.xlu1 %v2399_v22, %s7123_s4 }
 0x187   :  { %2510 = vrot.lane.b32.xlu0 %v2398_v37, %s7124_s27 }
 0x189   :  { %2512 = vrot.lane.b32.xlu1 %v2399_v22, %s7124_s27 }
 0x18b   :  { %2564 = vrot.lane.b32.xlu0 %v2398_v37, %s7125_s9 }
 0x18d   :  { %2566 = vrot.lane.b32.xlu1 %v2399_v22, %s7125_s9 }
 0x18f   :  { %2618 = vrot.lane.b32.xlu0 %v2398_v37, %s7126_s15 }
 0x191   :  { %2620 = vrot.lane.b32.xlu1 %v2399_v22, %s7126_s15 }
 0x193   :  { %2672 = vrot.lane.b32.xlu0 %v2398_v37, %s7127_s18 }
 0x195   :  { %2674 = vrot.lane.b32.xlu1 %v2399_v22, %s7127_s18 }
 0x197   :  { %2726 = vrot.lane.b32.xlu0 %v2398_v37, %s7128_s21 }
 0x199   :  { %2728 = vrot.lane.b32.xlu1 %v2399_v22, %s7128_s21 }
 0x19b   :  { %2780 = vrot.lane.b32.xlu0 %v2398_v37, %s7129_s22  ;;  %v4117_v37 = vpack.c.bf16 %v3376_v45, %v3375_v14  ;;  %v4129_v14 = vpack.c.bf16 %v3382_v26, %v3381_v11  ;;  %v6007_v45 = vmul.f32 %v2380_v19, %v5614_v13  ;;  %v3383_v19 = vld [vmem:[%s7135_s16 + $0x170] sm:$0xff]  ;;  %v2603_v11 = vstv %s5882_s8 }
 0x19d   :  { %2782 = vrot.lane.b32.xlu1 %v2399_v22, %s7129_s22  ;;  %v3361_v22 = vld [vmem:[%s7135_s16 + $0xc0] sm:$0xff]  ;;  %4118 = vmatpush3.bf16.msra.mxu1 %v4117_v37  ;;  %v6012_v37 = vmul.f32 %v2384_v20, %v5614_v13 }
 0x19e   :  { %v4087_v12 = vpack.c.bf16 %v3362_v35, %v3361_v22  ;;  %4120 = vmatprep.subr.bf16.mxu1 %v4119_v29  ;;  %v4099_v22 = vpack.c.bf16 %v3368_v32, %v3367_v34  ;;  %v3399_v35 = vld [vmem:[%s7135_s16 + $0x1f0] sm:$0xff]  ;;  %v2202_v29 = vstv %s5747_s30  ;;  %s6063_s30 = sld [smem:[#allocation7 + $0x15]]  ;;  %v3166_v32 = vstv %s6126_s25 }
 0x19f   :  { %2857 = vrot.lane.b32.xlu0 %v5641_v50, %s7122_s7 }
 0x1a0   :  { %4088 = vmatprep.subr.bf16.mxu0 %v4087_v12  ;;  %v3400_v12 = vld [vmem:[%s7135_s16 + $0x1f8] sm:$0xff]  ;;  %s6100_s16 = sld [smem:[#allocation7 + $0x17]] }
 0x1a1   :  { %2859 = vrot.lane.b32.xlu1 %v5649_v28, %s7122_s7  ;;  %s5718_s7 = sld [smem:[#allocation7 + $0x39]]  ;;  %4090 = vmatpush3.bf16.msra.mxu0 %v4089_v27  ;;  %v4131_v27 = vpack.c.bf16 %v3400_v12, %v3399_v35 }
 0x1a2   :  { %4122 = vmatpush3.bf16.msra.mxu1 %v4121_v31  ;;  %v4133_v31 = vpack.c.bf16 %v3384_v8, %v3383_v19 }
 0x1a3   :  { %2911 = vrot.lane.b32.xlu0 %v5641_v50, %s7123_s4  ;;  %4124 = vmatprep.subr.bf16.mxu1 %v4123_v42 }
 0x1a4   :  { %7193 = sst [smem:[#allocation61_spill]] %s6063_s30 }
 0x1a5   :  { %2913 = vrot.lane.b32.xlu1 %v5649_v28, %s7123_s4  ;;  %s5720_s4 = sld [smem:[#allocation7 + $0x4]] }
 0x1a6   :  { %4126 = vmatpush3.bf16.msra.mxu1 %v4125_v10  ;;  %7207 = sst [smem:[#allocation62_spill]] %s6100_s16  ;;  %s7260_s16 = sld [smem:[#allocation55_spill]] }
 0x1a7   :  { %2965 = vrot.lane.b32.xlu0 %v5641_v50, %s7124_s27  ;;  %7139 = sst [smem:[#allocation28_spill]] %s5718_s7  ;;  %s5941_s7 = sld [smem:[#allocation7 + $0x10]]  ;;  %4128 = vmatprep.subr.bf16.mxu1 %v4127_v54 }
 0x1a8   :  { %s7176_s1 = sld [smem:[#allocation28_spill]] }
 0x1a9   :  { %2967 = vrot.lane.b32.xlu1 %v5649_v28, %s7124_s27  ;;  %s5767_s27 = sld [smem:[#allocation7 + $0x3c]] }
 0x1aa   :  { %4130 = vmatpush3.bf16.msra.mxu1 %v4129_v14 }
 0x1ab   :  { %3019 = vrot.lane.b32.xlu0 %v5641_v50, %s7125_s9  ;;  %7140 = sst [smem:[#allocation29_spill]] %s5720_s4  ;;  %s5737_s4 = sld [smem:[#allocation7 + $0x5]]  ;;  %4132 = vmatprep.subr.bf16.mxu1 %v4131_v27 }
 0x1ac   :  { %s7177_s19 = sld [smem:[#allocation29_spill]] }
 0x1ad   :  { %3021 = vrot.lane.b32.xlu1 %v5649_v28, %s7125_s9  ;;  %s5807_s9 = sld [smem:[#allocation7 + $0x3e]] }
 0x1ae   :  { %v2094_v52 = vstv %s7176_s1  ;;  %s6055_s1 = sld [smem:[#allocation7 + $0x2f]]  ;;  %4134 = vmatpush3.bf16.msra.mxu1 %v4133_v31 }
 0x1af   :  { %3073 = vrot.lane.b32.xlu0 %v5641_v50, %s7126_s15  ;;  %7148 = sst [smem:[#allocation43_spill]] %s5767_s27  ;;  %s5869_s27 = sld [smem:[#allocation7 + $0xd]] }
 0x1b0   :  { %s7184_s11 = sld [smem:[#allocation43_spill]] }
 0x1b1   :  { %7143 = sst [smem:[#allocation32_spill]] %s5737_s4  ;;  %3075 = vrot.lane.b32.xlu1 %v5649_v28, %s7126_s15  ;;  %s5796_s15 = sld [smem:[#allocation7 + $0x23]] }
 0x1b2   :  { %s5858_s4 = sld [smem:[#allocation7 + $0x27]]  ;;  %v2116_v20 = vstv %s7177_s19  ;;  %s6048_s19 = sld [smem:[#allocation7 + $0x49]] }
 0x1b3   :  { %3127 = vrot.lane.b32.xlu0 %v5641_v50, %s7127_s18  ;;  %7154 = sst [smem:[#allocation48_spill]] %s5807_s9  ;;  %v2364_v42 = vstv %s5807_s9  ;;  %s6134_s9 = sld [smem:[#allocation7 + $0x34]] }
 0x1b4   :  { %7189 = sst [smem:[#allocation60_spill]] %s6055_s1 }
 0x1b5   :  { %3129 = vrot.lane.b32.xlu1 %v5649_v28, %s7127_s18  ;;  %7164 = sst [smem:[#allocation18_spill]] %s5869_s27  ;;  %s5894_s18 = sld [smem:[#allocation7 + $0xe]] }
 0x1b6   :  { %s5908_s27 = sld [smem:[#allocation7 + $0xf]] }
 0x1b7   :  { %7153 = sst [smem:[#allocation33_spill]] %s5796_s15  ;;  %s5813_s15 = sld [smem:[#allocation7 + $0x25]]  ;;  %3181 = vrot.lane.b32.xlu0 %v5641_v50, %s7128_s21 }
 0x1b8   :  { %7162 = sst [smem:[#allocation15_spill]] %s5858_s4  ;;  %s5906_s4 = sld [smem:[#allocation7 + $0x44]] }
 0x1b9   :  { %3183 = vrot.lane.b32.xlu1 %v5649_v28, %s7128_s21  ;;  %s5871_s21 = sld [smem:[#allocation7 + $0x28]] }
 0x1ba   :  { %s7201_s1 = sld [smem:[#allocation15_spill]] }
 0x1bb   :  { %3235 = vrot.lane.b32.xlu0 %v5641_v50, %s7129_s22  ;;  %7167 = sst [smem:[#allocation51_spill]] %s5894_s18  ;;  %v2839_v50 = vstv %s5671_s3  ;;  %s7199_s3 = sld [smem:[#allocation42_spill]] }
 0x1bc   :  { %7169 = sst [smem:[#allocation53_spill]] %s5908_s27  ;;  %s7180_s27 = sld [smem:[#allocation32_spill]] }
 0x1bd   :  { %7156 = sst [smem:[#allocation35_spill]] %s5813_s15  ;;  %s5860_s15 = sld [smem:[#allocation7 + $0x42]]  ;;  %3237 = vrot.lane.b32.xlu1 %v5649_v28, %s7129_s22  ;;  %v4091_v28 = vpack.c.bf16 %v3364_v15, %v3363_v38  ;;  %v2240_v38 = vstv %s7183_s5  ;;  %v2256_v15 = vstv %s7184_s11 }
 0x1be   :  { %s5970_s22 = sld [smem:[#allocation7 + $0x46]]  ;;  %s7194_s13 = sld [smem:[#allocation35_spill]] }
 0x1bf   :  { %7165 = sst [smem:[#allocation19_spill]] %s5871_s21  ;;  %s5917_s21 = sld [smem:[#allocation7 + $0x2a]]  ;;  %4092 = vmatprep.subr.bf16.mxu0 %v4091_v28  ;;  %v2278_v28 = vstv %s7185_s23 }
 0x1c0   :  { %4094 = vmatpush3.bf16.msra.mxu0 %v4093_v62  ;;  %v6070_v62 = vmul.f32 %v2839_v50, %v5635_v23  ;;  %s7196_s11 = sld [smem:[#allocation40_spill]]  ;;  %7197 = sst [smem:[#allocation35_spill]] %s6077_s20  ;;  %v2409_v23 = vstv %s7191_s12  ;;  %v2533_v2 = vstv %s7201_s1 }
 0x1c1   :  { %4096 = vmatprep.subr.bf16.mxu0 %v4095_v30  ;;  %s6079_s23 = sld [smem:[#allocation7 + $0x4b]]  ;;  %s6092_s20 = sld [smem:[#allocation7 + $0x31]]  ;;  %v2495_v30 = vstv %s7199_s3 }
 0x1c2   :  { %v2170_v13 = vstv %s7180_s27  ;;  %s7190_s27 = sld [smem:[#allocation33_spill]]  ;;  %s7204_s30 = sld [smem:[#allocation19_spill]] }
 0x1c3   :  { %7163 = sst [smem:[#allocation16_spill]] %s5860_s15  ;;  %s7173_s15 = sld [smem:[#allocation26_spill]] }
 0x1c4   :  { %7175 = sst [smem:[#allocation57_spill]] %s5970_s22  ;;  %4098 = vmatpush3.bf16.msra.mxu0 %v4097_v0  ;;  %s7202_s2 = sld [smem:[#allocation16_spill]]  ;;  %v2425_v10 = vstv %s7194_s13 }
 0x1c5   :  { %7170 = sst [smem:[#allocation54_spill]] %s5917_s21  ;;  %s5992_s21 = sld [smem:[#allocation7 + $0x11]]  ;;  %4100 = vmatprep.subr.bf16.mxu0 %v4099_v22 }
 0x1c6   :  { %7192 = sst [smem:[#allocation33_spill]] %s6061_s10  ;;  %s7200_s10 = sld [smem:[#allocation46_spill]]  ;;  %v2479_v53 = vstv %s7196_s11 }
 0x1c7   :  { %7198 = sst [smem:[#allocation40_spill]] %s6079_s23  ;;  %s7203_s23 = sld [smem:[#allocation18_spill]] }
 0x1c8   :  { %v2348_v50 = vstv %s7190_s27  ;;  %4102 = vmatpush3.bf16.msra.mxu0 %v4101_v5  ;;  %s6098_s5 = sld [smem:[#allocation7 + $0x4c]]  ;;  %s7208_s12 = sld [smem:[#allocation54_spill]]  ;;  %v2587_v54 = vstv %s7204_s30 }
 0x1c9   :  { %v2062_v43 = vstv %s7173_s15  ;;  %s6031_s15 = sld [smem:[#allocation7 + $0x47]]  ;;  %4136 = vmatprep.subr.bf16.mxu0 %v4135_v59  ;;  %s7211_s1 = sld [smem:[#allocation59_spill]] }
 0x1ca   :  { %v2549_v48 = vstv %s7202_s2  ;;  %7210 = sst [smem:[#allocation54_spill]] %s6106_s14  ;;  %s6118_s2 = sld [smem:[#allocation7 + $0x18]] }
 0x1cb   :  { %s7212_s3 = sld [smem:[#allocation60_spill]]  ;;  %s7214_s30 = sld [smem:[#allocation61_spill]] }
 0x1cc   :  { %v2517_v36 = vstv %s7200_s10  ;;  %s6120_s10 = sld [smem:[#allocation7 + $0x33]]  ;;  %s7215_s8 = sld [smem:[#allocation35_spill]] }
 0x1cd   :  { %v2571_v0 = vstv %s7203_s23  ;;  %s7213_s23 = sld [smem:[#allocation33_spill]]  ;;  %s7216_s18 = sld [smem:[#allocation40_spill]] }
 0x1ce   :  { %7217 = sst [smem:[#allocation59_spill]] %s6134_s9  ;;  %s6309_s27 = sld [smem:[#allocation7 + $0x4f]] }
 0x1cf   :  { %s7251_s26 = sld [smem:[#allocation51_spill]]  ;;  %s7256_s13 = sld [smem:[#allocation53_spill]] }
 0x1d0   :  { %s7268_s14 = sld [smem:[#allocation57_spill]]  ;;  %s6467_s11 = sld [smem:[#allocation7 + $0x35]] }
 0x1d1   :  { %v1948_v31 = vpop.permute.xlu0 %1947  ;;  %s7322_s9 = sld [smem:[#allocation67_spill]] }
 0x1d3   :  { %v1950_v5 = vpop.permute.xlu1 %1949 }
 0x1d4   :  { %v1951_v59 = vsel %vm108_vm2, %v1948_v31, %v1950_v5  ;;  %v1952_v35 = vsel %vm108_vm2, %v1950_v5, %v1948_v31  ;;  %v3134_v5 = vstv %s6118_s2  ;;  %v3150_v31 = vstv %s6120_s10 }
 0x1d5   :  { %v1955_v8 = vmul.f32 %v1954_v63, %v1951_v59  ;;  %v1956_v12 = vmul.f32 %v1954_v63, %v1952_v35  ;;  %v1971_v22 = vmul.f32 %v1970_v55, %v1951_v59  ;;  %v1972_v18 = vmul.f32 %v1970_v55, %v1952_v35  ;;  %v2002_v58 = vpop.permute.xlu0 %2001 }
 0x1d6   :  { %v1987_v61 = vmul.f32 %v1986_v3, %v1951_v59  ;;  %v1988_v16 = vmul.f32 %v1986_v3, %v1952_v35 }
 0x1d7   :  { %v1959_v27 = vcombine.low %v1955_v8, %v1956_v12  ;;  %v1975_v19 = vcombine.low %v1971_v22, %v1972_v18  ;;  %v2004_v63 = vpop.permute.xlu1 %2003 }
 0x1d8   :  { %v1991_v34 = vcombine.low %v1987_v61, %v1988_v16  ;;  %v2005_v55 = vsel %vm163_vm0, %v2002_v58, %v2004_v63  ;;  %v2006_v59 = vsel %vm163_vm0, %v2004_v63, %v2002_v58 }
 0x1d9   :  { %v1966_v3 = vrot.slane %v1959_v27, %v4354_v6  ;;  %v1982_v35 = vrot.slane %v1975_v19, %v4354_v6  ;;  %v2009_v12 = vmul.f32 %v2008_v7, %v2005_v55  ;;  %v2010_v22 = vmul.f32 %v2008_v7, %v2006_v59  ;;  %v2056_v8 = vpop.permute.xlu0 %2055 }
 0x1da   :  { %v1998_v61 = vrot.slane %v1991_v34, %v4354_v6  ;;  %v2025_v18 = vmul.f32 %v2024_v1, %v2005_v55  ;;  %v2026_v16 = vmul.f32 %v2024_v1, %v2006_v59  ;;  %v2041_v58 = vmul.f32 %v2040_v17, %v2005_v55 }
 0x1db   :  { %v1968_v27 = vadd.f32 %v1966_v3, %v5967_v51  ;;  %v1984_v19 = vadd.f32 %v1982_v35, %v5984_v39  ;;  %v2013_v63 = vcombine.low %v2009_v12, %v2010_v22  ;;  %v2042_v7 = vmul.f32 %v2040_v17, %v2006_v59  ;;  %v2058_v26 = vpop.permute.xlu1 %2057 }
 0x1dc   :  { %v2000_v34 = vadd.f32 %v1998_v61, %v5989_v57  ;;  %v2029_v14 = vcombine.low %v2025_v18, %v2026_v16  ;;  %v2059_v1 = vsel %vm218_vm1, %v2056_v8, %v2058_v26  ;;  %v2060_v55 = vsel %vm218_vm1, %v2058_v26, %v2056_v8 }
 0x1dd   :  { %v2020_v51 = vrot.slane %v2013_v63, %v4354_v6  ;;  %v2045_v3 = vcombine.low %v2041_v58, %v2042_v7  ;;  %v2063_v39 = vmul.f32 %v2062_v43, %v2059_v1  ;;  %v2064_v35 = vmul.f32 %v2062_v43, %v2060_v55  ;;  %v2110_v12 = vpop.permute.xlu0 %2109 }
 0x1de   :  { %v2036_v17 = vrot.slane %v2029_v14, %v4354_v6  ;;  %v2079_v57 = vmul.f32 %v2078_v33, %v2059_v1  ;;  %v2080_v59 = vmul.f32 %v2078_v33, %v2060_v55  ;;  %v2095_v22 = vmul.f32 %v2094_v52, %v2059_v1 }
 0x1df   :  { %v2022_v61 = vadd.f32 %v2020_v51, %v1968_v27  ;;  %v2052_v26 = vrot.slane %v2045_v3, %v4354_v6  ;;  %v2067_v8 = vcombine.low %v2063_v39, %v2064_v35  ;;  %v2096_v18 = vmul.f32 %v2094_v52, %v2060_v55  ;;  %v2112_v43 = vpop.permute.xlu1 %2111 }
 0x1e0   :  { %v2038_v16 = vadd.f32 %v2036_v17, %v1984_v19  ;;  %v2083_v14 = vcombine.low %v2079_v57, %v2080_v59  ;;  %v2113_v58 = vsel %vm273_vm3, %v2110_v12, %v2112_v43  ;;  %v2114_v33 = vsel %vm273_vm3, %v2112_v43, %v2110_v12 }
 0x1e1   :  { %v2054_v63 = vadd.f32 %v2052_v26, %v2000_v34  ;;  %v2074_v27 = vrot.slane %v2067_v8, %v4354_v6  ;;  %v2099_v7 = vcombine.low %v2095_v22, %v2096_v18  ;;  %v2117_v1 = vmul.f32 %v2116_v20, %v2113_v58  ;;  %v2164_v51 = vpop.permute.xlu0 %2163 }
 0x1e2   :  { %v2090_v52 = vrot.slane %v2083_v14, %v4354_v6  ;;  %v2118_v19 = vmul.f32 %v2116_v20, %v2114_v33  ;;  %v2133_v55 = vmul.f32 %v2132_v24, %v2113_v58  ;;  %v2134_v3 = vmul.f32 %v2132_v24, %v2114_v33 }
 0x1e3   :  { %v2076_v39 = vadd.f32 %v2074_v27, %v2022_v61  ;;  %v2106_v35 = vrot.slane %v2099_v7, %v4354_v6  ;;  %v2149_v34 = vmul.f32 %v2148_v41, %v2113_v58  ;;  %v2150_v12 = vmul.f32 %v2148_v41, %v2114_v33  ;;  %v2166_v17 = vpop.permute.xlu1 %2165 }
 0x1e4   :  { %v2092_v57 = vadd.f32 %v2090_v52, %v2038_v16  ;;  %v2121_v59 = vcombine.low %v2117_v1, %v2118_v19  ;;  %v2137_v20 = vcombine.low %v2133_v55, %v2134_v3  ;;  %v2167_v22 = vsel %vm328_vm4, %v2164_v51, %v2166_v17 }
 0x1e5   :  { %v2108_v24 = vadd.f32 %v2106_v35, %v2054_v63  ;;  %v2153_v61 = vcombine.low %v2149_v34, %v2150_v12  ;;  %v2168_v26 = vsel %vm328_vm4, %v2166_v17, %v2164_v51  ;;  %v2171_v8 = vmul.f32 %v2170_v13, %v2167_v22  ;;  %v2218_v18 = vpop.permute.xlu0 %2217 }
 0x1e6   :  { %v2128_v41 = vrot.slane %v2121_v59, %v4354_v6  ;;  %v2144_v43 = vrot.slane %v2137_v20, %v4354_v6  ;;  %v2172_v16 = vmul.f32 %v2170_v13, %v2168_v26  ;;  %v2187_v14 = vmul.f32 %v2186_v9, %v2167_v22 }
 0x1e7   :  { %v2160_v58 = vrot.slane %v2153_v61, %v4354_v6  ;;  %v2188_v33 = vmul.f32 %v2186_v9, %v2168_v26  ;;  %v2203_v63 = vmul.f32 %v2202_v29, %v2167_v22  ;;  %v2204_v27 = vmul.f32 %v2202_v29, %v2168_v26  ;;  %v2220_v7 = vpop.permute.xlu1 %2219 }
 0x1e8   :  { %v2130_v1 = vadd.f32 %v2128_v41, %v2076_v39  ;;  %v2146_v51 = vadd.f32 %v2144_v43, %v2092_v57  ;;  %v2175_v52 = vcombine.low %v2171_v8, %v2172_v16  ;;  %v2221_v13 = vsel %vm383_vm5, %v2218_v18, %v2220_v7 }
 0x1e9   :  { %v2162_v19 = vadd.f32 %v2160_v58, %v2108_v24  ;;  %v2191_v55 = vcombine.low %v2187_v14, %v2188_v33  ;;  %v2207_v3 = vcombine.low %v2203_v63, %v2204_v27  ;;  %v2222_v9 = vsel %vm383_vm5, %v2220_v7, %v2218_v18  ;;  %v2272_v35 = vpop.permute.xlu0 %2271 }
 0x1ea   :  { %v2182_v34 = vrot.slane %v2175_v52, %v4354_v6  ;;  %v2225_v29 = vmul.f32 %v2224_v44, %v2221_v13  ;;  %v2226_v39 = vmul.f32 %v2224_v44, %v2222_v9  ;;  %v2241_v12 = vmul.f32 %v2240_v38, %v2221_v13 }
 0x1eb   :  { %v2198_v17 = vrot.slane %v2191_v55, %v4354_v6  ;;  %v2214_v57 = vrot.slane %v2207_v3, %v4354_v6  ;;  %v2242_v59 = vmul.f32 %v2240_v38, %v2222_v9  ;;  %v2257_v20 = vmul.f32 %v2256_v15, %v2221_v13  ;;  %v2274_v22 = vpop.permute.xlu1 %2273 }
 0x1ec   :  { %v2184_v24 = vadd.f32 %v2182_v34, %v2130_v1  ;;  %v2229_v61 = vcombine.low %v2225_v29, %v2226_v39  ;;  %v2258_v44 = vmul.f32 %v2256_v15, %v2222_v9  ;;  %v2275_v26 = vsel %vm438_vm6, %v2272_v35, %v2274_v22 }
 0x1ed   :  { %v2200_v8 = vadd.f32 %v2198_v17, %v2146_v51  ;;  %v2216_v18 = vadd.f32 %v2214_v57, %v2162_v19  ;;  %v2245_v41 = vcombine.low %v2241_v12, %v2242_v59  ;;  %v2276_v38 = vsel %vm438_vm6, %v2274_v22, %v2272_v35  ;;  %v2326_v43 = vpop.permute.xlu0 %2325 }
 0x1ee   :  { %v2236_v16 = vrot.slane %v2229_v61, %v4354_v6  ;;  %v2261_v14 = vcombine.low %v2257_v20, %v2258_v44  ;;  %v2279_v58 = vmul.f32 %v2278_v28, %v2275_v26  ;;  %v2280_v33 = vmul.f32 %v2278_v28, %v2276_v38 }
 0x1ef   :  { %v2252_v15 = vrot.slane %v2245_v41, %v4354_v6  ;;  %v2295_v63 = vmul.f32 %v2294_v46, %v2275_v26  ;;  %v2296_v27 = vmul.f32 %v2294_v46, %v2276_v38  ;;  %v2311_v7 = vmul.f32 %v2310_v56, %v2275_v26  ;;  %v2328_v1 = vpop.permute.xlu1 %2327 }
 0x1f0   :  { %v2238_v51 = vadd.f32 %v2236_v16, %v2184_v24  ;;  %v2268_v52 = vrot.slane %v2261_v14, %v4354_v6  ;;  %v2283_v13 = vcombine.low %v2279_v58, %v2280_v33  ;;  %v2312_v19 = vmul.f32 %v2310_v56, %v2276_v38 }
 0x1f1   :  { %v2254_v28 = vadd.f32 %v2252_v15, %v2200_v8  ;;  %v2299_v55 = vcombine.low %v2295_v63, %v2296_v27  ;;  %v2329_v3 = vsel %vm493_vm7, %v2326_v43, %v2328_v1  ;;  %v2330_v46 = vsel %vm493_vm7, %v2328_v1, %v2326_v43  ;;  %v2403_v9 = vpop.permute.xlu0 %2402 }
 0x1f2   :  { %v2270_v35 = vadd.f32 %v2268_v52, %v2216_v18  ;;  %v2290_v34 = vrot.slane %v2283_v13, %v4354_v6  ;;  %v2315_v29 = vcombine.low %v2311_v7, %v2312_v19  ;;  %v2333_v39 = vmul.f32 %v2332_v40, %v2329_v3 }
 0x1f3   :  { %v2306_v12 = vrot.slane %v2299_v55, %v4354_v6  ;;  %v2334_v56 = vmul.f32 %v2332_v40, %v2330_v46  ;;  %v2349_v17 = vmul.f32 %v2348_v50, %v2329_v3  ;;  %v2350_v57 = vmul.f32 %v2348_v50, %v2330_v46  ;;  %v2405_v59 = vpop.permute.xlu1 %2404 }
 0x1f4   :  { %v2292_v20 = vadd.f32 %v2290_v34, %v2238_v51  ;;  %v2322_v22 = vrot.slane %v2315_v29, %v4354_v6  ;;  %v2365_v24 = vmul.f32 %v2364_v42, %v2329_v3  ;;  %v2366_v61 = vmul.f32 %v2364_v42, %v2330_v46 }
 0x1f5   :  { %v2308_v44 = vadd.f32 %v2306_v12, %v2254_v28  ;;  %v2337_v26 = vcombine.low %v2333_v39, %v2334_v56  ;;  %v2353_v40 = vcombine.low %v2349_v17, %v2350_v57  ;;  %v2406_v8 = vsel %vm108_vm2, %v2403_v9, %v2405_v59  ;;  %v2457_v50 = vpop.permute.xlu0 %2456 }
 0x1f6   :  { %v2324_v18 = vadd.f32 %v2322_v22, %v2270_v35  ;;  %v2369_v41 = vcombine.low %v2365_v24, %v2366_v61  ;;  %v2407_v38 = vsel %vm108_vm2, %v2405_v59, %v2403_v9  ;;  %v2410_v43 = vmul.f32 %v2409_v23, %v2406_v8 }
 0x1f7   :  { %v2344_v42 = vrot.slane %v2337_v26, %v4354_v6  ;;  %v2360_v16 = vrot.slane %v2353_v40, %v4354_v6  ;;  %v2411_v14 = vmul.f32 %v2409_v23, %v2407_v38  ;;  %v2426_v58 = vmul.f32 %v2425_v10, %v2406_v8  ;;  %v2459_v33 = vpop.permute.xlu1 %2458 }
 0x1f8   :  { %v2376_v15 = vrot.slane %v2369_v41, %v4354_v6  ;;  %v2427_v63 = vmul.f32 %v2425_v10, %v2407_v38  ;;  %v2442_v27 = vmul.f32 %v2441_v25, %v2406_v8  ;;  %v2443_v7 = vmul.f32 %v2441_v25, %v2407_v38 }
 0x1f9   :  { %v2346_v1 = vadd.f32 %v2344_v42, %v2292_v20  ;;  %v2362_v51 = vadd.f32 %v2360_v16, %v2308_v44  ;;  %v2414_v52 = vcombine.low %v2410_v43, %v2411_v14  ;;  %v2460_v23 = vsel %vm163_vm0, %v2457_v50, %v2459_v33  ;;  %v2511_v13 = vpop.permute.xlu0 %2510 }
 0x1fa   :  { %v2378_v19 = vadd.f32 %v2376_v15, %v2324_v18  ;;  %v2430_v28 = vcombine.low %v2426_v58, %v2427_v63  ;;  %v2446_v55 = vcombine.low %v2442_v27, %v2443_v7  ;;  %v2461_v10 = vsel %vm163_vm0, %v2459_v33, %v2457_v50 }
 0x1fb   :  { %v2382_v25 = vadd.f32 %v6007_v45, %v2346_v1  ;;  %v2386_v3 = vadd.f32 %v6012_v37, %v2362_v51  ;;  %v2421_v46 = vrot.slane %v2414_v52, %v4354_v6  ;;  %v2464_v9 = vmul.f32 %v2463_v4, %v2460_v23  ;;  %v2513_v35 = vpop.permute.xlu1 %2512 }
 0x1fc   :  { %v2390_v34 = vadd.f32 %v6029_v60, %v2378_v19  ;;  %v2437_v29 = vrot.slane %v2430_v28, %v4354_v6  ;;  %v2453_v39 = vrot.slane %v2446_v55, %v4354_v6  ;;  %v2465_v12 = vmul.f32 %v2463_v4, %v2461_v10 }
 0x1fd   :  { %v2480_v56 = vmul.f32 %v2479_v53, %v2460_v23  ;;  %v2481_v45 = vmul.f32 %v2479_v53, %v2461_v10  ;;  %v2496_v37 = vmul.f32 %v2495_v30, %v2460_v23  ;;  %v2565_v17 = vpop.permute.xlu0 %2564  ;;  %v3220_v57 = vstv %s6309_s27 }
 0x1fe   :  { %v2423_v59 = vadd.f32 %v2421_v46, %v2382_v25  ;;  %v2439_v60 = vadd.f32 %v2437_v29, %v2386_v3  ;;  %v2468_v20 = vcombine.low %v2464_v9, %v2465_v12  ;;  %v2497_v22 = vmul.f32 %v2495_v30, %v2461_v10 }
 0x1ff   :  { %v2455_v24 = vadd.f32 %v2453_v39, %v2390_v34  ;;  %v2484_v4 = vcombine.low %v2480_v56, %v2481_v45  ;;  %v2514_v61 = vsel %vm218_vm1, %v2511_v13, %v2513_v35  ;;  %v2515_v53 = vsel %vm218_vm1, %v2513_v35, %v2511_v13  ;;  %v2567_v44 = vpop.permute.xlu1 %2566 }
 0x200   :  { %v2475_v26 = vrot.slane %v2468_v20, %v4354_v6  ;;  %v2500_v40 = vcombine.low %v2496_v37, %v2497_v22  ;;  %v2518_v8 = vmul.f32 %v2517_v36, %v2514_v61  ;;  %v2519_v50 = vmul.f32 %v2517_v36, %v2515_v53 }
 0x201   :  { %v2491_v18 = vrot.slane %v2484_v4, %v4354_v6  ;;  %v2534_v30 = vmul.f32 %v2533_v2, %v2514_v61  ;;  %v2535_v41 = vmul.f32 %v2533_v2, %v2515_v53  ;;  %v2550_v38 = vmul.f32 %v2549_v48, %v2514_v61  ;;  %v2619_v43 = vpop.permute.xlu0 %2618 }
 0x202   :  { %v2477_v42 = vadd.f32 %v2475_v26, %v2423_v59  ;;  %v2507_v16 = vrot.slane %v2500_v40, %v4354_v6  ;;  %v2522_v14 = vcombine.low %v2518_v8, %v2519_v50  ;;  %v2551_v58 = vmul.f32 %v2549_v48, %v2515_v53 }
 0x203   :  { %v2493_v36 = vadd.f32 %v2491_v18, %v2439_v60  ;;  %v2538_v33 = vcombine.low %v2534_v30, %v2535_v41  ;;  %v2568_v15 = vsel %vm273_vm3, %v2565_v17, %v2567_v44  ;;  %v2569_v2 = vsel %vm273_vm3, %v2567_v44, %v2565_v17  ;;  %v2621_v63 = vpop.permute.xlu1 %2620 }
 0x204   :  { %v2509_v27 = vadd.f32 %v2507_v16, %v2455_v24  ;;  %v2529_v7 = vrot.slane %v2522_v14, %v4354_v6  ;;  %v2554_v1 = vcombine.low %v2550_v38, %v2551_v58  ;;  %v2572_v51 = vmul.f32 %v2571_v0, %v2568_v15 }
 0x205   :  { %v2545_v52 = vrot.slane %v2538_v33, %v4354_v6  ;;  %v2573_v48 = vmul.f32 %v2571_v0, %v2569_v2  ;;  %v2588_v23 = vmul.f32 %v2587_v54, %v2568_v15  ;;  %v2589_v13 = vmul.f32 %v2587_v54, %v2569_v2  ;;  %v2673_v19 = vpop.permute.xlu0 %2672 }
 0x206   :  { %v2531_v28 = vadd.f32 %v2529_v7, %v2477_v42  ;;  %v2561_v55 = vrot.slane %v2554_v1, %v4354_v6  ;;  %v2604_v10 = vmul.f32 %v2603_v11, %v2568_v15  ;;  %v2605_v25 = vmul.f32 %v2603_v11, %v2569_v2 }
 0x207   :  { %v2547_v3 = vadd.f32 %v2545_v52, %v2493_v36  ;;  %v2576_v46 = vcombine.low %v2572_v51, %v2573_v48  ;;  %v2592_v0 = vcombine.low %v2588_v23, %v2589_v13  ;;  %v2622_v9 = vsel %vm328_vm4, %v2619_v43, %v2621_v63  ;;  %v2675_v54 = vpop.permute.xlu1 %2674 }
 0x208   :  { %v2563_v35 = vadd.f32 %v2561_v55, %v2509_v27  ;;  %v2608_v34 = vcombine.low %v2604_v10, %v2605_v25  ;;  %v2623_v29 = vsel %vm328_vm4, %v2621_v63, %v2619_v43  ;;  %v7253_v39 = vstv %s7251_s26  ;;  %s4285_s26 = smov [#allocation10]  }
 0x209   :  { %v2626_v12 = vmul.f32 %v7253_v39, %v2622_v9  ;;  %v2583_v56 = vrot.slane %v2576_v46, %v4354_v6  ;;  %v2599_v11 = vrot.slane %v2592_v0, %v4354_v6  ;;  %v7254_v45 = vmov %v7253_v39  ;;  %v2727_v60 = vpop.permute.xlu0 %2726 }
 0x20a   :  { %v2627_v37 = vmul.f32 %v7254_v45, %v2623_v29  ;;  %v7255_v17 = vstv %s7252_s0  ;;  %v2615_v20 = vrot.slane %v2608_v34, %v4354_v6  ;;  %v7258_v4 = vstv %s5906_s4  ;;  %s7266_s4 = sld [smem:[#allocation56_spill]]  ;;  %s3745_s0 = sshll.u32 %s4285_s26, 4  ;;  %s3746_s0 = int_to_ptr.vmem [resolvable:$true] %s3745_s0 }
 0x20b   :  { %v2642_v59 = vmul.f32 %v7255_v17, %v2622_v9  ;;  %v7257_v22 = vmov %v7255_v17  ;;  %v2658_v61 = vmul.f32 %v7258_v4, %v2622_v9  ;;  %v7259_v53 = vmov %v7258_v4  ;;  %v2729_v18 = vpop.permute.xlu1 %2728  ;;  %p4244_p7 = scmp.lt.s32.totalorder %s3746_s0, %s3746_s0 }
 0x20c   :  { %v2643_v24 = vmul.f32 %v7257_v22, %v2623_v29  ;;  %v2659_v44 = vmul.f32 %v7259_v53, %v2623_v29  ;;  %v2585_v26 = vadd.f32 %v2583_v56, %v2531_v28  ;;  %v2601_v40 = vadd.f32 %v2599_v11, %v2547_v3 }
 0x20d   :  { %v2630_v8 = vcombine.low %v2626_v12, %v2627_v37  ;;  %v2676_v50 = vsel %vm383_vm5, %v2673_v19, %v2675_v54  ;;  %v2617_v30 = vadd.f32 %v2615_v20, %v2563_v35  ;;  %v2677_v43 = vsel %vm383_vm5, %v2675_v54, %v2673_v19  ;;  %v2781_v2 = vpop.permute.xlu0 %2780 }
 0x20e   :  { %v2646_v41 = vcombine.low %v2642_v59, %v2643_v24  ;;  %v2662_v38 = vcombine.low %v2658_v61, %v2659_v44  ;;  %v7261_v16 = vstv %s7256_s13  ;;  %v7263_v33 = vstv %s7208_s12  ;;  %s7274_s12 = sld [smem:[#allocation58_spill]]  ;;  %s4239_s13 = scalar_lea.vmem %s3746_s0, 32 }
 0x20f   :  { %v2637_v42 = vrot.slane %v2630_v8, %v4354_v6  ;;  %v2680_v14 = vmul.f32 %v7261_v16, %v2676_v50  ;;  %v7262_v58 = vmov %v7261_v16  ;;  %v2696_v15 = vmul.f32 %v7263_v33, %v2676_v50  ;;  %v2783_v55 = vpop.permute.xlu1 %2782  ;;  %p4240_p6 = scmp.ne.s32.totalorder %s3746_s0, %s4239_s13  ;;  %p4245_p8 = scmp.lt.s32.totalorder %s4239_s13, %s4239_s13 }
 0x210   :  { %v2681_v36 = vmul.f32 %v7262_v58, %v2677_v43  ;;  %v2653_v63 = vrot.slane %v2646_v41, %v4354_v6  ;;  %v2669_v27 = vrot.slane %v2662_v38, %v4354_v6  ;;  %v7264_v7 = vmov %v7263_v33 }
 0x211   :  { %v2697_v1 = vmul.f32 %v7264_v7, %v2677_v43  ;;  %v7265_v51 = vstv %s7260_s16  ;;  %v2639_v48 = vadd.f32 %v2637_v42, %v2585_v26  ;;  %v2730_v28 = vsel %vm438_vm6, %v2727_v60, %v2729_v18  ;;  %v2858_v39 = vpop.permute.xlu0 %2857  ;;  %p4246_p9 = por %p4245_p8, %p4244_p7 }
 0x212   :  { %v2712_v52 = vmul.f32 %v7265_v51, %v2676_v50  ;;  %v2684_v23 = vcombine.low %v2680_v14, %v2681_v36  ;;  %v7267_v13 = vmov %v7265_v51  ;;  %v2655_v10 = vadd.f32 %v2653_v63, %v2601_v40 }
 0x213   :  { %v2713_v19 = vmul.f32 %v7267_v13, %v2677_v43  ;;  %v2671_v25 = vadd.f32 %v2669_v27, %v2617_v30  ;;  %v2700_v3 = vcombine.low %v2696_v15, %v2697_v1  ;;  %v2731_v46 = vsel %vm438_vm6, %v2729_v18, %v2727_v60  ;;  %v2860_v61 = vpop.permute.xlu1 %2859  ;;  %p4247_p10 = pnand %p4246_p9, %p4240_p6 }
 0x214   :  { %v2691_v0 = vrot.slane %v2684_v23, %v4354_v6  ;;  %v7269_v54 = vstv %s5941_s7  ;;  %v7271_v56 = vstv %s7266_s4  ;;  %v7273_v17 = vstv %s7268_s14  ;;  %s6465_s7 = sld [smem:[#allocation7 + $0x1a]] }
 0x215   :  { %v2716_v9 = vcombine.low %v2712_v52, %v2713_v19  ;;  %v2734_v35 = vmul.f32 %v7269_v54, %v2730_v28  ;;  %v7270_v34 = vmov %v7269_v54  ;;  %v2707_v12 = vrot.slane %v2700_v3, %v4354_v6  ;;  %v2912_v38 = vpop.permute.xlu0 %2911 }
 0x216   :  { %v2735_v29 = vmul.f32 %v7270_v34, %v2731_v46  ;;  %v2750_v11 = vmul.f32 %v7271_v56, %v2730_v28  ;;  %v7272_v45 = vmov %v7271_v56  ;;  %v2766_v59 = vmul.f32 %v7273_v17, %v2730_v28 }
 0x217   :  { %v2751_v37 = vmul.f32 %v7272_v45, %v2731_v46  ;;  %v2693_v20 = vadd.f32 %v2691_v0, %v2639_v48  ;;  %v2723_v60 = vrot.slane %v2716_v9, %v4354_v6  ;;  %v7275_v24 = vmov %v7273_v17  ;;  %v2914_v51 = vpop.permute.xlu1 %2913 }
 0x218   :  { %v2738_v22 = vcombine.low %v2734_v35, %v2735_v29  ;;  %v2767_v4 = vmul.f32 %v7275_v24, %v2731_v46  ;;  %v2709_v53 = vadd.f32 %v2707_v12, %v2655_v10  ;;  %v2784_v26 = vsel %vm493_vm7, %v2781_v2, %v2783_v55 }
 0x219   :  { %v2754_v44 = vcombine.low %v2750_v11, %v2751_v37  ;;  %v2785_v40 = vsel %vm493_vm7, %v2783_v55, %v2781_v2  ;;  %v2725_v8 = vadd.f32 %v2723_v60, %v2671_v25  ;;  %v7276_v30 = vstv %s5992_s21  ;;  %v2966_v3 = vpop.permute.xlu0 %2965  ;;  %s6612_s21 = sld [smem:[#allocation8 + $0x1]] }
 0x21a   :  { %v2745_v50 = vrot.slane %v2738_v22, %v4354_v6  ;;  %v2770_v18 = vcombine.low %v2766_v59, %v2767_v4  ;;  %v2788_v41 = vmul.f32 %v7276_v30, %v2784_v26  ;;  %v7277_v42 = vmov %v7276_v30 }
 0x21b   :  { %v2761_v43 = vrot.slane %v2754_v44, %v4354_v6  ;;  %v2789_v16 = vmul.f32 %v7277_v42, %v2785_v40  ;;  %v7278_v14 = vstv %s7274_s12  ;;  %v7280_v2 = vstv %s6031_s15  ;;  %s6475_s15 = sld [smem:[#allocation7 + $0x50]]  ;;  %v2968_v17 = vpop.permute.xlu1 %2967 }
 0x21c   :  { %v2804_v58 = vmul.f32 %v7278_v14, %v2784_v26  ;;  %v7279_v36 = vmov %v7278_v14  ;;  %v2747_v15 = vadd.f32 %v2745_v50, %v2693_v20  ;;  %v2777_v63 = vrot.slane %v2770_v18, %v4354_v6 }
 0x21d   :  { %v2805_v33 = vmul.f32 %v7279_v36, %v2785_v40  ;;  %v2820_v27 = vmul.f32 %v7280_v2, %v2784_v26  ;;  %v7281_v7 = vmov %v7280_v2  ;;  %v2763_v52 = vadd.f32 %v2761_v43, %v2709_v53  ;;  %v3020_v44 = vpop.permute.xlu0 %3019 }
 0x21e   :  { %v2821_v1 = vmul.f32 %v7281_v7, %v2785_v40  ;;  %v2792_v48 = vcombine.low %v2788_v41, %v2789_v16  ;;  %v2861_v13 = vsel %vm108_vm2, %v2858_v39, %v2860_v61  ;;  %v2779_v19 = vadd.f32 %v2777_v63, %v2725_v8 }
 0x21f   :  { %v2808_v23 = vcombine.low %v2804_v58, %v2805_v33  ;;  %v2862_v55 = vsel %vm108_vm2, %v2860_v61, %v2858_v39  ;;  %v7282_v10 = vstv %s6038_s29  ;;  %v7284_v35 = vstv %s6046_s6  ;;  %v3022_v42 = vpop.permute.xlu1 %3021  ;;  %s7320_s6 = sld [smem:[#allocation66_spill]] }
 0x220   :  { %v2824_v28 = vcombine.low %v2820_v27, %v2821_v1  ;;  %v2865_v25 = vmul.f32 %v7282_v10, %v2861_v13  ;;  %v2799_v46 = vrot.slane %v2792_v48, %v4354_v6  ;;  %v7283_v9 = vmov %v7282_v10 }
 0x221   :  { %v2815_v0 = vrot.slane %v2808_v23, %v4354_v6  ;;  %v2866_v54 = vmul.f32 %v7283_v9, %v2862_v55  ;;  %v2881_v34 = vmul.f32 %v7284_v35, %v2861_v13  ;;  %v7285_v12 = vmov %v7284_v35 }
 0x222   :  { %v2831_v29 = vrot.slane %v2824_v28, %v4354_v6  ;;  %v2882_v56 = vmul.f32 %v7285_v12, %v2862_v55  ;;  %v7286_v11 = vstv %s6048_s19  ;;  %v2801_v59 = vadd.f32 %v2799_v46, %v2747_v15  ;;  %s6618_s19 = sld [smem:[#allocation8 + $0x2]] }
 0x223   :  { %v2897_v39 = vmul.f32 %v7286_v11, %v2861_v13  ;;  %v7287_v45 = vmov %v7286_v11  ;;  %v2817_v20 = vadd.f32 %v2815_v0, %v2763_v52  ;;  %v2869_v60 = vcombine.low %v2865_v25, %v2866_v54  ;;  %v3074_v25 = vpop.permute.xlu0 %3073  ;;  %v3076_v46 = vpop.permute.xlu1 %3075 }
 0x224   :  { %v2898_v37 = vmul.f32 %v7287_v45, %v2862_v55  ;;  %v2915_v22 = vsel %vm163_vm0, %v2912_v38, %v2914_v51  ;;  %v2833_v24 = vadd.f32 %v2831_v29, %v2779_v19  ;;  %v2885_v4 = vcombine.low %v2881_v34, %v2882_v56 }
 0x225   :  { %v2916_v53 = vsel %vm163_vm0, %v2914_v51, %v2912_v38  ;;  %v2837_v26 = vadd.f32 %v6036_v47, %v2801_v59  ;;  %v2841_v40 = vadd.f32 %v6070_v62, %v2817_v20  ;;  %v2876_v8 = vrot.slane %v2869_v60, %v4354_v6 }
 0x226   :  { %v2901_v61 = vcombine.low %v2897_v39, %v2898_v37  ;;  %v7288_v50 = vstv %s7211_s1  ;;  %v2845_v30 = vadd.f32 %v6075_v49, %v2833_v24  ;;  %v3242_v16 = vstv %s6465_s7 }
 0x227   :  { %v2919_v18 = vmul.f32 %v7288_v50, %v2915_v22  ;;  %v7289_v41 = vmov %v7288_v50  ;;  %v3258_v38 = vstv %s6467_s11  ;;  %v2892_v14 = vrot.slane %v2885_v4, %v4354_v6 }
 0x228   :  { %v2920_v43 = vmul.f32 %v7289_v41, %v2916_v53  ;;  %v7290_v58 = vstv %s7212_s3  ;;  %v7292_v62 = vstv %s7213_s23  ;;  %v2908_v63 = vrot.slane %v2901_v61, %v4354_v6  ;;  %s7319_s23 = sld [smem:[#allocation64_spill]] }
 0x229   :  { %v2935_v47 = vmul.f32 %v7290_v58, %v2915_v22  ;;  %v7291_v36 = vmov %v7290_v58  ;;  %v2951_v15 = vmul.f32 %v7292_v62, %v2915_v22  ;;  %v7293_v2 = vmov %v7292_v62 }
 0x22a   :  { %v2936_v33 = vmul.f32 %v7291_v36, %v2916_v53  ;;  %v2923_v49 = vcombine.low %v2919_v18, %v2920_v43  ;;  %v2952_v27 = vmul.f32 %v7293_v2, %v2916_v53  ;;  %v3274_v7 = vstv %s6475_s15  ;;  %v3128_v36 = vpop.permute.xlu0 %3127 }
 0x22b   :  { %v2878_v1 = vadd.f32 %v2876_v8, %v2837_v26  ;;  %v2969_v52 = vsel %vm218_vm1, %v2966_v3, %v2968_v17  ;;  %v2970_v48 = vsel %vm218_vm1, %v2968_v17, %v2966_v3  ;;  %v7294_v13 = vstv %s7214_s30  ;;  %v3130_v26 = vpop.permute.xlu1 %3129 }
 0x22c   :  { %v2939_v51 = vcombine.low %v2935_v47, %v2936_v33  ;;  %v2955_v23 = vcombine.low %v2951_v15, %v2952_v27  ;;  %v2973_v19 = vmul.f32 %v7294_v13, %v2969_v52  ;;  %v7295_v28 = vmov %v7294_v13 }
 0x22d   :  { %v2974_v55 = vmul.f32 %v7295_v28, %v2970_v48  ;;  %v3023_v10 = vsel %vm273_vm3, %v3020_v44, %v3022_v42  ;;  %v2894_v0 = vadd.f32 %v2892_v14, %v2841_v40  ;;  %v7296_v9 = vstv %s7215_s8  ;;  %s7303_s8 = sld [smem:[#allocation62_spill]] }
 0x22e   :  { %v2989_v54 = vmul.f32 %v7296_v9, %v2969_v52  ;;  %v7297_v35 = vmov %v7296_v9  ;;  %v7298_v29 = vstv %s7216_s18  ;;  %v2910_v12 = vadd.f32 %v2908_v63, %v2845_v30  ;;  %s7306_s18 = sld [smem:[#allocation54_spill]] }
 0x22f   :  { %v2990_v34 = vmul.f32 %v7297_v35, %v2970_v48  ;;  %v3005_v3 = vmul.f32 %v7298_v29, %v2969_v52  ;;  %v2930_v56 = vrot.slane %v2923_v49, %v4354_v6  ;;  %v2977_v11 = vcombine.low %v2973_v19, %v2974_v55  ;;  %v3184_v35 = vpop.permute.xlu1 %3183 }
 0x230   :  { %v7299_v39 = vmov %v7298_v29  ;;  %v2946_v37 = vrot.slane %v2939_v51, %v4354_v6  ;;  %v3024_v59 = vsel %vm273_vm3, %v3022_v42, %v3020_v44  ;;  %v7300_v20 = vstv %s6090_s17 }
 0x231   :  { %v3006_v45 = vmul.f32 %v7299_v39, %v2970_v48  ;;  %v2993_v17 = vcombine.low %v2989_v54, %v2990_v34  ;;  %v3027_v60 = vmul.f32 %v7300_v20, %v3023_v10  ;;  %v2962_v22 = vrot.slane %v2955_v23, %v4354_v6 }
 0x232   :  { %v2984_v24 = vrot.slane %v2977_v11, %v4354_v6  ;;  %v7301_v61 = vmov %v7300_v20  ;;  %v7302_v8 = vstv %s6092_s20  ;;  %v7305_v41 = vstv %s6098_s5  ;;  %s7314_s20 = sld [smem:[#allocation59_spill]] }
 0x233   :  { %v3009_v4 = vcombine.low %v3005_v3, %v3006_v45  ;;  %v3028_v53 = vmul.f32 %v7301_v61, %v3024_v59  ;;  %v3000_v40 = vrot.slane %v2993_v17, %v4354_v6  ;;  %v3043_v50 = vmul.f32 %v7302_v8, %v3023_v10 }
 0x234   :  { %v7304_v18 = vmov %v7302_v8  ;;  %v3059_v44 = vmul.f32 %v7305_v41, %v3023_v10  ;;  %v2932_v43 = vadd.f32 %v2930_v56, %v2878_v1  ;;  %v7307_v58 = vmov %v7305_v41 }
 0x235   :  { %v3044_v30 = vmul.f32 %v7304_v18, %v3024_v59  ;;  %v3016_v42 = vrot.slane %v3009_v4, %v4354_v6  ;;  %v3031_v14 = vcombine.low %v3027_v60, %v3028_v53  ;;  %v3060_v47 = vmul.f32 %v7307_v58, %v3024_v59 }
 0x236   :  { %v2948_v33 = vadd.f32 %v2946_v37, %v2894_v0  ;;  %v3077_v15 = vsel %vm328_vm4, %v3074_v25, %v3076_v46  ;;  %v3078_v63 = vsel %vm328_vm4, %v3076_v46, %v3074_v25  ;;  %v2964_v49 = vadd.f32 %v2962_v22, %v2910_v12  ;;  %v3182_v37 = vpop.permute.xlu0 %3181 }
 0x237   :  { %v3047_v62 = vcombine.low %v3043_v50, %v3044_v30  ;;  %v2986_v2 = vadd.f32 %v2984_v24, %v2932_v43  ;;  %v3063_v27 = vcombine.low %v3059_v44, %v3060_v47  ;;  %v7308_v1 = vstv %s7303_s8 }
 0x238   :  { %v3081_v51 = vmul.f32 %v7308_v1, %v3077_v15  ;;  %v3002_v52 = vadd.f32 %v3000_v40, %v2948_v33  ;;  %v7309_v48 = vmov %v7308_v1  ;;  %v7310_v13 = vstv %s7306_s18 }
 0x239   :  { %v3082_v23 = vmul.f32 %v7309_v48, %v3078_v63  ;;  %v3097_v19 = vmul.f32 %v7310_v13, %v3077_v15  ;;  %v7311_v28 = vmov %v7310_v13  ;;  %v3018_v10 = vadd.f32 %v3016_v42, %v2964_v49 }
 0x23a   :  { %v3098_v55 = vmul.f32 %v7311_v28, %v3078_v63  ;;  %v3038_v0 = vrot.slane %v3031_v14, %v4354_v6  ;;  %v7312_v9 = vstv %s6108_s24  ;;  %v3054_v34 = vrot.slane %v3047_v62, %v4354_v6  ;;  %s6605_s24 = sld [smem:[#allocation8]] }
 0x23b   :  { %v3113_v25 = vmul.f32 %v7312_v9, %v3077_v15  ;;  %v7313_v46 = vmov %v7312_v9  ;;  %v3085_v29 = vcombine.low %v3081_v51, %v3082_v23  ;;  %v3131_v12 = vsel %vm383_vm5, %v3128_v36, %v3130_v26 }
 0x23c   :  { %v3114_v54 = vmul.f32 %v7313_v46, %v3078_v63  ;;  %v3101_v3 = vcombine.low %v3097_v19, %v3098_v55  ;;  %v3070_v56 = vrot.slane %v3063_v27, %v4354_v6  ;;  %v3132_v39 = vsel %vm383_vm5, %v3130_v26, %v3128_v36  ;;  %v3236_v63 = vpop.permute.xlu0 %3235 }
 0x23d   :  { %v3135_v45 = vmul.f32 %v3134_v5, %v3131_v12  ;;  %v3092_v17 = vrot.slane %v3085_v29, %v4354_v6  ;;  %v3136_v20 = vmul.f32 %v3134_v5, %v3132_v39  ;;  %v3151_v60 = vmul.f32 %v3150_v31, %v3131_v12 }
 0x23e   :  { %v3117_v11 = vcombine.low %v3113_v25, %v3114_v54  ;;  %v3108_v59 = vrot.slane %v3101_v3, %v4354_v6  ;;  %v3152_v24 = vmul.f32 %v3150_v31, %v3132_v39  ;;  %v3167_v4 = vmul.f32 %v3166_v32, %v3131_v12  ;;  %v3238_v31 = vpop.permute.xlu1 %3237 }
 0x23f   :  { %v3168_v61 = vmul.f32 %v3166_v32, %v3132_v39  ;;  %v3040_v53 = vadd.f32 %v3038_v0, %v2986_v2  ;;  %v3056_v26 = vadd.f32 %v3054_v34, %v3002_v52  ;;  %v3139_v40 = vcombine.low %v3135_v45, %v3136_v20 }
 0x240   :  { %v3124_v22 = vrot.slane %v3117_v11, %v4354_v6  ;;  %v3185_v5 = vsel %vm438_vm6, %v3182_v37, %v3184_v35  ;;  %v3072_v8 = vadd.f32 %v3070_v56, %v3018_v10  ;;  %v3155_v50 = vcombine.low %v3151_v60, %v3152_v24 }
 0x241   :  { %v3171_v18 = vcombine.low %v3167_v4, %v3168_v61  ;;  %v3186_v30 = vsel %vm438_vm6, %v3184_v35, %v3182_v37  ;;  %v3094_v41 = vadd.f32 %v3092_v17, %v3040_v53  ;;  %v7315_v44 = vstv %s6128_s28  ;;  %s7321_s28 = sld [smem:[#allocation65_spill]] }
 0x242   :  { %v3189_v43 = vmul.f32 %v7315_v44, %v3185_v5  ;;  %v7316_v32 = vmov %v7315_v44  ;;  %v7317_v14 = vstv %s7314_s20  ;;  %v3110_v47 = vadd.f32 %v3108_v59, %v3056_v26 }
 0x243   :  { %v3190_v42 = vmul.f32 %v7316_v32, %v3186_v30  ;;  %v3205_v58 = vmul.f32 %v7317_v14, %v3185_v5  ;;  %v3126_v36 = vadd.f32 %v3124_v22, %v3072_v8  ;;  %v7318_v33 = vmov %v7317_v14  ;;  %v3402_v8 = vld [vmem:[%s7319_s23 + $0x208] sm:$0xff] }
 0x244   :  { %v3206_v62 = vmul.f32 %v7318_v33, %v3186_v30  ;;  %v3221_v15 = vmul.f32 %v3220_v57, %v3185_v5  ;;  %v3146_v49 = vrot.slane %v3139_v40, %v4354_v6  ;;  %v3222_v27 = vmul.f32 %v3220_v57, %v3186_v30  ;;  %v3401_v5 = vld [vmem:[%s7319_s23 + $0x200] sm:$0xff]  ;;  %v3419_v30 = vld [vmem:[%s7319_s23 + $0x290] sm:$0xff]  ;;  %v3422_v33 = vld [vmem:[%s7319_s23 + $0x2a8] sm:$0xff] }
 0x245   :  { %v3193_v2 = vcombine.low %v3189_v43, %v3190_v42  ;;  %v3239_v1 = vsel %vm493_vm7, %v3236_v63, %v3238_v31  ;;  %v3162_v51 = vrot.slane %v3155_v50, %v4354_v6  ;;  %v3178_v52 = vrot.slane %v3171_v18, %v4354_v6 }
 0x246   :  { %v3209_v48 = vcombine.low %v3205_v58, %v3206_v62  ;;  %v3240_v23 = vsel %vm493_vm7, %v3238_v31, %v3236_v63  ;;  %v3225_v19 = vcombine.low %v3221_v15, %v3222_v27  ;;  %v3243_v57 = vmul.f32 %v3242_v16, %v3239_v1  ;;  %v3420_v31 = vld [vmem:[%s7319_s23 + $0x298] sm:$0xff]  ;;  %v3403_v58 = vld [vmem:[%s7319_s23 + $0x210] sm:$0xff]  ;;  %v3405_v63 = vld [vmem:[%s7319_s23 + $0x220] sm:$0xff] }
 0x247   :  { %v3200_v13 = vrot.slane %v3193_v2, %v4354_v6  ;;  %v3244_v28 = vmul.f32 %v3242_v16, %v3240_v23  ;;  %v3259_v10 = vmul.f32 %v3258_v38, %v3239_v1  ;;  %v3260_v0 = vmul.f32 %v3258_v38, %v3240_v23  ;;  %v3423_v2 = vld [vmem:[%s7319_s23 + $0x2b0] sm:$0xff]  ;;  %v3424_v27 = vld [vmem:[%s7319_s23 + $0x2b8] sm:$0xff] }
 0x248   :  { %v3216_v55 = vrot.slane %v3209_v48, %v4354_v6  ;;  %v3275_v9 = vmul.f32 %v3274_v7, %v3239_v1  ;;  %v3148_v21 = vadd.f32 %v3146_v49, %v3094_v41  ;;  %v3232_v25 = vrot.slane %v3225_v19, %v4354_v6  ;;  %v3406_v49 = vld [vmem:[%s7319_s23 + $0x228] sm:$0xff]  ;;  %v3408_v48 = vld [vmem:[%s7319_s23 + $0x238] sm:$0xff] }
 0x249   :  { %v3247_v46 = vcombine.low %v3243_v57, %v3244_v28  ;;  %v3276_v54 = vmul.f32 %v3274_v7, %v3240_v23  ;;  %v3164_v35 = vadd.f32 %v3162_v51, %v3110_v47  ;;  %v3263_v34 = vcombine.low %v3259_v10, %v3260_v0  ;;  %v3404_v47 = vld [vmem:[%s7319_s23 + $0x218] sm:$0xff]  ;;  %v3425_v23 = vld [vmem:[%s7319_s23 + $0x2c0] sm:$0xff]  ;;  %v3427_v10 = vld [vmem:[%s7319_s23 + $0x2d0] sm:$0xff] }
 0x24a   :  { %v3180_v16 = vadd.f32 %v3178_v52, %v3126_v36  ;;  %v3202_v12 = vadd.f32 %v3200_v13, %v3148_v21  ;;  %v3290_v38 = vstv %s6605_s24  ;;  %v3295_v17 = vstv %s6612_s21  ;;  %v3421_v36 = vld [vmem:[%s7319_s23 + $0x2a0] sm:$0xff]  ;;  %v3407_v52 = vld [vmem:[%s7319_s23 + $0x230] sm:$0xff] }
 0x24b   :  { %v3254_v29 = vrot.slane %v3247_v46, %v4354_v6  ;;  %v3279_v3 = vcombine.low %v3275_v9, %v3276_v54  ;;  %v3270_v56 = vrot.slane %v3263_v34, %v4354_v6  ;;  %v3218_v11 = vadd.f32 %v3216_v55, %v3164_v35  ;;  %v3426_v13 = vld [vmem:[%s7319_s23 + $0x2c8] sm:$0xff]  ;;  %v3409_v28 = vld [vmem:[%s7319_s23 + $0x240] sm:$0xff]  ;;  %v3428_v0 = vld [vmem:[%s7319_s23 + $0x2d8] sm:$0xff] }
 0x24c   :  { %v3234_v39 = vadd.f32 %v3232_v25, %v3180_v16  ;;  %v3300_v20 = vstv %s6618_s19  ;;  %v4137_v43 = vpack.c.bf16 %v3402_v8, %v3401_v5  ;;  %v4139_v14 = vpack.c.bf16 %v3420_v31, %v3419_v30  ;;  %v3410_v55 = vld [vmem:[%s7319_s23 + $0x248] sm:$0xff]  ;;  %v3411_v25 = vld [vmem:[%s7319_s23 + $0x250] sm:$0xff]  ;;  %v3412_v46 = vld [vmem:[%s7319_s23 + $0x258] sm:$0xff] }
 0x24d   :  { %v3286_v45 = vrot.slane %v3279_v3, %v4354_v6  ;;  %v3256_v37 = vadd.f32 %v3254_v29, %v3202_v12  ;;  %v3272_v59 = vadd.f32 %v3270_v56, %v3218_v11  ;;  %v4141_v62 = vpack.c.bf16 %v3404_v47, %v3403_v58  ;;  %v3429_v54 = vld [vmem:[%s7319_s23 + $0x2e0] sm:$0xff]  ;;  %v3430_v35 = vld [vmem:[%s7319_s23 + $0x2e8] sm:$0xff]  ;;  %v3431_v12 = vld [vmem:[%s7319_s23 + $0x2f0] sm:$0xff] }
 0x24e   :  { %v4143_v15 = vpack.c.bf16 %v3422_v33, %v3421_v36  ;;  %v4145_v1 = vpack.c.bf16 %v3406_v49, %v3405_v63  ;;  %v4147_v51 = vpack.c.bf16 %v3424_v27, %v3423_v2  ;;  %v4149_v19 = vpack.c.bf16 %v3408_v48, %v3407_v52  ;;  %v3413_v29 = vld [vmem:[%s7319_s23 + $0x260] sm:$0xff]  ;;  %v3414_v3 = vld [vmem:[%s7319_s23 + $0x268] sm:$0xff]  ;;  %v3432_v56 = vld [vmem:[%s7319_s23 + $0x2f8] sm:$0xff] }
 0x24f   :  { %v3288_v60 = vadd.f32 %v3286_v45, %v3234_v39  ;;  %v3291_v7 = vadd.f32 %v3290_v38, %v3256_v37  ;;  %v3296_v22 = vadd.f32 %v3295_v17, %v3272_v59  ;;  %v4151_v57 = vpack.c.bf16 %v3426_v13, %v3425_v23  ;;  %v3415_v39 = vld [vmem:[%s7319_s23 + $0x270] sm:$0xff]  ;;  %v3416_v45 = vld [vmem:[%s7319_s23 + $0x278] sm:$0xff]  ;;  %v3652_v17 = vld [vmem:[%s7320_s6] sm:$0xff] }
 0x250   :  { %v4153_v9 = vpack.c.bf16 %v3410_v55, %v3409_v28  ;;  %v4155_v21 = vpack.c.bf16 %v3428_v0, %v3427_v10  ;;  %v4157_v34 = vpack.c.bf16 %v3412_v46, %v3411_v25  ;;  %v4159_v16 = vpack.c.bf16 %v3430_v35, %v3429_v54  ;;  %v3653_v59 = vld [vmem:[%s7320_s6 + $0x8] sm:$0xff] }
 0x251   :  { %v3292_v24 = vmul.f32 0.01, %v3291_v7  ;;  %v3301_v4 = vadd.f32 %v3300_v20, %v3288_v60  ;;  %v3297_v61 = vmul.f32 0.01, %v3296_v22  ;;  %v4161_v38 = vpack.c.bf16 %v3414_v3, %v3413_v29 }
 0x252   :  { %v4163_v11 = vpack.c.bf16 %v3432_v56, %v3431_v12  ;;  %v4165_v37 = vpack.c.bf16 %v3416_v45, %v3415_v39  ;;  %v4168_v20 = vpack.c.bf16 %v3653_v59, %v3652_v17  ;;  %v4282_v60 = vmov 0.0|0.0  }
 0x253   :  { %v3293_v53 = vmax.f32 %v3291_v7, %v3292_v24  ;;  %v3302_v26 = vmul.f32 0.01, %v3301_v4  ;;  %v3298_v40 = vmax.f32 %v3296_v22, %v3297_v61  ;;  %4167 = vmatprep.subr.bf16.mxu1 %v4282_v60  ;;  %v3654_v7 = vld [vmem:[%s7320_s6 + $0x10] sm:$0xff]  ;;  %v3655_v22 = vld [vmem:[%s7320_s6 + $0x18] sm:$0xff] }
 0x254   :  { %v4171_v24 = vpack.c.bf16 %v3655_v22, %v3654_v7 }
 0x255   :  { %v3311_v50 = vrot.slane %v3293_v53, %v4354_v6  ;;  %v3303_v18 = vmax.f32 %v3301_v4, %v3302_v26  ;;  %v3322_v41 = vrot.slane %v3298_v40, %v4354_v6  ;;  %v4284_v4 = vmov 0.0   ;;  %v3947_v26 = vld [vmem:[%s7321_s28] ss:$0 sm:$0xff] }
 0x257   :  { %v3312_v44 = vcombine.high %v3311_v50, %v3311_v50  ;;  %v3333_v32 = vrot.slane %v3303_v18, %v4354_v6  ;;  %v3323_v42 = vcombine.high %v3322_v41, %v3322_v41 }
 0x259   :  { %3504 = vmatprep.mubr.f32.mxu0 %v3312_v44  ;;  %3574 = vmatprep.mubr.f32.mxu1 %v3323_v42  ;;  %v3334_v6 = vcombine.high %v3333_v32, %v3333_v32 }
 0x25a   :  { %3505 = vmatmul.mubr.f32.vlgmr.msra.gmra.mrb[0].mxu0 %v3311_v50  ;;  %3575 = vmatmul.mubr.f32.vlgmr.msra.gmra.mrb[0].mxu1 %v3322_v41 }
 0x25b   :  { %4138 = vmatpush3.bf16.msra.mxu0 %v4137_v43  ;;  %3644 = vmatprep.mubr.f32.mxu0 %v3334_v6 }
 0x25c   :  { %4140 = vmatprep.subr.bf16.mxu0 %v4139_v14  ;;  %4169 = vmatpush3.bf16.msra.mxu1 %v4168_v20  ;;  %v3948_v14 = vld [vmem:[%s7322_s9] ss:$0 sm:$0xff] }
 0x25d   :  { %4170 = vmatprep.subr.bf16.mxu1 %v4282_v60  ;;  %4068 = vmatprep.mubr.msk.f32.mxu1 %vm4283_vm8, %v4284_v4 }
 0x25f   :  { %4142 = vmatpush3.bf16.msra.mxu0 %v4141_v62 }
 0x260   :  { %4144 = vmatprep.subr.bf16.mxu0 %v4143_v15  ;;  %4172 = vmatpush3.bf16.msra.mxu1 %v4171_v24 }
 0x263   :  { %4146 = vmatpush3.bf16.msra.mxu0 %v4145_v1 }
 0x264   :  { %4148 = vmatprep.subr.bf16.mxu0 %v4147_v51 }
 0x267   :  { %4150 = vmatpush3.bf16.msra.mxu0 %v4149_v19 }
 0x268   :  { %4152 = vmatprep.subr.bf16.mxu0 %v4151_v57 }
 0x26b   :  { %4154 = vmatpush3.bf16.msra.mxu0 %v4153_v9 }
 0x26c   :  { %4156 = vmatprep.subr.bf16.mxu0 %v4155_v21 }
 0x26f   :  { %4158 = vmatpush3.bf16.msra.mxu0 %v4157_v34 }
 0x270   :  { %4160 = vmatprep.subr.bf16.mxu0 %v4159_v16 }
 0x273   :  { %4162 = vmatpush3.bf16.msra.mxu0 %v4161_v38 }
 0x274   :  { %4164 = vmatprep.subr.bf16.mxu0 %v4163_v11 }
 0x277   :  { %4166 = vmatpush3.bf16.msra.mxu0 %v4165_v37 }
 0x27a   :  { %3645 = vmatmul.mubr.f32.vlgmr.msra.gmra.mrb[2].mxu0 %v3333_v32 }
 0x32d   :  { %v3982_v61 = vpop.f32.mrb[0].mxu0  ;;  %v4017_v53 = vpop.f32.mrb[0].mxu1 }
 0x32e   :  { %v3983_v40 = vpop.f32.mrb[1].mxu0  ;;  %v4018_v8 = vpop.f32.mrb[1].mxu1 }
 0x32f   :  { %v3984_v5 = vadd.f32 %v3983_v40, %v3982_v61  ;;  %v4019_v50 = vadd.f32 %v4018_v8, %v4017_v53 }
 0x331   :  { %v3507_v18 = vadd.f32 %v3984_v5, %v3947_v26 }
 0x333   :  { %v3577_v30 = vadd.f32 %v4019_v50, %v3507_v18 }
 0x34d   :  { %v4052_v31 = vpop.f32.mrb[2].mxu0 }
 0x34e   :  { %v4053_v41 = vpop.f32.mrb[3].mxu0 }
 0x34f   :  { %v4054_v44 = vadd.f32 %v4053_v41, %v4052_v31 }
 0x351   :  { %v3647_v43 = vadd.f32 %v4054_v44, %v3577_v30 }
 0x353   :  { %v3650_v32 = vmul.f32 0.01, %v3647_v43 }
 0x355   :  { %v3651_v42 = vmax.f32 %v3647_v43, %v3650_v32 }
 0x357   :  { %4069 = vmatmul.mubr.msk.f32.vlgmr.msra.gmra.mrb[2].mxu1 %vm3663_vm9, %v3651_v42 }
 0x42a   :  { %v3733_v58 = vpop.f32.mrb[2].mxu1 }
 0x42b   :  { %v3734_v47 = vadd.f32 %v3948_v14, %v3733_v58  ;;  %v4070_v36 = vpop.f32.mrb[3].mxu1 }
 0x42d   :  { %3738 = vst.msk [vmem:[#allocation10] sm:$0x3] %vm3737_vm10, %v3734_v47 }
 0x42e   :  { %4250 = shalt.err (!%p4247_p10)
}
 0x42f   :  { %s7323_s14 = sld [smem:[#allocation68_spill]] }
 0x435   :  { %s4251_s12 = scalar_lea.hbm %s7323_s14, 32 }
 0x436   :  { %p4252_p11 = scmp.ne.s32.totalorder %s7323_s14, %s4251_s12  ;;  %p4255_p12 = scmp.lt.u32.totalorder %s4251_s12, %s7323_s14 }
 0x438   :  { %p4257_p13 = pnand %p4255_p12, %p4252_p11 }
 0x43a   :  { %4260 = shalt.err (!%p4257_p13)
}
 0x43b   :  { %3748 = dma.vmem_to_hbm [thread:$0]  %s3746_s0, 32, %s7323_s14, [#allocation3]  }
 0x43c   :  { %4267 = dma.done.wait [#allocation3], 32  }
 0x43d   :  { %4268 = vsyncadd [#allocation3], 4294967264 }
 0x43e   :  { %3752 = vsyncpa [#allocation3], 1 }
 0x43f   :  { %3753 = vsyncpa [#allocation4], 1 }
 0x440   :  { %3754 = vsyncpa [#allocation6], 1 }
 0x441   :  { %3755 = vsyncpa [#allocation9], 1 }

</bundles_post_ra>
